<compile_context>
chip_gen: v6e
topology: v6e:2x2x1
jax: 0.10.0
libtpu: 0.0.40
codegen_flags: <defaults>
</compile_context>

<pallas_src>
import math

import jax
import jax.numpy as jnp
from jax.experimental import pallas as pl
from jax.experimental.pallas import tpu as pltpu

# ----------------------------- small config ----------------------------------
BATCH = 2
N_CHANNELS = 4
IMG_SIZE = 16
PATCH_SIZE = 8
LATENT = 32
NUM_HEADS = 4
MLP_SIZE = 64
NUM_ENCODERS = 2
NUM_CLASSES = 10

HEAD_DIM = LATENT // NUM_HEADS
NUM_PATCHES = (IMG_SIZE // PATCH_SIZE) ** 2
SEQ = NUM_PATCHES + 1
INPUT_SIZE = PATCH_SIZE * PATCH_SIZE * N_CHANNELS
LN_EPS = 1e-5
LANES = 128
NEG_INF = -1e30

# Whole batch per grid step (single-TC v5e/v6e optimum).  On dual-TC v7x this
# can be set to 2 so the 'parallel' batch axis is sharded across TensorCores.
GRID_PARTS = 1
assert BATCH % GRID_PARTS == 0
BB = BATCH // GRID_PARTS          # samples per grid step
T_BLOCK = BB * SEQ                # tokens per grid step


# --------------------------- packed weight layout ------------------------------
def _build_layout():
    """Row layout of the single (ROWS, 128) weight slab.

    Every item starts at an 8-row boundary and at lane 0, so every in-kernel
    weight load is a clean static slice with sublane/lane offset 0.
    """
    layout = {}
    cursor = 0

    def add(name, nr, nc):
        nonlocal cursor
        cursor = (cursor + 7) // 8 * 8
        layout[name] = (cursor, nr, nc)
        cursor += nr

    add("proj_w", INPUT_SIZE, LATENT)            # patch projection
    add("base", SEQ, LATENT)                     # pos-emb + (cls | proj bias)
    add("head_w1", LATENT, LATENT // 2)          # final-LN gamma folded in
    add("head_b1", 1, LATENT // 2)               # final-LN beta folded in
    add("head_w2", LATENT // 2, LANES)           # zero-padded to 128 lanes
    add("head_b2", 1, LANES)                     # zero-padded to 128 lanes
    for l in range(NUM_ENCODERS):
        add(f"l{l}_ob", 1, LATENT)               # attention out-proj bias
        add(f"l{l}_w1", LATENT, MLP_SIZE)        # ln2 gamma folded in
        add(f"l{l}_b1", 1, MLP_SIZE)             # ln2 beta folded in
        add(f"l{l}_w2", MLP_SIZE, LATENT)
        add(f"l{l}_b2", 1, LATENT)
        for h in range(NUM_HEADS):
            add(f"l{l}_h{h}_wq", LATENT, HEAD_DIM)   # ln1 gamma + 1/sqrt(dh) folded
            add(f"l{l}_h{h}_bq", 1, HEAD_DIM)
            add(f"l{l}_h{h}_wk", LATENT, HEAD_DIM)   # ln1 gamma folded; k-bias dropped
            add(f"l{l}_h{h}_wv", LATENT, HEAD_DIM)   # ln1 gamma folded
            add(f"l{l}_h{h}_bv", 1, HEAD_DIM)
            add(f"l{l}_h{h}_wo", HEAD_DIM, LATENT)   # out-proj rows of this head
    total = (cursor + 7) // 8 * 8
    return layout, total


LAYOUT, SLAB_ROWS = _build_layout()


def pack_params(params):
    """Fold + pack all model parameters into one (SLAB_ROWS, 128) f32 slab.

    Called ONCE at setup time; all algebraic folds (LayerNorm affine into the
    following matmul, q-scale, cls/pos/proj-bias base table, lane padding of
    the classifier) happen here so the kernel sees only matmul-ready blocks.
    """
    scale = 1.0 / math.sqrt(HEAD_DIM)
    vals = {}

    vals["proj_w"] = params["proj_w"]                                       # (256, 32)
    cls_row = params["class_token"][0, 0][None, :]                          # (1, 32)
    patch_bias = jnp.broadcast_to(params["proj_b"][None, :], (NUM_PATCHES, LATENT))
    vals["base"] = params["pos_embedding"][0, :SEQ] + jnp.concatenate(
        [cls_row, patch_bias], axis=0)                                      # (SEQ, 32)

    fg = params["final_ln_g"][0]
    fb = params["final_ln_b"][0]
    vals["head_w1"] = fg[:, None] * params["head_w1"]
    vals["head_b1"] = (fb @ params["head_w1"] + params["head_b1"][0])[None, :]
    vals["head_w2"] = jnp.zeros((LATENT // 2, LANES), jnp.float32).at[
        :, :NUM_CLASSES].set(params["head_w2"])
    vals["head_b2"] = jnp.zeros((1, LANES), jnp.float32).at[
        0, :NUM_CLASSES].set(params["head_b2"][0])

    for l in range(NUM_ENCODERS):
        g1, be1 = params["enc_ln1_g"][l, 0], params["enc_ln1_b"][l, 0]
        g2, be2 = params["enc_ln2_g"][l, 0], params["enc_ln2_b"][l, 0]
        in_w, in_b = params["enc_in_proj_w"][l], params["enc_in_proj_b"][l, 0]
        out_w, out_b = params["enc_out_proj_w"][l], params["enc_out_proj_b"][l, 0]
        w1, b1 = params["enc_mlp_w1"][l], params["enc_mlp_b1"][l, 0]
        w2 = params["enc_mlp_w2"][l]

        vals[f"l{l}_ob"] = out_b[None, :]
        vals[f"l{l}_w1"] = g2[:, None] * w1
        vals[f"l{l}_b1"] = (be2 @ w1 + b1)[None, :]
        vals[f"l{l}_w2"] = w2
        vals[f"l{l}_b2"] = params["enc_mlp_b2"][l]                          # (1, 32)

        for h in range(NUM_HEADS):
            lo, hi = h * HEAD_DIM, (h + 1) * HEAD_DIM
            wq, bq = in_w[:, lo:hi], in_b[lo:hi]
            wk = in_w[:, LATENT + lo:LATENT + hi]
            wv, bv = in_w[:, 2 * LATENT + lo:2 * LATENT + hi], in_b[2 * LATENT + lo:2 * LATENT + hi]
            vals[f"l{l}_h{h}_wq"] = (g1[:, None] * wq) * scale
            vals[f"l{l}_h{h}_bq"] = ((be1 @ wq + bq) * scale)[None, :]
            # K bias dropped: it only adds a per-query-row constant to the
            # attention scores, which softmax is invariant to.
            vals[f"l{l}_h{h}_wk"] = g1[:, None] * wk
            vals[f"l{l}_h{h}_wv"] = g1[:, None] * wv
            vals[f"l{l}_h{h}_bv"] = (be1 @ wv + bv)[None, :]
            vals[f"l{l}_h{h}_wo"] = out_w[lo:hi, :]

    slab = jnp.zeros((SLAB_ROWS, LANES), jnp.float32)
    for name, (r0, nr, nc) in LAYOUT.items():
        v = jnp.asarray(vals[name], jnp.float32).reshape(nr, nc)
        slab = slab.at[r0:r0 + nr, :nc].set(v)
    return slab


# ------------------------------ math helpers ----------------------------------
def _erf(x):
    # Abramowitz & Stegun 7.1.26 polynomial erf (abs err ~1.5e-7), built only
    # from Mosaic-supported elementwise ops; keeps torch.nn.GELU (exact erf)
    # semantics to fp32 resolution.
    a1, a2, a3, a4, a5 = 0.254829592, -0.284496736, 1.421413741, -1.453152027, 1.061405429
    p = 0.3275911
    s = jnp.where(x >= 0.0, 1.0, -1.0)
    ax = jnp.abs(x)
    t = 1.0 / (1.0 + p * ax)
    poly = ((((a5 * t + a4) * t + a3) * t + a2) * t + a1) * t
    return s * (1.0 - poly * jnp.exp(-ax * ax))


def _gelu_exact(x):
    return 0.5 * x * (1.0 + _erf(x * (1.0 / math.sqrt(2.0))))


def _layernorm_noaffine(x):
    # gamma/beta are folded into the following matmul's weights/bias at pack time.
    mean = jnp.mean(x, axis=-1, keepdims=True)
    c = x - mean
    var = jnp.mean(c * c, axis=-1, keepdims=True)
    return c * jax.lax.rsqrt(var + LN_EPS)


# ------------------------------ fused kernel ----------------------------------
def vit_kernel(p_ref, w_ref, o_ref, x_ref):
    # p_ref : (BB*NUM_PATCHES, INPUT_SIZE)   flattened patches of this block
    # w_ref : (SLAB_ROWS, 128)               packed weights
    # o_ref : (BB*SEQ, 128)                  lane-dense logits (all tokens)
    # x_ref : (BB*SEQ, LATENT) VMEM scratch  token activations assembly buffer
    f32 = jnp.float32
    t = x_ref.shape[0]
    bb = t // SEQ

    def W(name):
        r0, nr, nc = LAYOUT[name]
        return w_ref[r0:r0 + nr, 0:nc]

    # --- input embedding: patches @ W, then cls/pos/bias base table -----------
    p_emb = jnp.dot(p_ref[...], W("proj_w"), preferred_element_type=f32)   # (bb*NP, L)
    base = W("base")                                                       # (SEQ, L)
    for b in range(bb):
        x_ref[b * SEQ:b * SEQ + 1, :] = base[0:1, :]                       # cls row
        x_ref[b * SEQ + 1:(b + 1) * SEQ, :] = (
            p_emb[b * NUM_PATCHES:(b + 1) * NUM_PATCHES, :] + base[1:SEQ, :])
    x = x_ref[...]                                                         # (t, L)

    # --- block-diagonal attention mask (no cross-sample attention) ------------
    ri = jax.lax.broadcasted_iota(jnp.int32, (t, t), 0)
    ci = jax.lax.broadcasted_iota(jnp.int32, (t, t), 1)
    same = (ri < SEQ) & (ci < SEQ)
    for b in range(1, bb):
        lo, hi = b * SEQ, (b + 1) * SEQ
        same = same | ((ri >= lo) & (ri < hi) & (ci >= lo) & (ci < hi))
    attn_mask = jnp.where(same, 0.0, NEG_INF).astype(f32)

    # --- encoder stack (unrolled; weights stay resident in VMEM) --------------
    for l in range(NUM_ENCODERS):
        n1 = _layernorm_noaffine(x)
        # accumulator seeded with the out-projection bias
        attn = jnp.broadcast_to(W(f"l{l}_ob"), (t, LATENT))
        for h in range(NUM_HEADS):
            q = jnp.dot(n1, W(f"l{l}_h{h}_wq"), preferred_element_type=f32) + W(f"l{l}_h{h}_bq")
            k = jnp.dot(n1, W(f"l{l}_h{h}_wk"), preferred_element_type=f32)
            v = jnp.dot(n1, W(f"l{l}_h{h}_wv"), preferred_element_type=f32) + W(f"l{l}_h{h}_bv")
            s = jax.lax.dot_general(q, k, (((1,), (1,)), ((), ())),
                                    preferred_element_type=f32) + attn_mask
            s = s - jnp.max(s, axis=-1, keepdims=True)
            p = jnp.exp(s)
            p = p * pl.reciprocal(jnp.sum(p, axis=-1, keepdims=True), approx=True)
            oh = jnp.dot(p, v, preferred_element_type=f32)                 # (t, Dh)
            attn = attn + jnp.dot(oh, W(f"l{l}_h{h}_wo"), preferred_element_type=f32)
        x = x + attn  # residual 1

        n2 = _layernorm_noaffine(x)
        h1 = _gelu_exact(
            jnp.dot(n2, W(f"l{l}_w1"), preferred_element_type=f32) + W(f"l{l}_b1"))
        h2 = _gelu_exact(
            jnp.dot(h1, W(f"l{l}_w2"), preferred_element_type=f32) + W(f"l{l}_b2"))
        x = x + h2    # residual 2

    # --- final LN (affine folded into head) + 2-layer head on ALL tokens ------
    # (head weights are zero-padded to 128 lanes -> one unmasked full store;
    #  the per-sample cls rows are picked out in the wrapper)
    n3 = _layernorm_noaffine(x)
    y1 = jnp.dot(n3, W("head_w1"), preferred_element_type=f32) + W("head_b1")
    o_ref[...] = jnp.dot(y1, W("head_w2"), preferred_element_type=f32) + W("head_b2")


# ------------------------------ model glue -------------------------------------
def extract_patches(x, ps):
    # Matches PatchExtractor: unfold(2,ps,ps).unfold(3,ps,ps).permute(0,2,3,1,4,5).view(B,N,-1)
    b, c, h, w = x.shape
    nh, nw = h // ps, w // ps
    x = x.reshape(b, c, nh, ps, nw, ps)
    x = x.transpose(0, 2, 4, 1, 3, 5)
    return x.reshape(b, nh * nw, c * ps * ps)


@jax.jit
def vit_forward(x, slab):
    b = x.shape[0]
    patches = extract_patches(x, PATCH_SIZE).reshape(
        GRID_PARTS, BB * NUM_PATCHES, INPUT_SIZE)

    out = pl.pallas_call(
        vit_kernel,
        out_shape=jax.ShapeDtypeStruct((GRID_PARTS, T_BLOCK, LANES), jnp.float32),
        grid=(GRID_PARTS,),
        in_specs=[
            pl.BlockSpec((None, BB * NUM_PATCHES, INPUT_SIZE), lambda i: (i, 0, 0)),
            pl.BlockSpec((SLAB_ROWS, LANES), lambda i: (0, 0)),
        ],
        out_specs=pl.BlockSpec((None, T_BLOCK, LANES), lambda i: (i, 0, 0)),
        scratch_shapes=[pltpu.VMEM((T_BLOCK, LATENT), jnp.float32)],
        compiler_params=pltpu.CompilerParams(dimension_semantics=("parallel",)),
    )(patches, slab)

    # cls token of each sample sits at row s*SEQ of the token-major logit slab
    return out.reshape(b * SEQ, LANES)[0::SEQ, :NUM_CLASSES]


# ------------------------------ parameters -------------------------------------
def init_params(key):
    def nrm(k, shape, scale=0.02):
        return scale * jax.random.normal(k, shape, dtype=jnp.float32)

    keys = iter(jax.random.split(key, 32))
    return {
        "proj_w": nrm(next(keys), (INPUT_SIZE, LATENT)),
        "proj_b": nrm(next(keys), (LATENT,)),
        "class_token": jax.random.normal(next(keys), (1, 1, LATENT), dtype=jnp.float32),
        "pos_embedding": jax.random.normal(next(keys), (1, SEQ, LATENT), dtype=jnp.float32),
        "enc_ln1_g": jnp.ones((NUM_ENCODERS, 1, LATENT), jnp.float32),
        "enc_ln1_b": jnp.zeros((NUM_ENCODERS, 1, LATENT), jnp.float32),
        "enc_ln2_g": jnp.ones((NUM_ENCODERS, 1, LATENT), jnp.float32),
        "enc_ln2_b": jnp.zeros((NUM_ENCODERS, 1, LATENT), jnp.float32),
        "enc_in_proj_w": nrm(next(keys), (NUM_ENCODERS, LATENT, 3 * LATENT)),
        "enc_in_proj_b": nrm(next(keys), (NUM_ENCODERS, 1, 3 * LATENT)),
        "enc_out_proj_w": nrm(next(keys), (NUM_ENCODERS, LATENT, LATENT)),
        "enc_out_proj_b": nrm(next(keys), (NUM_ENCODERS, 1, LATENT)),
        "enc_mlp_w1": nrm(next(keys), (NUM_ENCODERS, LATENT, MLP_SIZE)),
        "enc_mlp_b1": nrm(next(keys), (NUM_ENCODERS, 1, MLP_SIZE)),
        "enc_mlp_w2": nrm(next(keys), (NUM_ENCODERS, MLP_SIZE, LATENT)),
        "enc_mlp_b2": nrm(next(keys), (NUM_ENCODERS, 1, LATENT)),
        "final_ln_g": jnp.ones((1, LATENT), jnp.float32),
        "final_ln_b": jnp.zeros((1, LATENT), jnp.float32),
        "head_w1": nrm(next(keys), (LATENT, LATENT // 2)),
        "head_b1": nrm(next(keys), (1, LATENT // 2)),
        "head_w2": nrm(next(keys), (LATENT // 2, NUM_CLASSES)),
        "head_b2": nrm(next(keys), (1, NUM_CLASSES)),
    }


if __name__ == "__main__":
    root = jax.random.PRNGKey(0)
    x_key, p_key = jax.random.split(root)
    x = jax.random.normal(x_key, (BATCH, N_CHANNELS, IMG_SIZE, IMG_SIZE), dtype=jnp.float32)
    params = init_params(p_key)

    slab = pack_params(params)            # one-time: fold + pack all weights
    jax.block_until_ready(slab)

    logits = vit_forward(x, slab)
    jax.block_until_ready(logits)
    assert logits.shape == (BATCH, NUM_CLASSES), logits.shape
    assert bool(jnp.all(jnp.isfinite(logits)))
    print("KERNEL_OK")
</pallas_src>

<mosaic_0001>
module attributes {stable_mosaic.version = 11 : i64} {
  func.func @vit_kernel(%arg0: i32, %arg1: memref<1x8x256xf32, #tpu.memory_space<vmem>>, %arg2: memref<1528x128xf32, #tpu.memory_space<vmem>>, %arg3: memref<1x10x128xf32, #tpu.memory_space<vmem>>, %arg4: memref<10x32xf32, #tpu.memory_space<vmem>>) attributes {dimension_semantics = [#tpu.dimension_semantics<parallel>], iteration_bounds = array<i64: 1>, scalar_prefetch = 0 : i64, scratch_operands = 1 : i64, tpu.core_type = #tpu.core_type<tc>, window_params = [{transform_indices = @transform_0, window_bounds = array<i64: 1, 8, 256>}, {pipeline_mode = #tpu.pipeline_mode<synchronous>, transform_indices = @transform_1, window_bounds = array<i64: 1528, 128>}, {transform_indices = @transform_2, window_bounds = array<i64: 1, 10, 128>}]} {
    %c0 = arith.constant 0 : index
    %c0_0 = arith.constant 0 : index
    %c0_1 = arith.constant 0 : index
    %0 = vector.load %arg1[%c0, %c0_0, %c0_1] : memref<1x8x256xf32, #tpu.memory_space<vmem>>, vector<1x8x256xf32>
    %1 = vector.shape_cast %0 : vector<1x8x256xf32> to vector<8x256xf32>
    %c0_2 = arith.constant 0 : index
    %c0_3 = arith.constant 0 : index
    %2 = vector.load %arg2[%c0_2, %c0_3] : memref<1528x128xf32, #tpu.memory_space<vmem>>, vector<256x32xf32>
    %cst = arith.constant dense<0.000000e+00> : vector<8x32xf32>
    %3 = tpu.matmul %1, %2, %cst {dimension_numbers = #tpu.dot_dimension_numbers<[1], [0], [0], [1], [0, 0, 1, 1], [], []>} : vector<8x256xf32>, vector<256x32xf32>, vector<8x32xf32> -> vector<8x32xf32>
    %c256 = arith.constant 256 : index
    %c0_4 = arith.constant 0 : index
    %4 = vector.load %arg2[%c256, %c0_4] : memref<1528x128xf32, #tpu.memory_space<vmem>>, vector<5x32xf32>
    %5 = vector.extract_strided_slice %4 {offsets = [0, 0], sizes = [1, 32], strides = [1, 1]} : vector<5x32xf32> to vector<1x32xf32>
    %c0_5 = arith.constant 0 : index
    %c0_6 = arith.constant 0 : index
    %6 = vector.load %arg4[%c0_5, %c0_6] : memref<10x32xf32, #tpu.memory_space<vmem>>, vector<1x32xf32>
    tpu.vector_store %arg4[%c0_5, %c0_6], %5 {strides = array<i32>} : memref<10x32xf32, #tpu.memory_space<vmem>>, vector<1x32xf32>,
    %7 = vector.extract_strided_slice %3 {offsets = [0, 0], sizes = [4, 32], strides = [1, 1]} : vector<8x32xf32> to vector<4x32xf32>
    %8 = vector.extract_strided_slice %4 {offsets = [1, 0], sizes = [4, 32], strides = [1, 1]} : vector<5x32xf32> to vector<4x32xf32>
    %9 = arith.addf %7, %8 : vector<4x32xf32>
    %c1 = arith.constant 1 : index
    %c0_7 = arith.constant 0 : index
    %10 = vector.load %arg4[%c1, %c0_7] : memref<10x32xf32, #tpu.memory_space<vmem>>, vector<4x32xf32>
    tpu.vector_store %arg4[%c1, %c0_7], %9 {strides = array<i32>} : memref<10x32xf32, #tpu.memory_space<vmem>>, vector<4x32xf32>,
    %11 = vector.extract_strided_slice %4 {offsets = [0, 0], sizes = [1, 32], strides = [1, 1]} : vector<5x32xf32> to vector<1x32xf32>
    %c5 = arith.constant 5 : index
    %c0_8 = arith.constant 0 : index
    %12 = vector.load %arg4[%c5, %c0_8] : memref<10x32xf32, #tpu.memory_space<vmem>>, vector<1x32xf32>
    tpu.vector_store %arg4[%c5, %c0_8], %11 {strides = array<i32>} : memref<10x32xf32, #tpu.memory_space<vmem>>, vector<1x32xf32>,
    %13 = vector.extract_strided_slice %3 {offsets = [4, 0], sizes = [4, 32], strides = [1, 1]} : vector<8x32xf32> to vector<4x32xf32>
    %14 = vector.extract_strided_slice %4 {offsets = [1, 0], sizes = [4, 32], strides = [1, 1]} : vector<5x32xf32> to vector<4x32xf32>
    %15 = arith.addf %13, %14 : vector<4x32xf32>
    %c6 = arith.constant 6 : index
    %c0_9 = arith.constant 0 : index
    %16 = vector.load %arg4[%c6, %c0_9] : memref<10x32xf32, #tpu.memory_space<vmem>>, vector<4x32xf32>
    tpu.vector_store %arg4[%c6, %c0_9], %15 {strides = array<i32>} : memref<10x32xf32, #tpu.memory_space<vmem>>, vector<4x32xf32>,
    %c0_10 = arith.constant 0 : index
    %c0_11 = arith.constant 0 : index
    %17 = vector.load %arg4[%c0_10, %c0_11] : memref<10x32xf32, #tpu.memory_space<vmem>>, vector<10x32xf32>
    %18 = tpu.iota {dimensions = array<i32: 0>} : vector<10x10xi32>
    %19 = tpu.iota {dimensions = array<i32: 1>} : vector<10x10xi32>
    %c5_i32 = arith.constant 5 : i32
    %20 = vector.broadcast %c5_i32 : i32 to vector<10x10xi32>
    %21 = arith.cmpi slt, %18, %20 : vector<10x10xi32>
    %c5_i32_12 = arith.constant 5 : i32
    %22 = vector.broadcast %c5_i32_12 : i32 to vector<10x10xi32>
    %23 = arith.cmpi slt, %19, %22 : vector<10x10xi32>
    %24 = arith.andi %21, %23 : vector<10x10xi1>
    %c5_i32_13 = arith.constant 5 : i32
    %25 = vector.broadcast %c5_i32_13 : i32 to vector<10x10xi32>
    %26 = arith.cmpi sge, %18, %25 : vector<10x10xi32>
    %c10_i32 = arith.constant 10 : i32
    %27 = vector.broadcast %c10_i32 : i32 to vector<10x10xi32>
    %28 = arith.cmpi slt, %18, %27 : vector<10x10xi32>
    %29 = arith.andi %26, %28 : vector<10x10xi1>
    %c5_i32_14 = arith.constant 5 : i32
    %30 = vector.broadcast %c5_i32_14 : i32 to vector<10x10xi32>
    %31 = arith.cmpi sge, %19, %30 : vector<10x10xi32>
    %32 = arith.andi %29, %31 : vector<10x10xi1>
    %c10_i32_15 = arith.constant 10 : i32
    %33 = vector.broadcast %c10_i32_15 : i32 to vector<10x10xi32>
    %34 = arith.cmpi slt, %19, %33 : vector<10x10xi32>
    %35 = arith.andi %32, %34 : vector<10x10xi1>
    %36 = arith.ori %24, %35 : vector<10x10xi1>
    %cst_16 = arith.constant 0.000000e+00 : f32
    %cst_17 = arith.constant -1.000000e+30 : f32
    %37 = vector.broadcast %cst_16 : f32 to vector<10x10xf32>
    %38 = vector.broadcast %cst_17 : f32 to vector<10x10xf32>
    %39 = arith.select %36, %37, %38 : vector<10x10xi1>, vector<10x10xf32>
    %cst_18 = arith.constant dense<0.000000e+00> : vector<10xf32>
    %40 = vector.multi_reduction <add>, %17, %cst_18 [1] : vector<10x32xf32> to vector<10xf32>
    %41 = vector.shape_cast %40 : vector<10xf32> to vector<10x1xf32>
    %cst_19 = arith.constant 3.200000e+01 : f32
    %42 = vector.broadcast %cst_19 : f32 to vector<10x1xf32>
    %43 = arith.divf %41, %42 : vector<10x1xf32>
    %44 = vector.broadcast %43 : vector<10x1xf32> to vector<10x32xf32>
    %45 = arith.subf %17, %44 : vector<10x32xf32>
    %46 = arith.mulf %45, %45 : vector<10x32xf32>
    %cst_20 = arith.constant dense<0.000000e+00> : vector<10xf32>
    %47 = vector.multi_reduction <add>, %46, %cst_20 [1] : vector<10x32xf32> to vector<10xf32>
    %48 = vector.shape_cast %47 : vector<10xf32> to vector<10x1xf32>
    %cst_21 = arith.constant 3.200000e+01 : f32
    %49 = vector.broadcast %cst_21 : f32 to vector<10x1xf32>
    %50 = arith.divf %48, %49 : vector<10x1xf32>
    %cst_22 = arith.constant 9.99999974E-6 : f32
    %51 = vector.broadcast %cst_22 : f32 to vector<10x1xf32>
    %52 = arith.addf %50, %51 : vector<10x1xf32>
    %53 = math.rsqrt %52 : vector<10x1xf32>
    %54 = vector.broadcast %53 : vector<10x1xf32> to vector<10x32xf32>
    %55 = arith.mulf %45, %54 : vector<10x32xf32>
    %c328 = arith.constant 328 : index
    %c0_23 = arith.constant 0 : index
    %56 = vector.load %arg2[%c328, %c0_23] : memref<1528x128xf32, #tpu.memory_space<vmem>>, vector<1x32xf32>
    %57 = vector.shape_cast %56 : vector<1x32xf32> to vector<1x32xf32>
    %58 = vector.broadcast %57 : vector<1x32xf32> to vector<10x32xf32>
    %c448 = arith.constant 448 : index
    %c0_24 = arith.constant 0 : index
    %59 = vector.load %arg2[%c448, %c0_24] : memref<1528x128xf32, #tpu.memory_space<vmem>>, vector<32x8xf32>
    %cst_25 = arith.constant dense<0.000000e+00> : vector<10x8xf32>
    %60 = tpu.matmul %55, %59, %cst_25 {dimension_numbers = #tpu.dot_dimension_numbers<[1], [0], [0], [1], [0, 0, 1, 1], [], []>} : vector<10x32xf32>, vector<32x8xf32>, vector<10x8xf32> -> vector<10x8xf32>
    %c480 = arith.constant 480 : index
    %c0_26 = arith.constant 0 : index
    %61 = vector.load %arg2[%c480, %c0_26] : memref<1528x128xf32, #tpu.memory_space<vmem>>, vector<1x8xf32>
    %62 = vector.broadcast %61 : vector<1x8xf32> to vector<10x8xf32>
    %63 = arith.addf %60, %62 : vector<10x8xf32>
    %c488 = arith.constant 488 : index
    %c0_27 = arith.constant 0 : index
    %64 = vector.load %arg2[%c488, %c0_27] : memref<1528x128xf32, #tpu.memory_space<vmem>>, vector<32x8xf32>
    %cst_28 = arith.constant dense<0.000000e+00> : vector<10x8xf32>
    %65 = tpu.matmul %55, %64, %cst_28 {dimension_numbers = #tpu.dot_dimension_numbers<[1], [0], [0], [1], [0, 0, 1, 1], [], []>} : vector<10x32xf32>, vector<32x8xf32>, vector<10x8xf32> -> vector<10x8xf32>
    %c520 = arith.constant 520 : index
    %c0_29 = arith.constant 0 : index
    %66 = vector.load %arg2[%c520, %c0_29] : memref<1528x128xf32, #tpu.memory_space<vmem>>, vector<32x8xf32>
    %cst_30 = arith.constant dense<0.000000e+00> : vector<10x8xf32>
    %67 = tpu.matmul %55, %66, %cst_30 {dimension_numbers = #tpu.dot_dimension_numbers<[1], [0], [0], [1], [0, 0, 1, 1], [], []>} : vector<10x32xf32>, vector<32x8xf32>, vector<10x8xf32> -> vector<10x8xf32>
    %c552 = arith.constant 552 : index
    %c0_31 = arith.constant 0 : index
    %68 = vector.load %arg2[%c552, %c0_31] : memref<1528x128xf32, #tpu.memory_space<vmem>>, vector<1x8xf32>
    %69 = vector.broadcast %68 : vector<1x8xf32> to vector<10x8xf32>
    %70 = arith.addf %67, %69 : vector<10x8xf32>
    %cst_32 = arith.constant dense<0.000000e+00> : vector<10x10xf32>
    %71 = tpu.matmul %63, %65, %cst_32 {dimension_numbers = #tpu.dot_dimension_numbers<[1], [1], [0], [0], [0, 0, 1, 0], [], []>} : vector<10x8xf32>, vector<10x8xf32>, vector<10x10xf32> -> vector<10x10xf32>
    %72 = arith.addf %71, %39 : vector<10x10xf32>
    %cst_33 = arith.constant dense<0xFF800000> : vector<10xf32>
    %73 = vector.multi_reduction <maximumf>, %72, %cst_33 [1] : vector<10x10xf32> to vector<10xf32>
    %74 = vector.shape_cast %73 : vector<10xf32> to vector<10x1xf32>
    %75 = vector.broadcast %74 : vector<10x1xf32> to vector<10x10xf32>
    %76 = arith.subf %72, %75 : vector<10x10xf32>
    %77 = math.exp %76 : vector<10x10xf32>
    %cst_34 = arith.constant dense<0.000000e+00> : vector<10xf32>
    %78 = vector.multi_reduction <add>, %77, %cst_34 [1] : vector<10x10xf32> to vector<10xf32>
    %79 = vector.shape_cast %78 : vector<10xf32> to vector<10x1xf32>
    %80 = tpu.reciprocal %79 {approx = true} : vector<10x1xf32> -> vector<10x1xf32>
    %81 = vector.broadcast %80 : vector<10x1xf32> to vector<10x10xf32>
    %82 = arith.mulf %77, %81 : vector<10x10xf32>
    %cst_35 = arith.constant dense<0.000000e+00> : vector<10x8xf32>
    %83 = tpu.matmul %82, %70, %cst_35 {dimension_numbers = #tpu.dot_dimension_numbers<[1], [0], [0], [1], [0, 0, 1, 1], [], []>} : vector<10x10xf32>, vector<10x8xf32>, vector<10x8xf32> -> vector<10x8xf32>
    %c560 = arith.constant 560 : index
    %c0_36 = arith.constant 0 : index
    %84 = vector.load %arg2[%c560, %c0_36] : memref<1528x128xf32, #tpu.memory_space<vmem>>, vector<8x32xf32>
    %cst_37 = arith.constant dense<0.000000e+00> : vector<10x32xf32>
    %85 = tpu.matmul %83, %84, %cst_37 {dimension_numbers = #tpu.dot_dimension_numbers<[1], [0], [0], [1], [0, 0, 1, 1], [], []>} : vector<10x8xf32>, vector<8x32xf32>, vector<10x32xf32> -> vector<10x32xf32>
    %86 = arith.addf %58, %85 : vector<10x32xf32>
    %c568 = arith.constant 568 : index
    %c0_38 = arith.constant 0 : index
    %87 = vector.load %arg2[%c568, %c0_38] : memref<1528x128xf32, #tpu.memory_space<vmem>>, vector<32x8xf32>
    %cst_39 = arith.constant dense<0.000000e+00> : vector<10x8xf32>
    %88 = tpu.matmul %55, %87, %cst_39 {dimension_numbers = #tpu.dot_dimension_numbers<[1], [0], [0], [1], [0, 0, 1, 1], [], []>} : vector<10x32xf32>, vector<32x8xf32>, vector<10x8xf32> -> vector<10x8xf32>
    %c600 = arith.constant 600 : index
    %c0_40 = arith.constant 0 : index
    %89 = vector.load %arg2[%c600, %c0_40] : memref<1528x128xf32, #tpu.memory_space<vmem>>, vector<1x8xf32>
    %90 = vector.broadcast %89 : vector<1x8xf32> to vector<10x8xf32>
    %91 = arith.addf %88, %90 : vector<10x8xf32>
    %c608 = arith.constant 608 : index
    %c0_41 = arith.constant 0 : index
    %92 = vector.load %arg2[%c608, %c0_41] : memref<1528x128xf32, #tpu.memory_space<vmem>>, vector<32x8xf32>
    %cst_42 = arith.constant dense<0.000000e+00> : vector<10x8xf32>
    %93 = tpu.matmul %55, %92, %cst_42 {dimension_numbers = #tpu.dot_dimension_numbers<[1], [0], [0], [1], [0, 0, 1, 1], [], []>} : vector<10x32xf32>, vector<32x8xf32>, vector<10x8xf32> -> vector<10x8xf32>
    %c640 = arith.constant 640 : index
    %c0_43 = arith.constant 0 : index
    %94 = vector.load %arg2[%c640, %c0_43] : memref<1528x128xf32, #tpu.memory_space<vmem>>, vector<32x8xf32>
    %cst_44 = arith.constant dense<0.000000e+00> : vector<10x8xf32>
    %95 = tpu.matmul %55, %94, %cst_44 {dimension_numbers = #tpu.dot_dimension_numbers<[1], [0], [0], [1], [0, 0, 1, 1], [], []>} : vector<10x32xf32>, vector<32x8xf32>, vector<10x8xf32> -> vector<10x8xf32>
    %c672 = arith.constant 672 : index
    %c0_45 = arith.constant 0 : index
    %96 = vector.load %arg2[%c672, %c0_45] : memref<1528x128xf32, #tpu.memory_space<vmem>>, vector<1x8xf32>
    %97 = vector.broadcast %96 : vector<1x8xf32> to vector<10x8xf32>
    %98 = arith.addf %95, %97 : vector<10x8xf32>
    %cst_46 = arith.constant dense<0.000000e+00> : vector<10x10xf32>
    %99 = tpu.matmul %91, %93, %cst_46 {dimension_numbers = #tpu.dot_dimension_numbers<[1], [1], [0], [0], [0, 0, 1, 0], [], []>} : vector<10x8xf32>, vector<10x8xf32>, vector<10x10xf32> -> vector<10x10xf32>
    %100 = arith.addf %99, %39 : vector<10x10xf32>
    %cst_47 = arith.constant dense<0xFF800000> : vector<10xf32>
    %101 = vector.multi_reduction <maximumf>, %100, %cst_47 [1] : vector<10x10xf32> to vector<10xf32>
    %102 = vector.shape_cast %101 : vector<10xf32> to vector<10x1xf32>
    %103 = vector.broadcast %102 : vector<10x1xf32> to vector<10x10xf32>
    %104 = arith.subf %100, %103 : vector<10x10xf32>
    %105 = math.exp %104 : vector<10x10xf32>
    %cst_48 = arith.constant dense<0.000000e+00> : vector<10xf32>
    %106 = vector.multi_reduction <add>, %105, %cst_48 [1] : vector<10x10xf32> to vector<10xf32>
    %107 = vector.shape_cast %106 : vector<10xf32> to vector<10x1xf32>
    %108 = tpu.reciprocal %107 {approx = true} : vector<10x1xf32> -> vector<10x1xf32>
    %109 = vector.broadcast %108 : vector<10x1xf32> to vector<10x10xf32>
    %110 = arith.mulf %105, %109 : vector<10x10xf32>
    %cst_49 = arith.constant dense<0.000000e+00> : vector<10x8xf32>
    %111 = tpu.matmul %110, %98, %cst_49 {dimension_numbers = #tpu.dot_dimension_numbers<[1], [0], [0], [1], [0, 0, 1, 1], [], []>} : vector<10x10xf32>, vector<10x8xf32>, vector<10x8xf32> -> vector<10x8xf32>
    %c680 = arith.constant 680 : index
    %c0_50 = arith.constant 0 : index
    %112 = vector.load %arg2[%c680, %c0_50] : memref<1528x128xf32, #tpu.memory_space<vmem>>, vector<8x32xf32>
    %cst_51 = arith.constant dense<0.000000e+00> : vector<10x32xf32>
    %113 = tpu.matmul %111, %112, %cst_51 {dimension_numbers = #tpu.dot_dimension_numbers<[1], [0], [0], [1], [0, 0, 1, 1], [], []>} : vector<10x8xf32>, vector<8x32xf32>, vector<10x32xf32> -> vector<10x32xf32>
    %114 = arith.addf %86, %113 : vector<10x32xf32>
    %c688 = arith.constant 688 : index
    %c0_52 = arith.constant 0 : index
    %115 = vector.load %arg2[%c688, %c0_52] : memref<1528x128xf32, #tpu.memory_space<vmem>>, vector<32x8xf32>
    %cst_53 = arith.constant dense<0.000000e+00> : vector<10x8xf32>
    %116 = tpu.matmul %55, %115, %cst_53 {dimension_numbers = #tpu.dot_dimension_numbers<[1], [0], [0], [1], [0, 0, 1, 1], [], []>} : vector<10x32xf32>, vector<32x8xf32>, vector<10x8xf32> -> vector<10x8xf32>
    %c720 = arith.constant 720 : index
    %c0_54 = arith.constant 0 : index
    %117 = vector.load %arg2[%c720, %c0_54] : memref<1528x128xf32, #tpu.memory_space<vmem>>, vector<1x8xf32>
    %118 = vector.broadcast %117 : vector<1x8xf32> to vector<10x8xf32>
    %119 = arith.addf %116, %118 : vector<10x8xf32>
    %c728 = arith.constant 728 : index
    %c0_55 = arith.constant 0 : index
    %120 = vector.load %arg2[%c728, %c0_55] : memref<1528x128xf32, #tpu.memory_space<vmem>>, vector<32x8xf32>
    %cst_56 = arith.constant dense<0.000000e+00> : vector<10x8xf32>
    %121 = tpu.matmul %55, %120, %cst_56 {dimension_numbers = #tpu.dot_dimension_numbers<[1], [0], [0], [1], [0, 0, 1, 1], [], []>} : vector<10x32xf32>, vector<32x8xf32>, vector<10x8xf32> -> vector<10x8xf32>
    %c760 = arith.constant 760 : index
    %c0_57 = arith.constant 0 : index
    %122 = vector.load %arg2[%c760, %c0_57] : memref<1528x128xf32, #tpu.memory_space<vmem>>, vector<32x8xf32>
    %cst_58 = arith.constant dense<0.000000e+00> : vector<10x8xf32>
    %123 = tpu.matmul %55, %122, %cst_58 {dimension_numbers = #tpu.dot_dimension_numbers<[1], [0], [0], [1], [0, 0, 1, 1], [], []>} : vector<10x32xf32>, vector<32x8xf32>, vector<10x8xf32> -> vector<10x8xf32>
    %c792 = arith.constant 792 : index
    %c0_59 = arith.constant 0 : index
    %124 = vector.load %arg2[%c792, %c0_59] : memref<1528x128xf32, #tpu.memory_space<vmem>>, vector<1x8xf32>
    %125 = vector.broadcast %124 : vector<1x8xf32> to vector<10x8xf32>
    %126 = arith.addf %123, %125 : vector<10x8xf32>
    %cst_60 = arith.constant dense<0.000000e+00> : vector<10x10xf32>
    %127 = tpu.matmul %119, %121, %cst_60 {dimension_numbers = #tpu.dot_dimension_numbers<[1], [1], [0], [0], [0, 0, 1, 0], [], []>} : vector<10x8xf32>, vector<10x8xf32>, vector<10x10xf32> -> vector<10x10xf32>
    %128 = arith.addf %127, %39 : vector<10x10xf32>
    %cst_61 = arith.constant dense<0xFF800000> : vector<10xf32>
    %129 = vector.multi_reduction <maximumf>, %128, %cst_61 [1] : vector<10x10xf32> to vector<10xf32>
    %130 = vector.shape_cast %129 : vector<10xf32> to vector<10x1xf32>
    %131 = vector.broadcast %130 : vector<10x1xf32> to vector<10x10xf32>
    %132 = arith.subf %128, %131 : vector<10x10xf32>
    %133 = math.exp %132 : vector<10x10xf32>
    %cst_62 = arith.constant dense<0.000000e+00> : vector<10xf32>
    %134 = vector.multi_reduction <add>, %133, %cst_62 [1] : vector<10x10xf32> to vector<10xf32>
    %135 = vector.shape_cast %134 : vector<10xf32> to vector<10x1xf32>
    %136 = tpu.reciprocal %135 {approx = true} : vector<10x1xf32> -> vector<10x1xf32>
    %137 = vector.broadcast %136 : vector<10x1xf32> to vector<10x10xf32>
    %138 = arith.mulf %133, %137 : vector<10x10xf32>
    %cst_63 = arith.constant dense<0.000000e+00> : vector<10x8xf32>
    %139 = tpu.matmul %138, %126, %cst_63 {dimension_numbers = #tpu.dot_dimension_numbers<[1], [0], [0], [1], [0, 0, 1, 1], [], []>} : vector<10x10xf32>, vector<10x8xf32>, vector<10x8xf32> -> vector<10x8xf32>
    %c800 = arith.constant 800 : index
    %c0_64 = arith.constant 0 : index
    %140 = vector.load %arg2[%c800, %c0_64] : memref<1528x128xf32, #tpu.memory_space<vmem>>, vector<8x32xf32>
    %cst_65 = arith.constant dense<0.000000e+00> : vector<10x32xf32>
    %141 = tpu.matmul %139, %140, %cst_65 {dimension_numbers = #tpu.dot_dimension_numbers<[1], [0], [0], [1], [0, 0, 1, 1], [], []>} : vector<10x8xf32>, vector<8x32xf32>, vector<10x32xf32> -> vector<10x32xf32>
    %142 = arith.addf %114, %141 : vector<10x32xf32>
    %c808 = arith.constant 808 : index
    %c0_66 = arith.constant 0 : index
    %143 = vector.load %arg2[%c808, %c0_66] : memref<1528x128xf32, #tpu.memory_space<vmem>>, vector<32x8xf32>
    %cst_67 = arith.constant dense<0.000000e+00> : vector<10x8xf32>
    %144 = tpu.matmul %55, %143, %cst_67 {dimension_numbers = #tpu.dot_dimension_numbers<[1], [0], [0], [1], [0, 0, 1, 1], [], []>} : vector<10x32xf32>, vector<32x8xf32>, vector<10x8xf32> -> vector<10x8xf32>
    %c840 = arith.constant 840 : index
    %c0_68 = arith.constant 0 : index
    %145 = vector.load %arg2[%c840, %c0_68] : memref<1528x128xf32, #tpu.memory_space<vmem>>, vector<1x8xf32>
    %146 = vector.broadcast %145 : vector<1x8xf32> to vector<10x8xf32>
    %147 = arith.addf %144, %146 : vector<10x8xf32>
    %c848 = arith.constant 848 : index
    %c0_69 = arith.constant 0 : index
    %148 = vector.load %arg2[%c848, %c0_69] : memref<1528x128xf32, #tpu.memory_space<vmem>>, vector<32x8xf32>
    %cst_70 = arith.constant dense<0.000000e+00> : vector<10x8xf32>
    %149 = tpu.matmul %55, %148, %cst_70 {dimension_numbers = #tpu.dot_dimension_numbers<[1], [0], [0], [1], [0, 0, 1, 1], [], []>} : vector<10x32xf32>, vector<32x8xf32>, vector<10x8xf32> -> vector<10x8xf32>
    %c880 = arith.constant 880 : index
    %c0_71 = arith.constant 0 : index
    %150 = vector.load %arg2[%c880, %c0_71] : memref<1528x128xf32, #tpu.memory_space<vmem>>, vector<32x8xf32>
    %cst_72 = arith.constant dense<0.000000e+00> : vector<10x8xf32>
    %151 = tpu.matmul %55, %150, %cst_72 {dimension_numbers = #tpu.dot_dimension_numbers<[1], [0], [0], [1], [0, 0, 1, 1], [], []>} : vector<10x32xf32>, vector<32x8xf32>, vector<10x8xf32> -> vector<10x8xf32>
    %c912 = arith.constant 912 : index
    %c0_73 = arith.constant 0 : index
    %152 = vector.load %arg2[%c912, %c0_73] : memref<1528x128xf32, #tpu.memory_space<vmem>>, vector<1x8xf32>
    %153 = vector.broadcast %152 : vector<1x8xf32> to vector<10x8xf32>
    %154 = arith.addf %151, %153 : vector<10x8xf32>
    %cst_74 = arith.constant dense<0.000000e+00> : vector<10x10xf32>
    %155 = tpu.matmul %147, %149, %cst_74 {dimension_numbers = #tpu.dot_dimension_numbers<[1], [1], [0], [0], [0, 0, 1, 0], [], []>} : vector<10x8xf32>, vector<10x8xf32>, vector<10x10xf32> -> vector<10x10xf32>
    %156 = arith.addf %155, %39 : vector<10x10xf32>
    %cst_75 = arith.constant dense<0xFF800000> : vector<10xf32>
    %157 = vector.multi_reduction <maximumf>, %156, %cst_75 [1] : vector<10x10xf32> to vector<10xf32>
    %158 = vector.shape_cast %157 : vector<10xf32> to vector<10x1xf32>
    %159 = vector.broadcast %158 : vector<10x1xf32> to vector<10x10xf32>
    %160 = arith.subf %156, %159 : vector<10x10xf32>
    %161 = math.exp %160 : vector<10x10xf32>
    %cst_76 = arith.constant dense<0.000000e+00> : vector<10xf32>
    %162 = vector.multi_reduction <add>, %161, %cst_76 [1] : vector<10x10xf32> to vector<10xf32>
    %163 = vector.shape_cast %162 : vector<10xf32> to vector<10x1xf32>
    %164 = tpu.reciprocal %163 {approx = true} : vector<10x1xf32> -> vector<10x1xf32>
    %165 = vector.broadcast %164 : vector<10x1xf32> to vector<10x10xf32>
    %166 = arith.mulf %161, %165 : vector<10x10xf32>
    %cst_77 = arith.constant dense<0.000000e+00> : vector<10x8xf32>
    %167 = tpu.matmul %166, %154, %cst_77 {dimension_numbers = #tpu.dot_dimension_numbers<[1], [0], [0], [1], [0, 0, 1, 1], [], []>} : vector<10x10xf32>, vector<10x8xf32>, vector<10x8xf32> -> vector<10x8xf32>
    %c920 = arith.constant 920 : index
    %c0_78 = arith.constant 0 : index
    %168 = vector.load %arg2[%c920, %c0_78] : memref<1528x128xf32, #tpu.memory_space<vmem>>, vector<8x32xf32>
    %cst_79 = arith.constant dense<0.000000e+00> : vector<10x32xf32>
    %169 = tpu.matmul %167, %168, %cst_79 {dimension_numbers = #tpu.dot_dimension_numbers<[1], [0], [0], [1], [0, 0, 1, 1], [], []>} : vector<10x8xf32>, vector<8x32xf32>, vector<10x32xf32> -> vector<10x32xf32>
    %170 = arith.addf %142, %169 : vector<10x32xf32>
    %171 = arith.addf %17, %170 : vector<10x32xf32>
    %cst_80 = arith.constant dense<0.000000e+00> : vector<10xf32>
    %172 = vector.multi_reduction <add>, %171, %cst_80 [1] : vector<10x32xf32> to vector<10xf32>
    %173 = vector.shape_cast %172 : vector<10xf32> to vector<10x1xf32>
    %cst_81 = arith.constant 3.200000e+01 : f32
    %174 = vector.broadcast %cst_81 : f32 to vector<10x1xf32>
    %175 = arith.divf %173, %174 : vector<10x1xf32>
    %176 = vector.broadcast %175 : vector<10x1xf32> to vector<10x32xf32>
    %177 = arith.subf %171, %176 : vector<10x32xf32>
    %178 = arith.mulf %177, %177 : vector<10x32xf32>
    %cst_82 = arith.constant dense<0.000000e+00> : vector<10xf32>
    %179 = vector.multi_reduction <add>, %178, %cst_82 [1] : vector<10x32xf32> to vector<10xf32>
    %180 = vector.shape_cast %179 : vector<10xf32> to vector<10x1xf32>
    %cst_83 = arith.constant 3.200000e+01 : f32
    %181 = vector.broadcast %cst_83 : f32 to vector<10x1xf32>
    %182 = arith.divf %180, %181 : vector<10x1xf32>
    %cst_84 = arith.constant 9.99999974E-6 : f32
    %183 = vector.broadcast %cst_84 : f32 to vector<10x1xf32>
    %184 = arith.addf %182, %183 : vector<10x1xf32>
    %185 = math.rsqrt %184 : vector<10x1xf32>
    %186 = vector.broadcast %185 : vector<10x1xf32> to vector<10x32xf32>
    %187 = arith.mulf %177, %186 : vector<10x32xf32>
    %c336 = arith.constant 336 : index
    %c0_85 = arith.constant 0 : index
    %188 = vector.load %arg2[%c336, %c0_85] : memref<1528x128xf32, #tpu.memory_space<vmem>>, vector<32x64xf32>
    %cst_86 = arith.constant dense<0.000000e+00> : vector<10x64xf32>
    %189 = tpu.matmul %187, %188, %cst_86 {dimension_numbers = #tpu.dot_dimension_numbers<[1], [0], [0], [1], [0, 0, 1, 1], [], []>} : vector<10x32xf32>, vector<32x64xf32>, vector<10x64xf32> -> vector<10x64xf32>
    %c368 = arith.constant 368 : index
    %c0_87 = arith.constant 0 : index
    %190 = vector.load %arg2[%c368, %c0_87] : memref<1528x128xf32, #tpu.memory_space<vmem>>, vector<1x64xf32>
    %191 = vector.broadcast %190 : vector<1x64xf32> to vector<10x64xf32>
    %192 = arith.addf %189, %191 : vector<10x64xf32>
    %cst_88 = arith.constant 5.000000e-01 : f32
    %193 = vector.broadcast %cst_88 : f32 to vector<10x64xf32>
    %194 = arith.mulf %193, %192 : vector<10x64xf32>
    %cst_89 = arith.constant 0.707106769 : f32
    %195 = vector.broadcast %cst_89 : f32 to vector<10x64xf32>
    %196 = arith.mulf %192, %195 : vector<10x64xf32>
    %cst_90 = arith.constant 0.000000e+00 : f32
    %197 = vector.broadcast %cst_90 : f32 to vector<10x64xf32>
    %198 = arith.cmpf oge, %196, %197 : vector<10x64xf32>
    %cst_91 = arith.constant 1.000000e+00 : f32
    %cst_92 = arith.constant -1.000000e+00 : f32
    %199 = vector.broadcast %cst_91 : f32 to vector<10x64xf32>
    %200 = vector.broadcast %cst_92 : f32 to vector<10x64xf32>
    %201 = arith.select %198, %199, %200 : vector<10x64xi1>, vector<10x64xf32>
    %202 = math.absf %196 : vector<10x64xf32>
    %cst_93 = arith.constant 0.327591091 : f32
    %203 = vector.broadcast %cst_93 : f32 to vector<10x64xf32>
    %204 = arith.mulf %203, %202 : vector<10x64xf32>
    %cst_94 = arith.constant 1.000000e+00 : f32
    %205 = vector.broadcast %cst_94 : f32 to vector<10x64xf32>
    %206 = arith.addf %205, %204 : vector<10x64xf32>
    %cst_95 = arith.constant 1.000000e+00 : f32
    %207 = vector.broadcast %cst_95 : f32 to vector<10x64xf32>
    %208 = arith.divf %207, %206 : vector<10x64xf32>
    %cst_96 = arith.constant 1.06140542 : f32
    %209 = vector.broadcast %cst_96 : f32 to vector<10x64xf32>
    %210 = arith.mulf %209, %208 : vector<10x64xf32>
    %cst_97 = arith.constant -1.45315206 : f32
    %211 = vector.broadcast %cst_97 : f32 to vector<10x64xf32>
    %212 = arith.addf %210, %211 : vector<10x64xf32>
    %213 = arith.mulf %212, %208 : vector<10x64xf32>
    %cst_98 = arith.constant 1.42141378 : f32
    %214 = vector.broadcast %cst_98 : f32 to vector<10x64xf32>
    %215 = arith.addf %213, %214 : vector<10x64xf32>
    %216 = arith.mulf %215, %208 : vector<10x64xf32>
    %cst_99 = arith.constant -0.284496725 : f32
    %217 = vector.broadcast %cst_99 : f32 to vector<10x64xf32>
    %218 = arith.addf %216, %217 : vector<10x64xf32>
    %219 = arith.mulf %218, %208 : vector<10x64xf32>
    %cst_100 = arith.constant 0.254829586 : f32
    %220 = vector.broadcast %cst_100 : f32 to vector<10x64xf32>
    %221 = arith.addf %219, %220 : vector<10x64xf32>
    %222 = arith.mulf %221, %208 : vector<10x64xf32>
    %cst_101 = arith.constant 0.000000e+00 : f32
    %223 = vector.broadcast %cst_101 : f32 to vector<10x64xf32>
    %224 = arith.subf %223, %202 : vector<10x64xf32>
    %225 = arith.mulf %224, %202 : vector<10x64xf32>
    %226 = math.exp %225 : vector<10x64xf32>
    %227 = arith.mulf %222, %226 : vector<10x64xf32>
    %cst_102 = arith.constant 1.000000e+00 : f32
    %228 = vector.broadcast %cst_102 : f32 to vector<10x64xf32>
    %229 = arith.subf %228, %227 : vector<10x64xf32>
    %230 = arith.mulf %201, %229 : vector<10x64xf32>
    %cst_103 = arith.constant 1.000000e+00 : f32
    %231 = vector.broadcast %cst_103 : f32 to vector<10x64xf32>
    %232 = arith.addf %231, %230 : vector<10x64xf32>
    %233 = arith.mulf %194, %232 : vector<10x64xf32>
    %c376 = arith.constant 376 : index
    %c0_104 = arith.constant 0 : index
    %234 = vector.load %arg2[%c376, %c0_104] : memref<1528x128xf32, #tpu.memory_space<vmem>>, vector<64x32xf32>
    %cst_105 = arith.constant dense<0.000000e+00> : vector<10x32xf32>
    %235 = tpu.matmul %233, %234, %cst_105 {dimension_numbers = #tpu.dot_dimension_numbers<[1], [0], [0], [1], [0, 0, 1, 1], [], []>} : vector<10x64xf32>, vector<64x32xf32>, vector<10x32xf32> -> vector<10x32xf32>
    %c440 = arith.constant 440 : index
    %c0_106 = arith.constant 0 : index
    %236 = vector.load %arg2[%c440, %c0_106] : memref<1528x128xf32, #tpu.memory_space<vmem>>, vector<1x32xf32>
    %237 = vector.broadcast %236 : vector<1x32xf32> to vector<10x32xf32>
    %238 = arith.addf %235, %237 : vector<10x32xf32>
    %cst_107 = arith.constant 5.000000e-01 : f32
    %239 = vector.broadcast %cst_107 : f32 to vector<10x32xf32>
    %240 = arith.mulf %239, %238 : vector<10x32xf32>
    %cst_108 = arith.constant 0.707106769 : f32
    %241 = vector.broadcast %cst_108 : f32 to vector<10x32xf32>
    %242 = arith.mulf %238, %241 : vector<10x32xf32>
    %cst_109 = arith.constant 0.000000e+00 : f32
    %243 = vector.broadcast %cst_109 : f32 to vector<10x32xf32>
    %244 = arith.cmpf oge, %242, %243 : vector<10x32xf32>
    %cst_110 = arith.constant 1.000000e+00 : f32
    %cst_111 = arith.constant -1.000000e+00 : f32
    %245 = vector.broadcast %cst_110 : f32 to vector<10x32xf32>
    %246 = vector.broadcast %cst_111 : f32 to vector<10x32xf32>
    %247 = arith.select %244, %245, %246 : vector<10x32xi1>, vector<10x32xf32>
    %248 = math.absf %242 : vector<10x32xf32>
    %cst_112 = arith.constant 0.327591091 : f32
    %249 = vector.broadcast %cst_112 : f32 to vector<10x32xf32>
    %250 = arith.mulf %249, %248 : vector<10x32xf32>
    %cst_113 = arith.constant 1.000000e+00 : f32
    %251 = vector.broadcast %cst_113 : f32 to vector<10x32xf32>
    %252 = arith.addf %251, %250 : vector<10x32xf32>
    %cst_114 = arith.constant 1.000000e+00 : f32
    %253 = vector.broadcast %cst_114 : f32 to vector<10x32xf32>
    %254 = arith.divf %253, %252 : vector<10x32xf32>
    %cst_115 = arith.constant 1.06140542 : f32
    %255 = vector.broadcast %cst_115 : f32 to vector<10x32xf32>
    %256 = arith.mulf %255, %254 : vector<10x32xf32>
    %cst_116 = arith.constant -1.45315206 : f32
    %257 = vector.broadcast %cst_116 : f32 to vector<10x32xf32>
    %258 = arith.addf %256, %257 : vector<10x32xf32>
    %259 = arith.mulf %258, %254 : vector<10x32xf32>
    %cst_117 = arith.constant 1.42141378 : f32
    %260 = vector.broadcast %cst_117 : f32 to vector<10x32xf32>
    %261 = arith.addf %259, %260 : vector<10x32xf32>
    %262 = arith.mulf %261, %254 : vector<10x32xf32>
    %cst_118 = arith.constant -0.284496725 : f32
    %263 = vector.broadcast %cst_118 : f32 to vector<10x32xf32>
    %264 = arith.addf %262, %263 : vector<10x32xf32>
    %265 = arith.mulf %264, %254 : vector<10x32xf32>
    %cst_119 = arith.constant 0.254829586 : f32
    %266 = vector.broadcast %cst_119 : f32 to vector<10x32xf32>
    %267 = arith.addf %265, %266 : vector<10x32xf32>
    %268 = arith.mulf %267, %254 : vector<10x32xf32>
    %cst_120 = arith.constant 0.000000e+00 : f32
    %269 = vector.broadcast %cst_120 : f32 to vector<10x32xf32>
    %270 = arith.subf %269, %248 : vector<10x32xf32>
    %271 = arith.mulf %270, %248 : vector<10x32xf32>
    %272 = math.exp %271 : vector<10x32xf32>
    %273 = arith.mulf %268, %272 : vector<10x32xf32>
    %cst_121 = arith.constant 1.000000e+00 : f32
    %274 = vector.broadcast %cst_121 : f32 to vector<10x32xf32>
    %275 = arith.subf %274, %273 : vector<10x32xf32>
    %276 = arith.mulf %247, %275 : vector<10x32xf32>
    %cst_122 = arith.constant 1.000000e+00 : f32
    %277 = vector.broadcast %cst_122 : f32 to vector<10x32xf32>
    %278 = arith.addf %277, %276 : vector<10x32xf32>
    %279 = arith.mulf %240, %278 : vector<10x32xf32>
    %280 = arith.addf %171, %279 : vector<10x32xf32>
    %cst_123 = arith.constant dense<0.000000e+00> : vector<10xf32>
    %281 = vector.multi_reduction <add>, %280, %cst_123 [1] : vector<10x32xf32> to vector<10xf32>
    %282 = vector.shape_cast %281 : vector<10xf32> to vector<10x1xf32>
    %cst_124 = arith.constant 3.200000e+01 : f32
    %283 = vector.broadcast %cst_124 : f32 to vector<10x1xf32>
    %284 = arith.divf %282, %283 : vector<10x1xf32>
    %285 = vector.broadcast %284 : vector<10x1xf32> to vector<10x32xf32>
    %286 = arith.subf %280, %285 : vector<10x32xf32>
    %287 = arith.mulf %286, %286 : vector<10x32xf32>
    %cst_125 = arith.constant dense<0.000000e+00> : vector<10xf32>
    %288 = vector.multi_reduction <add>, %287, %cst_125 [1] : vector<10x32xf32> to vector<10xf32>
    %289 = vector.shape_cast %288 : vector<10xf32> to vector<10x1xf32>
    %cst_126 = arith.constant 3.200000e+01 : f32
    %290 = vector.broadcast %cst_126 : f32 to vector<10x1xf32>
    %291 = arith.divf %289, %290 : vector<10x1xf32>
    %cst_127 = arith.constant 9.99999974E-6 : f32
    %292 = vector.broadcast %cst_127 : f32 to vector<10x1xf32>
    %293 = arith.addf %291, %292 : vector<10x1xf32>
    %294 = math.rsqrt %293 : vector<10x1xf32>
    %295 = vector.broadcast %294 : vector<10x1xf32> to vector<10x32xf32>
    %296 = arith.mulf %286, %295 : vector<10x32xf32>
    %c928 = arith.constant 928 : index
    %c0_128 = arith.constant 0 : index
    %297 = vector.load %arg2[%c928, %c0_128] : memref<1528x128xf32, #tpu.memory_space<vmem>>, vector<1x32xf32>
    %298 = vector.shape_cast %297 : vector<1x32xf32> to vector<1x32xf32>
    %299 = vector.broadcast %298 : vector<1x32xf32> to vector<10x32xf32>
    %c1048 = arith.constant 1048 : index
    %c0_129 = arith.constant 0 : index
    %300 = vector.load %arg2[%c1048, %c0_129] : memref<1528x128xf32, #tpu.memory_space<vmem>>, vector<32x8xf32>
    %cst_130 = arith.constant dense<0.000000e+00> : vector<10x8xf32>
    %301 = tpu.matmul %296, %300, %cst_130 {dimension_numbers = #tpu.dot_dimension_numbers<[1], [0], [0], [1], [0, 0, 1, 1], [], []>} : vector<10x32xf32>, vector<32x8xf32>, vector<10x8xf32> -> vector<10x8xf32>
    %c1080 = arith.constant 1080 : index
    %c0_131 = arith.constant 0 : index
    %302 = vector.load %arg2[%c1080, %c0_131] : memref<1528x128xf32, #tpu.memory_space<vmem>>, vector<1x8xf32>
    %303 = vector.broadcast %302 : vector<1x8xf32> to vector<10x8xf32>
    %304 = arith.addf %301, %303 : vector<10x8xf32>
    %c1088 = arith.constant 1088 : index
    %c0_132 = arith.constant 0 : index
    %305 = vector.load %arg2[%c1088, %c0_132] : memref<1528x128xf32, #tpu.memory_space<vmem>>, vector<32x8xf32>
    %cst_133 = arith.constant dense<0.000000e+00> : vector<10x8xf32>
    %306 = tpu.matmul %296, %305, %cst_133 {dimension_numbers = #tpu.dot_dimension_numbers<[1], [0], [0], [1], [0, 0, 1, 1], [], []>} : vector<10x32xf32>, vector<32x8xf32>, vector<10x8xf32> -> vector<10x8xf32>
    %c1120 = arith.constant 1120 : index
    %c0_134 = arith.constant 0 : index
    %307 = vector.load %arg2[%c1120, %c0_134] : memref<1528x128xf32, #tpu.memory_space<vmem>>, vector<32x8xf32>
    %cst_135 = arith.constant dense<0.000000e+00> : vector<10x8xf32>
    %308 = tpu.matmul %296, %307, %cst_135 {dimension_numbers = #tpu.dot_dimension_numbers<[1], [0], [0], [1], [0, 0, 1, 1], [], []>} : vector<10x32xf32>, vector<32x8xf32>, vector<10x8xf32> -> vector<10x8xf32>
    %c1152 = arith.constant 1152 : index
    %c0_136 = arith.constant 0 : index
    %309 = vector.load %arg2[%c1152, %c0_136] : memref<1528x128xf32, #tpu.memory_space<vmem>>, vector<1x8xf32>
    %310 = vector.broadcast %309 : vector<1x8xf32> to vector<10x8xf32>
    %311 = arith.addf %308, %310 : vector<10x8xf32>
    %cst_137 = arith.constant dense<0.000000e+00> : vector<10x10xf32>
    %312 = tpu.matmul %304, %306, %cst_137 {dimension_numbers = #tpu.dot_dimension_numbers<[1], [1], [0], [0], [0, 0, 1, 0], [], []>} : vector<10x8xf32>, vector<10x8xf32>, vector<10x10xf32> -> vector<10x10xf32>
    %313 = arith.addf %312, %39 : vector<10x10xf32>
    %cst_138 = arith.constant dense<0xFF800000> : vector<10xf32>
    %314 = vector.multi_reduction <maximumf>, %313, %cst_138 [1] : vector<10x10xf32> to vector<10xf32>
    %315 = vector.shape_cast %314 : vector<10xf32> to vector<10x1xf32>
    %316 = vector.broadcast %315 : vector<10x1xf32> to vector<10x10xf32>
    %317 = arith.subf %313, %316 : vector<10x10xf32>
    %318 = math.exp %317 : vector<10x10xf32>
    %cst_139 = arith.constant dense<0.000000e+00> : vector<10xf32>
    %319 = vector.multi_reduction <add>, %318, %cst_139 [1] : vector<10x10xf32> to vector<10xf32>
    %320 = vector.shape_cast %319 : vector<10xf32> to vector<10x1xf32>
    %321 = tpu.reciprocal %320 {approx = true} : vector<10x1xf32> -> vector<10x1xf32>
    %322 = vector.broadcast %321 : vector<10x1xf32> to vector<10x10xf32>
    %323 = arith.mulf %318, %322 : vector<10x10xf32>
    %cst_140 = arith.constant dense<0.000000e+00> : vector<10x8xf32>
    %324 = tpu.matmul %323, %311, %cst_140 {dimension_numbers = #tpu.dot_dimension_numbers<[1], [0], [0], [1], [0, 0, 1, 1], [], []>} : vector<10x10xf32>, vector<10x8xf32>, vector<10x8xf32> -> vector<10x8xf32>
    %c1160 = arith.constant 1160 : index
    %c0_141 = arith.constant 0 : index
    %325 = vector.load %arg2[%c1160, %c0_141] : memref<1528x128xf32, #tpu.memory_space<vmem>>, vector<8x32xf32>
    %cst_142 = arith.constant dense<0.000000e+00> : vector<10x32xf32>
    %326 = tpu.matmul %324, %325, %cst_142 {dimension_numbers = #tpu.dot_dimension_numbers<[1], [0], [0], [1], [0, 0, 1, 1], [], []>} : vector<10x8xf32>, vector<8x32xf32>, vector<10x32xf32> -> vector<10x32xf32>
    %327 = arith.addf %299, %326 : vector<10x32xf32>
    %c1168 = arith.constant 1168 : index
    %c0_143 = arith.constant 0 : index
    %328 = vector.load %arg2[%c1168, %c0_143] : memref<1528x128xf32, #tpu.memory_space<vmem>>, vector<32x8xf32>
    %cst_144 = arith.constant dense<0.000000e+00> : vector<10x8xf32>
    %329 = tpu.matmul %296, %328, %cst_144 {dimension_numbers = #tpu.dot_dimension_numbers<[1], [0], [0], [1], [0, 0, 1, 1], [], []>} : vector<10x32xf32>, vector<32x8xf32>, vector<10x8xf32> -> vector<10x8xf32>
    %c1200 = arith.constant 1200 : index
    %c0_145 = arith.constant 0 : index
    %330 = vector.load %arg2[%c1200, %c0_145] : memref<1528x128xf32, #tpu.memory_space<vmem>>, vector<1x8xf32>
    %331 = vector.broadcast %330 : vector<1x8xf32> to vector<10x8xf32>
    %332 = arith.addf %329, %331 : vector<10x8xf32>
    %c1208 = arith.constant 1208 : index
    %c0_146 = arith.constant 0 : index
    %333 = vector.load %arg2[%c1208, %c0_146] : memref<1528x128xf32, #tpu.memory_space<vmem>>, vector<32x8xf32>
    %cst_147 = arith.constant dense<0.000000e+00> : vector<10x8xf32>
    %334 = tpu.matmul %296, %333, %cst_147 {dimension_numbers = #tpu.dot_dimension_numbers<[1], [0], [0], [1], [0, 0, 1, 1], [], []>} : vector<10x32xf32>, vector<32x8xf32>, vector<10x8xf32> -> vector<10x8xf32>
    %c1240 = arith.constant 1240 : index
    %c0_148 = arith.constant 0 : index
    %335 = vector.load %arg2[%c1240, %c0_148] : memref<1528x128xf32, #tpu.memory_space<vmem>>, vector<32x8xf32>
    %cst_149 = arith.constant dense<0.000000e+00> : vector<10x8xf32>
    %336 = tpu.matmul %296, %335, %cst_149 {dimension_numbers = #tpu.dot_dimension_numbers<[1], [0], [0], [1], [0, 0, 1, 1], [], []>} : vector<10x32xf32>, vector<32x8xf32>, vector<10x8xf32> -> vector<10x8xf32>
    %c1272 = arith.constant 1272 : index
    %c0_150 = arith.constant 0 : index
    %337 = vector.load %arg2[%c1272, %c0_150] : memref<1528x128xf32, #tpu.memory_space<vmem>>, vector<1x8xf32>
    %338 = vector.broadcast %337 : vector<1x8xf32> to vector<10x8xf32>
    %339 = arith.addf %336, %338 : vector<10x8xf32>
    %cst_151 = arith.constant dense<0.000000e+00> : vector<10x10xf32>
    %340 = tpu.matmul %332, %334, %cst_151 {dimension_numbers = #tpu.dot_dimension_numbers<[1], [1], [0], [0], [0, 0, 1, 0], [], []>} : vector<10x8xf32>, vector<10x8xf32>, vector<10x10xf32> -> vector<10x10xf32>
    %341 = arith.addf %340, %39 : vector<10x10xf32>
    %cst_152 = arith.constant dense<0xFF800000> : vector<10xf32>
    %342 = vector.multi_reduction <maximumf>, %341, %cst_152 [1] : vector<10x10xf32> to vector<10xf32>
    %343 = vector.shape_cast %342 : vector<10xf32> to vector<10x1xf32>
    %344 = vector.broadcast %343 : vector<10x1xf32> to vector<10x10xf32>
    %345 = arith.subf %341, %344 : vector<10x10xf32>
    %346 = math.exp %345 : vector<10x10xf32>
    %cst_153 = arith.constant dense<0.000000e+00> : vector<10xf32>
    %347 = vector.multi_reduction <add>, %346, %cst_153 [1] : vector<10x10xf32> to vector<10xf32>
    %348 = vector.shape_cast %347 : vector<10xf32> to vector<10x1xf32>
    %349 = tpu.reciprocal %348 {approx = true} : vector<10x1xf32> -> vector<10x1xf32>
    %350 = vector.broadcast %349 : vector<10x1xf32> to vector<10x10xf32>
    %351 = arith.mulf %346, %350 : vector<10x10xf32>
    %cst_154 = arith.constant dense<0.000000e+00> : vector<10x8xf32>
    %352 = tpu.matmul %351, %339, %cst_154 {dimension_numbers = #tpu.dot_dimension_numbers<[1], [0], [0], [1], [0, 0, 1, 1], [], []>} : vector<10x10xf32>, vector<10x8xf32>, vector<10x8xf32> -> vector<10x8xf32>
    %c1280 = arith.constant 1280 : index
    %c0_155 = arith.constant 0 : index
    %353 = vector.load %arg2[%c1280, %c0_155] : memref<1528x128xf32, #tpu.memory_space<vmem>>, vector<8x32xf32>
    %cst_156 = arith.constant dense<0.000000e+00> : vector<10x32xf32>
    %354 = tpu.matmul %352, %353, %cst_156 {dimension_numbers = #tpu.dot_dimension_numbers<[1], [0], [0], [1], [0, 0, 1, 1], [], []>} : vector<10x8xf32>, vector<8x32xf32>, vector<10x32xf32> -> vector<10x32xf32>
    %355 = arith.addf %327, %354 : vector<10x32xf32>
    %c1288 = arith.constant 1288 : index
    %c0_157 = arith.constant 0 : index
    %356 = vector.load %arg2[%c1288, %c0_157] : memref<1528x128xf32, #tpu.memory_space<vmem>>, vector<32x8xf32>
    %cst_158 = arith.constant dense<0.000000e+00> : vector<10x8xf32>
    %357 = tpu.matmul %296, %356, %cst_158 {dimension_numbers = #tpu.dot_dimension_numbers<[1], [0], [0], [1], [0, 0, 1, 1], [], []>} : vector<10x32xf32>, vector<32x8xf32>, vector<10x8xf32> -> vector<10x8xf32>
    %c1320 = arith.constant 1320 : index
    %c0_159 = arith.constant 0 : index
    %358 = vector.load %arg2[%c1320, %c0_159] : memref<1528x128xf32, #tpu.memory_space<vmem>>, vector<1x8xf32>
    %359 = vector.broadcast %358 : vector<1x8xf32> to vector<10x8xf32>
    %360 = arith.addf %357, %359 : vector<10x8xf32>
    %c1328 = arith.constant 1328 : index
    %c0_160 = arith.constant 0 : index
    %361 = vector.load %arg2[%c1328, %c0_160] : memref<1528x128xf32, #tpu.memory_space<vmem>>, vector<32x8xf32>
    %cst_161 = arith.constant dense<0.000000e+00> : vector<10x8xf32>
    %362 = tpu.matmul %296, %361, %cst_161 {dimension_numbers = #tpu.dot_dimension_numbers<[1], [0], [0], [1], [0, 0, 1, 1], [], []>} : vector<10x32xf32>, vector<32x8xf32>, vector<10x8xf32> -> vector<10x8xf32>
    %c1360 = arith.constant 1360 : index
    %c0_162 = arith.constant 0 : index
    %363 = vector.load %arg2[%c1360, %c0_162] : memref<1528x128xf32, #tpu.memory_space<vmem>>, vector<32x8xf32>
    %cst_163 = arith.constant dense<0.000000e+00> : vector<10x8xf32>
    %364 = tpu.matmul %296, %363, %cst_163 {dimension_numbers = #tpu.dot_dimension_numbers<[1], [0], [0], [1], [0, 0, 1, 1], [], []>} : vector<10x32xf32>, vector<32x8xf32>, vector<10x8xf32> -> vector<10x8xf32>
    %c1392 = arith.constant 1392 : index
    %c0_164 = arith.constant 0 : index
    %365 = vector.load %arg2[%c1392, %c0_164] : memref<1528x128xf32, #tpu.memory_space<vmem>>, vector<1x8xf32>
    %366 = vector.broadcast %365 : vector<1x8xf32> to vector<10x8xf32>
    %367 = arith.addf %364, %366 : vector<10x8xf32>
    %cst_165 = arith.constant dense<0.000000e+00> : vector<10x10xf32>
    %368 = tpu.matmul %360, %362, %cst_165 {dimension_numbers = #tpu.dot_dimension_numbers<[1], [1], [0], [0], [0, 0, 1, 0], [], []>} : vector<10x8xf32>, vector<10x8xf32>, vector<10x10xf32> -> vector<10x10xf32>
    %369 = arith.addf %368, %39 : vector<10x10xf32>
    %cst_166 = arith.constant dense<0xFF800000> : vector<10xf32>
    %370 = vector.multi_reduction <maximumf>, %369, %cst_166 [1] : vector<10x10xf32> to vector<10xf32>
    %371 = vector.shape_cast %370 : vector<10xf32> to vector<10x1xf32>
    %372 = vector.broadcast %371 : vector<10x1xf32> to vector<10x10xf32>
    %373 = arith.subf %369, %372 : vector<10x10xf32>
    %374 = math.exp %373 : vector<10x10xf32>
    %cst_167 = arith.constant dense<0.000000e+00> : vector<10xf32>
    %375 = vector.multi_reduction <add>, %374, %cst_167 [1] : vector<10x10xf32> to vector<10xf32>
    %376 = vector.shape_cast %375 : vector<10xf32> to vector<10x1xf32>
    %377 = tpu.reciprocal %376 {approx = true} : vector<10x1xf32> -> vector<10x1xf32>
    %378 = vector.broadcast %377 : vector<10x1xf32> to vector<10x10xf32>
    %379 = arith.mulf %374, %378 : vector<10x10xf32>
    %cst_168 = arith.constant dense<0.000000e+00> : vector<10x8xf32>
    %380 = tpu.matmul %379, %367, %cst_168 {dimension_numbers = #tpu.dot_dimension_numbers<[1], [0], [0], [1], [0, 0, 1, 1], [], []>} : vector<10x10xf32>, vector<10x8xf32>, vector<10x8xf32> -> vector<10x8xf32>
    %c1400 = arith.constant 1400 : index
    %c0_169 = arith.constant 0 : index
    %381 = vector.load %arg2[%c1400, %c0_169] : memref<1528x128xf32, #tpu.memory_space<vmem>>, vector<8x32xf32>
    %cst_170 = arith.constant dense<0.000000e+00> : vector<10x32xf32>
    %382 = tpu.matmul %380, %381, %cst_170 {dimension_numbers = #tpu.dot_dimension_numbers<[1], [0], [0], [1], [0, 0, 1, 1], [], []>} : vector<10x8xf32>, vector<8x32xf32>, vector<10x32xf32> -> vector<10x32xf32>
    %383 = arith.addf %355, %382 : vector<10x32xf32>
    %c1408 = arith.constant 1408 : index
    %c0_171 = arith.constant 0 : index
    %384 = vector.load %arg2[%c1408, %c0_171] : memref<1528x128xf32, #tpu.memory_space<vmem>>, vector<32x8xf32>
    %cst_172 = arith.constant dense<0.000000e+00> : vector<10x8xf32>
    %385 = tpu.matmul %296, %384, %cst_172 {dimension_numbers = #tpu.dot_dimension_numbers<[1], [0], [0], [1], [0, 0, 1, 1], [], []>} : vector<10x32xf32>, vector<32x8xf32>, vector<10x8xf32> -> vector<10x8xf32>
    %c1440 = arith.constant 1440 : index
    %c0_173 = arith.constant 0 : index
    %386 = vector.load %arg2[%c1440, %c0_173] : memref<1528x128xf32, #tpu.memory_space<vmem>>, vector<1x8xf32>
    %387 = vector.broadcast %386 : vector<1x8xf32> to vector<10x8xf32>
    %388 = arith.addf %385, %387 : vector<10x8xf32>
    %c1448 = arith.constant 1448 : index
    %c0_174 = arith.constant 0 : index
    %389 = vector.load %arg2[%c1448, %c0_174] : memref<1528x128xf32, #tpu.memory_space<vmem>>, vector<32x8xf32>
    %cst_175 = arith.constant dense<0.000000e+00> : vector<10x8xf32>
    %390 = tpu.matmul %296, %389, %cst_175 {dimension_numbers = #tpu.dot_dimension_numbers<[1], [0], [0], [1], [0, 0, 1, 1], [], []>} : vector<10x32xf32>, vector<32x8xf32>, vector<10x8xf32> -> vector<10x8xf32>
    %c1480 = arith.constant 1480 : index
    %c0_176 = arith.constant 0 : index
    %391 = vector.load %arg2[%c1480, %c0_176] : memref<1528x128xf32, #tpu.memory_space<vmem>>, vector<32x8xf32>
    %cst_177 = arith.constant dense<0.000000e+00> : vector<10x8xf32>
    %392 = tpu.matmul %296, %391, %cst_177 {dimension_numbers = #tpu.dot_dimension_numbers<[1], [0], [0], [1], [0, 0, 1, 1], [], []>} : vector<10x32xf32>, vector<32x8xf32>, vector<10x8xf32> -> vector<10x8xf32>
    %c1512 = arith.constant 1512 : index
    %c0_178 = arith.constant 0 : index
    %393 = vector.load %arg2[%c1512, %c0_178] : memref<1528x128xf32, #tpu.memory_space<vmem>>, vector<1x8xf32>
    %394 = vector.broadcast %393 : vector<1x8xf32> to vector<10x8xf32>
    %395 = arith.addf %392, %394 : vector<10x8xf32>
    %cst_179 = arith.constant dense<0.000000e+00> : vector<10x10xf32>
    %396 = tpu.matmul %388, %390, %cst_179 {dimension_numbers = #tpu.dot_dimension_numbers<[1], [1], [0], [0], [0, 0, 1, 0], [], []>} : vector<10x8xf32>, vector<10x8xf32>, vector<10x10xf32> -> vector<10x10xf32>
    %397 = arith.addf %396, %39 : vector<10x10xf32>
    %cst_180 = arith.constant dense<0xFF800000> : vector<10xf32>
    %398 = vector.multi_reduction <maximumf>, %397, %cst_180 [1] : vector<10x10xf32> to vector<10xf32>
    %399 = vector.shape_cast %398 : vector<10xf32> to vector<10x1xf32>
    %400 = vector.broadcast %399 : vector<10x1xf32> to vector<10x10xf32>
    %401 = arith.subf %397, %400 : vector<10x10xf32>
    %402 = math.exp %401 : vector<10x10xf32>
    %cst_181 = arith.constant dense<0.000000e+00> : vector<10xf32>
    %403 = vector.multi_reduction <add>, %402, %cst_181 [1] : vector<10x10xf32> to vector<10xf32>
    %404 = vector.shape_cast %403 : vector<10xf32> to vector<10x1xf32>
    %405 = tpu.reciprocal %404 {approx = true} : vector<10x1xf32> -> vector<10x1xf32>
    %406 = vector.broadcast %405 : vector<10x1xf32> to vector<10x10xf32>
    %407 = arith.mulf %402, %406 : vector<10x10xf32>
    %cst_182 = arith.constant dense<0.000000e+00> : vector<10x8xf32>
    %408 = tpu.matmul %407, %395, %cst_182 {dimension_numbers = #tpu.dot_dimension_numbers<[1], [0], [0], [1], [0, 0, 1, 1], [], []>} : vector<10x10xf32>, vector<10x8xf32>, vector<10x8xf32> -> vector<10x8xf32>
    %c1520 = arith.constant 1520 : index
    %c0_183 = arith.constant 0 : index
    %409 = vector.load %arg2[%c1520, %c0_183] : memref<1528x128xf32, #tpu.memory_space<vmem>>, vector<8x32xf32>
    %cst_184 = arith.constant dense<0.000000e+00> : vector<10x32xf32>
    %410 = tpu.matmul %408, %409, %cst_184 {dimension_numbers = #tpu.dot_dimension_numbers<[1], [0], [0], [1], [0, 0, 1, 1], [], []>} : vector<10x8xf32>, vector<8x32xf32>, vector<10x32xf32> -> vector<10x32xf32>
    %411 = arith.addf %383, %410 : vector<10x32xf32>
    %412 = arith.addf %280, %411 : vector<10x32xf32>
    %cst_185 = arith.constant dense<0.000000e+00> : vector<10xf32>
    %413 = vector.multi_reduction <add>, %412, %cst_185 [1] : vector<10x32xf32> to vector<10xf32>
    %414 = vector.shape_cast %413 : vector<10xf32> to vector<10x1xf32>
    %cst_186 = arith.constant 3.200000e+01 : f32
    %415 = vector.broadcast %cst_186 : f32 to vector<10x1xf32>
    %416 = arith.divf %414, %415 : vector<10x1xf32>
    %417 = vector.broadcast %416 : vector<10x1xf32> to vector<10x32xf32>
    %418 = arith.subf %412, %417 : vector<10x32xf32>
    %419 = arith.mulf %418, %418 : vector<10x32xf32>
    %cst_187 = arith.constant dense<0.000000e+00> : vector<10xf32>
    %420 = vector.multi_reduction <add>, %419, %cst_187 [1] : vector<10x32xf32> to vector<10xf32>
    %421 = vector.shape_cast %420 : vector<10xf32> to vector<10x1xf32>
    %cst_188 = arith.constant 3.200000e+01 : f32
    %422 = vector.broadcast %cst_188 : f32 to vector<10x1xf32>
    %423 = arith.divf %421, %422 : vector<10x1xf32>
    %cst_189 = arith.constant 9.99999974E-6 : f32
    %424 = vector.broadcast %cst_189 : f32 to vector<10x1xf32>
    %425 = arith.addf %423, %424 : vector<10x1xf32>
    %426 = math.rsqrt %425 : vector<10x1xf32>
    %427 = vector.broadcast %426 : vector<10x1xf32> to vector<10x32xf32>
    %428 = arith.mulf %418, %427 : vector<10x32xf32>
    %c936 = arith.constant 936 : index
    %c0_190 = arith.constant 0 : index
    %429 = vector.load %arg2[%c936, %c0_190] : memref<1528x128xf32, #tpu.memory_space<vmem>>, vector<32x64xf32>
    %cst_191 = arith.constant dense<0.000000e+00> : vector<10x64xf32>
    %430 = tpu.matmul %428, %429, %cst_191 {dimension_numbers = #tpu.dot_dimension_numbers<[1], [0], [0], [1], [0, 0, 1, 1], [], []>} : vector<10x32xf32>, vector<32x64xf32>, vector<10x64xf32> -> vector<10x64xf32>
    %c968 = arith.constant 968 : index
    %c0_192 = arith.constant 0 : index
    %431 = vector.load %arg2[%c968, %c0_192] : memref<1528x128xf32, #tpu.memory_space<vmem>>, vector<1x64xf32>
    %432 = vector.broadcast %431 : vector<1x64xf32> to vector<10x64xf32>
    %433 = arith.addf %430, %432 : vector<10x64xf32>
    %cst_193 = arith.constant 5.000000e-01 : f32
    %434 = vector.broadcast %cst_193 : f32 to vector<10x64xf32>
    %435 = arith.mulf %434, %433 : vector<10x64xf32>
    %cst_194 = arith.constant 0.707106769 : f32
    %436 = vector.broadcast %cst_194 : f32 to vector<10x64xf32>
    %437 = arith.mulf %433, %436 : vector<10x64xf32>
    %cst_195 = arith.constant 0.000000e+00 : f32
    %438 = vector.broadcast %cst_195 : f32 to vector<10x64xf32>
    %439 = arith.cmpf oge, %437, %438 : vector<10x64xf32>
    %cst_196 = arith.constant 1.000000e+00 : f32
    %cst_197 = arith.constant -1.000000e+00 : f32
    %440 = vector.broadcast %cst_196 : f32 to vector<10x64xf32>
    %441 = vector.broadcast %cst_197 : f32 to vector<10x64xf32>
    %442 = arith.select %439, %440, %441 : vector<10x64xi1>, vector<10x64xf32>
    %443 = math.absf %437 : vector<10x64xf32>
    %cst_198 = arith.constant 0.327591091 : f32
    %444 = vector.broadcast %cst_198 : f32 to vector<10x64xf32>
    %445 = arith.mulf %444, %443 : vector<10x64xf32>
    %cst_199 = arith.constant 1.000000e+00 : f32
    %446 = vector.broadcast %cst_199 : f32 to vector<10x64xf32>
    %447 = arith.addf %446, %445 : vector<10x64xf32>
    %cst_200 = arith.constant 1.000000e+00 : f32
    %448 = vector.broadcast %cst_200 : f32 to vector<10x64xf32>
    %449 = arith.divf %448, %447 : vector<10x64xf32>
    %cst_201 = arith.constant 1.06140542 : f32
    %450 = vector.broadcast %cst_201 : f32 to vector<10x64xf32>
    %451 = arith.mulf %450, %449 : vector<10x64xf32>
    %cst_202 = arith.constant -1.45315206 : f32
    %452 = vector.broadcast %cst_202 : f32 to vector<10x64xf32>
    %453 = arith.addf %451, %452 : vector<10x64xf32>
    %454 = arith.mulf %453, %449 : vector<10x64xf32>
    %cst_203 = arith.constant 1.42141378 : f32
    %455 = vector.broadcast %cst_203 : f32 to vector<10x64xf32>
    %456 = arith.addf %454, %455 : vector<10x64xf32>
    %457 = arith.mulf %456, %449 : vector<10x64xf32>
    %cst_204 = arith.constant -0.284496725 : f32
    %458 = vector.broadcast %cst_204 : f32 to vector<10x64xf32>
    %459 = arith.addf %457, %458 : vector<10x64xf32>
    %460 = arith.mulf %459, %449 : vector<10x64xf32>
    %cst_205 = arith.constant 0.254829586 : f32
    %461 = vector.broadcast %cst_205 : f32 to vector<10x64xf32>
    %462 = arith.addf %460, %461 : vector<10x64xf32>
    %463 = arith.mulf %462, %449 : vector<10x64xf32>
    %cst_206 = arith.constant 0.000000e+00 : f32
    %464 = vector.broadcast %cst_206 : f32 to vector<10x64xf32>
    %465 = arith.subf %464, %443 : vector<10x64xf32>
    %466 = arith.mulf %465, %443 : vector<10x64xf32>
    %467 = math.exp %466 : vector<10x64xf32>
    %468 = arith.mulf %463, %467 : vector<10x64xf32>
    %cst_207 = arith.constant 1.000000e+00 : f32
    %469 = vector.broadcast %cst_207 : f32 to vector<10x64xf32>
    %470 = arith.subf %469, %468 : vector<10x64xf32>
    %471 = arith.mulf %442, %470 : vector<10x64xf32>
    %cst_208 = arith.constant 1.000000e+00 : f32
    %472 = vector.broadcast %cst_208 : f32 to vector<10x64xf32>
    %473 = arith.addf %472, %471 : vector<10x64xf32>
    %474 = arith.mulf %435, %473 : vector<10x64xf32>
    %c976 = arith.constant 976 : index
    %c0_209 = arith.constant 0 : index
    %475 = vector.load %arg2[%c976, %c0_209] : memref<1528x128xf32, #tpu.memory_space<vmem>>, vector<64x32xf32>
    %cst_210 = arith.constant dense<0.000000e+00> : vector<10x32xf32>
    %476 = tpu.matmul %474, %475, %cst_210 {dimension_numbers = #tpu.dot_dimension_numbers<[1], [0], [0], [1], [0, 0, 1, 1], [], []>} : vector<10x64xf32>, vector<64x32xf32>, vector<10x32xf32> -> vector<10x32xf32>
    %c1040 = arith.constant 1040 : index
    %c0_211 = arith.constant 0 : index
    %477 = vector.load %arg2[%c1040, %c0_211] : memref<1528x128xf32, #tpu.memory_space<vmem>>, vector<1x32xf32>
    %478 = vector.broadcast %477 : vector<1x32xf32> to vector<10x32xf32>
    %479 = arith.addf %476, %478 : vector<10x32xf32>
    %cst_212 = arith.constant 5.000000e-01 : f32
    %480 = vector.broadcast %cst_212 : f32 to vector<10x32xf32>
    %481 = arith.mulf %480, %479 : vector<10x32xf32>
    %cst_213 = arith.constant 0.707106769 : f32
    %482 = vector.broadcast %cst_213 : f32 to vector<10x32xf32>
    %483 = arith.mulf %479, %482 : vector<10x32xf32>
    %cst_214 = arith.constant 0.000000e+00 : f32
    %484 = vector.broadcast %cst_214 : f32 to vector<10x32xf32>
    %485 = arith.cmpf oge, %483, %484 : vector<10x32xf32>
    %cst_215 = arith.constant 1.000000e+00 : f32
    %cst_216 = arith.constant -1.000000e+00 : f32
    %486 = vector.broadcast %cst_215 : f32 to vector<10x32xf32>
    %487 = vector.broadcast %cst_216 : f32 to vector<10x32xf32>
    %488 = arith.select %485, %486, %487 : vector<10x32xi1>, vector<10x32xf32>
    %489 = math.absf %483 : vector<10x32xf32>
    %cst_217 = arith.constant 0.327591091 : f32
    %490 = vector.broadcast %cst_217 : f32 to vector<10x32xf32>
    %491 = arith.mulf %490, %489 : vector<10x32xf32>
    %cst_218 = arith.constant 1.000000e+00 : f32
    %492 = vector.broadcast %cst_218 : f32 to vector<10x32xf32>
    %493 = arith.addf %492, %491 : vector<10x32xf32>
    %cst_219 = arith.constant 1.000000e+00 : f32
    %494 = vector.broadcast %cst_219 : f32 to vector<10x32xf32>
    %495 = arith.divf %494, %493 : vector<10x32xf32>
    %cst_220 = arith.constant 1.06140542 : f32
    %496 = vector.broadcast %cst_220 : f32 to vector<10x32xf32>
    %497 = arith.mulf %496, %495 : vector<10x32xf32>
    %cst_221 = arith.constant -1.45315206 : f32
    %498 = vector.broadcast %cst_221 : f32 to vector<10x32xf32>
    %499 = arith.addf %497, %498 : vector<10x32xf32>
    %500 = arith.mulf %499, %495 : vector<10x32xf32>
    %cst_222 = arith.constant 1.42141378 : f32
    %501 = vector.broadcast %cst_222 : f32 to vector<10x32xf32>
    %502 = arith.addf %500, %501 : vector<10x32xf32>
    %503 = arith.mulf %502, %495 : vector<10x32xf32>
    %cst_223 = arith.constant -0.284496725 : f32
    %504 = vector.broadcast %cst_223 : f32 to vector<10x32xf32>
    %505 = arith.addf %503, %504 : vector<10x32xf32>
    %506 = arith.mulf %505, %495 : vector<10x32xf32>
    %cst_224 = arith.constant 0.254829586 : f32
    %507 = vector.broadcast %cst_224 : f32 to vector<10x32xf32>
    %508 = arith.addf %506, %507 : vector<10x32xf32>
    %509 = arith.mulf %508, %495 : vector<10x32xf32>
    %cst_225 = arith.constant 0.000000e+00 : f32
    %510 = vector.broadcast %cst_225 : f32 to vector<10x32xf32>
    %511 = arith.subf %510, %489 : vector<10x32xf32>
    %512 = arith.mulf %511, %489 : vector<10x32xf32>
    %513 = math.exp %512 : vector<10x32xf32>
    %514 = arith.mulf %509, %513 : vector<10x32xf32>
    %cst_226 = arith.constant 1.000000e+00 : f32
    %515 = vector.broadcast %cst_226 : f32 to vector<10x32xf32>
    %516 = arith.subf %515, %514 : vector<10x32xf32>
    %517 = arith.mulf %488, %516 : vector<10x32xf32>
    %cst_227 = arith.constant 1.000000e+00 : f32
    %518 = vector.broadcast %cst_227 : f32 to vector<10x32xf32>
    %519 = arith.addf %518, %517 : vector<10x32xf32>
    %520 = arith.mulf %481, %519 : vector<10x32xf32>
    %521 = arith.addf %412, %520 : vector<10x32xf32>
    %cst_228 = arith.constant dense<0.000000e+00> : vector<10xf32>
    %522 = vector.multi_reduction <add>, %521, %cst_228 [1] : vector<10x32xf32> to vector<10xf32>
    %523 = vector.shape_cast %522 : vector<10xf32> to vector<10x1xf32>
    %cst_229 = arith.constant 3.200000e+01 : f32
    %524 = vector.broadcast %cst_229 : f32 to vector<10x1xf32>
    %525 = arith.divf %523, %524 : vector<10x1xf32>
    %526 = vector.broadcast %525 : vector<10x1xf32> to vector<10x32xf32>
    %527 = arith.subf %521, %526 : vector<10x32xf32>
    %528 = arith.mulf %527, %527 : vector<10x32xf32>
    %cst_230 = arith.constant dense<0.000000e+00> : vector<10xf32>
    %529 = vector.multi_reduction <add>, %528, %cst_230 [1] : vector<10x32xf32> to vector<10xf32>
    %530 = vector.shape_cast %529 : vector<10xf32> to vector<10x1xf32>
    %cst_231 = arith.constant 3.200000e+01 : f32
    %531 = vector.broadcast %cst_231 : f32 to vector<10x1xf32>
    %532 = arith.divf %530, %531 : vector<10x1xf32>
    %cst_232 = arith.constant 9.99999974E-6 : f32
    %533 = vector.broadcast %cst_232 : f32 to vector<10x1xf32>
    %534 = arith.addf %532, %533 : vector<10x1xf32>
    %535 = math.rsqrt %534 : vector<10x1xf32>
    %536 = vector.broadcast %535 : vector<10x1xf32> to vector<10x32xf32>
    %537 = arith.mulf %527, %536 : vector<10x32xf32>
    %c264 = arith.constant 264 : index
    %c0_233 = arith.constant 0 : index
    %538 = vector.load %arg2[%c264, %c0_233] : memref<1528x128xf32, #tpu.memory_space<vmem>>, vector<32x16xf32>
    %cst_234 = arith.constant dense<0.000000e+00> : vector<10x16xf32>
    %539 = tpu.matmul %537, %538, %cst_234 {dimension_numbers = #tpu.dot_dimension_numbers<[1], [0], [0], [1], [0, 0, 1, 1], [], []>} : vector<10x32xf32>, vector<32x16xf32>, vector<10x16xf32> -> vector<10x16xf32>
    %c296 = arith.constant 296 : index
    %c0_235 = arith.constant 0 : index
    %540 = vector.load %arg2[%c296, %c0_235] : memref<1528x128xf32, #tpu.memory_space<vmem>>, vector<1x16xf32>
    %541 = vector.broadcast %540 : vector<1x16xf32> to vector<10x16xf32>
    %542 = arith.addf %539, %541 : vector<10x16xf32>
    %c304 = arith.constant 304 : index
    %c0_236 = arith.constant 0 : index
    %543 = vector.load %arg2[%c304, %c0_236] : memref<1528x128xf32, #tpu.memory_space<vmem>>, vector<16x128xf32>
    %cst_237 = arith.constant dense<0.000000e+00> : vector<10x128xf32>
    %544 = tpu.matmul %542, %543, %cst_237 {dimension_numbers = #tpu.dot_dimension_numbers<[1], [0], [0], [1], [0, 0, 1, 1], [], []>} : vector<10x16xf32>, vector<16x128xf32>, vector<10x128xf32> -> vector<10x128xf32>
    %c320 = arith.constant 320 : index
    %c0_238 = arith.constant 0 : index
    %545 = vector.load %arg2[%c320, %c0_238] : memref<1528x128xf32, #tpu.memory_space<vmem>>, vector<1x128xf32>
    %546 = vector.broadcast %545 : vector<1x128xf32> to vector<10x128xf32>
    %547 = arith.addf %544, %546 : vector<10x128xf32>
    %c0_239 = arith.constant 0 : index
    %c0_240 = arith.constant 0 : index
    %c0_241 = arith.constant 0 : index
    %548 = vector.load %arg3[%c0_239, %c0_240, %c0_241] : memref<1x10x128xf32, #tpu.memory_space<vmem>>, vector<1x10x128xf32>
    %549 = vector.shape_cast %548 : vector<1x10x128xf32> to vector<10x128xf32>
    %550 = vector.shape_cast %547 : vector<10x128xf32> to vector<1x10x128xf32>
    tpu.vector_store %arg3[%c0_239, %c0_240, %c0_241], %550 {strides = array<i32>} : memref<1x10x128xf32, #tpu.memory_space<vmem>>, vector<1x10x128xf32>,
    return
  }
  func.func @transform_0(%arg0: i32) -> (i32, i32, i32) {
    %c0_i32 = arith.constant 0 : i32
    %c0_i32_0 = arith.constant 0 : i32
    %c0_i32_1 = arith.constant 0 : i32
    return %arg0, %c0_i32, %c0_i32_0 : i32, i32, i32
  }
  func.func @transform_1(%arg0: i32) -> (i32, i32) {
    %c0_i32 = arith.constant 0 : i32
    %c0_i32_0 = arith.constant 0 : i32
    %c0_i32_1 = arith.constant 0 : i32
    return %c0_i32, %c0_i32_0 : i32, i32
  }
  func.func @transform_2(%arg0: i32) -> (i32, i32, i32) {
    %c0_i32 = arith.constant 0 : i32
    %c0_i32_0 = arith.constant 0 : i32
    %c0_i32_1 = arith.constant 0 : i32
    return %arg0, %c0_i32, %c0_i32_0 : i32, i32, i32
  }
}

</mosaic_0001>

<bundles_post_ra>
// kernel: vit_forward.1
= control target key start
LH: loop header
LB: loop body
LE: loop exit
PB: predicated region body
PF: predicated region fallthrough
CT: control target
= control target key end

     0   :  { %7 = vsyncpa [#allocation4], 0  ;;  %s6404_s9 = smov [#allocation3]   ;;  %s6796_s0 = inlined_call_operand.vmem [shape: f32[1,8,256], index: 0, kind: input, shape index: {}]   ;;  %s6797_s1 = inlined_call_operand.hbm [shape: f32[1528,128], index: 1, kind: input, shape index: {}]   ;;  %s6798_s2 = inlined_call_operand.vmem [shape: f32[1,10,128], index: 2, kind: output, shape index: {}]  }
   0x1   :  { %s15_s10 = sshll.u32 %s6404_s9, 4  ;;  %s16_s10 = int_to_ptr.vmem [resolvable:$true] %s15_s10 }
   0x2   :  { %s6390_s11 = scalar_lea.vmem %s16_s10, 24448  ;;  %p6395_p1 = scmp.lt.s32.totalorder %s16_s10, %s16_s10 }
   0x3   :  { %p6391_p0 = scmp.ne.s32.totalorder %s16_s10, %s6390_s11  ;;  %p6396_p2 = scmp.lt.s32.totalorder %s6390_s11, %s6390_s11 }
   0x5   :  { %p6397_p3 = por %p6396_p2, %p6395_p1 }
   0x7   :  { %p6398_p4 = pnand %p6397_p3, %p6391_p0 }
   0x9   :  { %6401 = shalt.err (!%p6398_p4)
}
   0xa   :  { %s6405_s12 = smov 128   ;;  %s6406_s13 = smov 8  }
   0xb   :  { %21 = dma.hbm_to_vmem [thread:$0]  %s6797_s1, 24448, %s16_s10, [#allocation4], %s6405_s12, %s6405_s12, %s6406_s13  }
   0xc   :  { %6402 = dma.done.wait [#allocation4], 24448  }
   0xd   :  { %6403 = vsyncadd [#allocation4], 4294942848  ;;  %v58_v0 = vld [vmem:[#allocation3 + $0xf8] sm:$0xff]  ;;  %v57_v2 = vld [vmem:[#allocation3 + $0xf0] sm:$0xff]  ;;  %vm130_vm0 = vcmask 253952   ;;  %vm136_vm1 = vcmask 257024  }
   0xe   :  { %v42_v1 = vld [vmem:[#allocation3 + $0x78] sm:$0xff]  ;;  %5458 = vmatprep.subr.mxu0 %v58_v0  ;;  %v41_v3 = vld [vmem:[#allocation3 + $0x70] sm:$0xff]  ;;  %v56_v4 = vld [vmem:[#allocation3 + $0xe8] sm:$0xff]  ;;  %vm142_vm2 = vcmask 261124   ;;  %vm172_vm3 = vcmask 261120   ;;  %vm6799_vm4 = vcmask 254976  }
   0xf   :  { %5459 = vmatpush3.msra.mxu0 %v42_v1  ;;  %v40_v5 = vld [vmem:[#allocation3 + $0x68] sm:$0xff]  ;;  %v55_v6 = vld [vmem:[#allocation3 + $0xe0] sm:$0xff]  ;;  %v54_v8 = vld [vmem:[#allocation3 + $0xd8] sm:$0xff]  ;;  %vm459_vm5 = vcmask 64512   ;;  %vm6800_vm6 = vcmask 1041408  }
  0x10   :  { %5460 = vmatprep.subr.mxu0 %v57_v2  ;;  %v39_v7 = vld [vmem:[#allocation3 + $0x60] sm:$0xff]  ;;  %v38_v9 = vld [vmem:[#allocation3 + $0x58] sm:$0xff]  ;;  %v53_v10 = vld [vmem:[#allocation3 + $0xd0] sm:$0xff] }
  0x11   :  { %5461 = vmatpush3.msra.mxu0 %v41_v3  ;;  %v37_v11 = vld [vmem:[#allocation3 + $0x50] sm:$0xff]  ;;  %v52_v12 = vld [vmem:[#allocation3 + $0xc8] sm:$0xff]  ;;  %v26_v13 = vld [vmem:[%s6796_s0 + $0x8] sm:$0xff] }
  0x12   :  { %5462 = vmatprep.subr.mxu0 %v56_v4  ;;  %v36_v14 = vld [vmem:[#allocation3 + $0x48] sm:$0xff]  ;;  %123 = vmatprep.mubr.f32.mxu0 %v26_v13  ;;  %v51_v15 = vld [vmem:[#allocation3 + $0xc0] sm:$0xff]  ;;  %v50_v17 = vld [vmem:[#allocation3 + $0xb8] sm:$0xff] }
  0x13   :  { %5463 = vmatpush3.msra.mxu0 %v40_v5  ;;  %v35_v16 = vld [vmem:[#allocation3 + $0x40] sm:$0xff]  ;;  %v34_v18 = vld [vmem:[#allocation3 + $0x38] sm:$0xff]  ;;  %v49_v19 = vld [vmem:[#allocation3 + $0xb0] sm:$0xff] }
  0x14   :  { %5464 = vmatprep.subr.mxu0 %v55_v6  ;;  %v33_v20 = vld [vmem:[#allocation3 + $0x30] sm:$0xff]  ;;  %v48_v21 = vld [vmem:[#allocation3 + $0xa8] sm:$0xff]  ;;  %v47_v23 = vld [vmem:[#allocation3 + $0xa0] sm:$0xff] }
  0x15   :  { %5465 = vmatpush3.msra.mxu0 %v39_v7  ;;  %v32_v22 = vld [vmem:[#allocation3 + $0x28] sm:$0xff]  ;;  %v31_v24 = vld [vmem:[#allocation3 + $0x20] sm:$0xff]  ;;  %v46_v25 = vld [vmem:[#allocation3 + $0x98] sm:$0xff] }
  0x16   :  { %5466 = vmatprep.subr.mxu0 %v54_v8  ;;  %v30_v26 = vld [vmem:[#allocation3 + $0x18] sm:$0xff]  ;;  %v45_v27 = vld [vmem:[#allocation3 + $0x90] sm:$0xff]  ;;  %v44_v29 = vld [vmem:[#allocation3 + $0x88] sm:$0xff] }
  0x17   :  { %5467 = vmatpush3.msra.mxu0 %v38_v9  ;;  %v29_v28 = vld [vmem:[#allocation3 + $0x10] sm:$0xff]  ;;  %v28_v30 = vld [vmem:[#allocation3 + $0x8] sm:$0xff]  ;;  %v43_v31 = vld [vmem:[#allocation3 + $0x80] sm:$0xff] }
  0x18   :  { %5468 = vmatprep.subr.mxu0 %v53_v10  ;;  %v27_v32 = vld [vmem:[#allocation3] sm:$0xff]  ;;  %v25_v33 = vld [vmem:[%s6796_s0] sm:$0xff]  ;;  %v209_v56 = vld [vmem:[#allocation3 + $0x1d8] sm:$0xff] }
  0x19   :  { %5469 = vmatpush3.msra.mxu0 %v37_v11  ;;  %v129_v34 = vld [vmem:[#allocation3 + $0x100] sm:$0x1f]  ;;  %5767 = vmatprep.subr.mxu1 %v209_v56  ;;  %v208_v57 = vld [vmem:[#allocation3 + $0x1d0] sm:$0xff]  ;;  %v207_v58 = vld [vmem:[#allocation3 + $0x1c8] sm:$0xff] }
  0x1a   :  { %5470 = vmatprep.subr.mxu0 %v52_v12  ;;  %131 = vst.msk [vmem:[#allocation2] sm:$0x1] %vm130_vm0, %v129_v34  ;;  %138 = vst.msk [vmem:[#allocation2 + $0x5] sm:$0x1] %vm130_vm0, %v129_v34  ;;  %v133_v36 = vrot.slane %v129_v34, 1  ;;  %v139_v37 = vrot.slane %v129_v34, 5  ;;  %5768 = vmatpush3.msra.mxu1 %v209_v56 }
  0x1b   :  { %5471 = vmatpush3.msra.mxu0 %v36_v14  ;;  %5769 = vmatprep.subr.mxu1 %v208_v57  ;;  %v206_v59 = vld [vmem:[#allocation3 + $0x1c0] sm:$0xff]  ;;  %v298_v7 = vld [vmem:[#allocation3 + $0x1f8] sm:$0xff]  ;;  %v297_v8 = vld [vmem:[#allocation3 + $0x1f0] sm:$0xff] }
  0x1c   :  { %5472 = vmatprep.subr.mxu0 %v51_v15  ;;  %5770 = vmatpush3.msra.mxu1 %v208_v57  ;;  %v299_v60 = vld [vmem:[#allocation3 + $0x200] sm:$0xff]  ;;  %v296_v9 = vld [vmem:[#allocation3 + $0x1e8] sm:$0xff]  ;;  %v377_v11 = vld [vmem:[#allocation3 + $0x218] sm:$0xff] }
  0x1d   :  { %5473 = vmatpush3.msra.mxu0 %v35_v16  ;;  %5771 = vmatprep.subr.mxu1 %v207_v58  ;;  %v378_v10 = vld [vmem:[#allocation3 + $0x220] sm:$0xff]  ;;  %v376_v12 = vld [vmem:[#allocation3 + $0x210] sm:$0xff]  ;;  %v375_v13 = vld [vmem:[#allocation3 + $0x208] sm:$0xff] }
  0x1e   :  { %5474 = vmatprep.subr.mxu0 %v50_v17  ;;  %5772 = vmatpush3.msra.mxu1 %v207_v58  ;;  %v5303_v15 = vld [vmem:[#allocation3 + $0x1e0] ss:$0 sm:$0xff] }
  0x1f   :  { %5475 = vmatpush3.msra.mxu0 %v34_v18  ;;  %5773 = vmatprep.subr.mxu1 %v206_v59 }
  0x20   :  { %5476 = vmatprep.subr.mxu0 %v49_v19  ;;  %5774 = vmatpush3.msra.mxu1 %v206_v59  ;;  %v742_v59 = vld [vmem:[#allocation3 + $0x248] sm:$0xff] }
  0x21   :  { %5477 = vmatpush3.msra.mxu0 %v33_v20  ;;  %5778 = vmatprep.subr.mxu1 %v299_v60  ;;  %v5308_v20 = vld [vmem:[#allocation3 + $0x228] ss:$0 sm:$0xff] }
  0x22   :  { %5478 = vmatprep.subr.mxu0 %v48_v21 }
  0x23   :  { %5479 = vmatpush3.msra.mxu0 %v32_v22 }
  0x24   :  { %5480 = vmatprep.subr.mxu0 %v47_v23 }
  0x25   :  { %5481 = vmatpush3.msra.mxu0 %v31_v24 }
  0x26   :  { %5482 = vmatprep.subr.mxu0 %v46_v25 }
  0x27   :  { %5483 = vmatpush3.msra.mxu0 %v30_v26  ;;  %v146_v26 = vlaneseq }
  0x28   :  { %5484 = vmatprep.subr.mxu0 %v45_v27 }
  0x29   :  { %5485 = vmatpush3.msra.mxu0 %v29_v28  ;;  %v147_v27 = vshrl.u32 %v146_v26, 7  ;;  %v150_v28 = vand.u32 127, %v146_v26 }
  0x2a   :  { %5486 = vmatprep.subr.mxu0 %v44_v29 }
  0x2b   :  { %5487 = vmatpush3.msra.mxu0 %v28_v30  ;;  %v148_v29 = vadd.s32 8, %v147_v27  ;;  %vm162_vm7 = vcmp.ge.s32.totalorder %v150_v28, 5  ;;  %vm156_vm8 = vcmp.ge.s32.totalorder %v147_v27, 5  ;;  %vm151_vm10 = vcmp.lt.s32.totalorder %v147_v27, 5 }
  0x2c   :  { %5488 = vmatprep.subr.mxu0 %v43_v31  ;;  %vm153_vm11 = vcmp.lt.s32.totalorder %v150_v28, 5  ;;  %vm165_vm12 = vcmp.lt.s32.totalorder %v150_v28, 10  ;;  %vm163_vm13 = vmand %vm156_vm8, %vm162_vm7  ;;  %v6407_v30 = vmov -1e+30  }
  0x2d   :  { %5489 = vmatpush3.msra.mxu0 %v27_v32  ;;  %vm159_vm9 = vcmp.lt.s32.totalorder %v148_v29, 10  ;;  %vm154_vm15 = vmand %vm151_vm10, %vm153_vm11 }
  0x2e   :  { %124 = vmatmul.mubr.f32.vlgmr.msra.gmra.mxu0 %v25_v33  ;;  %vm164_vm14 = vmand %vm159_vm9, %vm162_vm7  ;;  %vm6801_vm7 = vcmask 1041408  }
  0x2f   :  { %vm166_vm0 = vmand %vm163_vm13, %vm165_vm12  ;;  %vm6807_vm13 = vcmask 254976  }
  0x30   :  { %vm6802_vm8 = vmmov %vm6801_vm7 }
  0x31   :  { %vm6803_vm9 = vmmov %vm6801_vm7 }
  0x32   :  { %vm6804_vm10 = vmmov %vm6801_vm7 }
  0x33   :  { %vm6805_vm11 = vmmov %vm6801_vm7 }
  0xee   :  { %v5490_v35 = vpop.f32.mrf.mxu0 }
  0xf0   :  { %v5491_v38 = vpop.f32.mrf.mxu0 }
  0xf1   :  { %v5492_v39 = vadd.f32 %v5491_v38, %v5490_v35 }
  0xf3   :  { %v135_v40 = vadd.f32 %v5492_v39, %v133_v36  ;;  %v141_v41 = vadd.f32 %v5492_v39, %v139_v37 }
  0xf5   :  { %137 = vst.msk [vmem:[#allocation2 + $0x1] sm:$0xf] %vm136_vm1, %v135_v40  ;;  %vm167_vm1 = vmand %vm164_vm14, %vm165_vm12 }
  0xf6   :  { %143 = vst.msk [vmem:[#allocation2 + $0x2] sm:$0xf0] %vm142_vm2, %v141_v41  ;;  %vm168_vm2 = vmor %vm154_vm15, %vm166_vm0  ;;  %v6469_v31 = vsel %vm167_vm1, 0.0, %v6407_v30  ;;  %vm2497_vm1 = vcmask 523264  }
  0xf7   :  { %v6471_v33 = vsel %vm168_vm2, 0.0, %v6407_v30  ;;  %vm6806_vm12 = vmmov %vm6801_vm7 }
  0xf8   :  { %vm6808_vm14 = vmmov %vm6807_vm13 }
  0xfd   :  { %v6433_v42 = vld [vmem:[#allocation2] sm:$0xff]  ;;  %v6437_v44 = vld [vmem:[#allocation2 + $0x8] sm:$0x3] }
  0xfe   :  { %v173_v43 = vsel %vm172_vm3, %v6433_v42, 0.0  ;;  %v177_v45 = vsel %vm6799_vm4, %v6437_v44, 0.0 }
  0xff   :  { %174 = vadd.xlane.f32.xlu0 %v173_v43 }
 0x103   :  { %178 = vadd.xlane.f32.xlu0 %v177_v45 }
 0x188   :  { %v175_v46 = vpop.xlane.xlu0 %174 }
 0x189   :  { %v181_v47 = vmul.f32 0.03125, %v175_v46 }
 0x18b   :  { %v183_v48 = vsub.f32 %v6433_v42, %v181_v47 }
 0x18c   :  { %v179_v49 = vpop.xlane.xlu0 %178 }
 0x18d   :  { %v182_v50 = vmul.f32 0.03125, %v179_v49  ;;  %v185_v51 = vmul.f32 %v183_v48, %v183_v48 }
 0x18f   :  { %v184_v52 = vsub.f32 %v6437_v44, %v182_v50  ;;  %v187_v53 = vsel %vm172_vm3, %v185_v51, 0.0  ;;  %v743_v51 = vld [vmem:[#allocation3 + $0x250] sm:$0xff] }
 0x190   :  { %188 = vadd.xlane.f32.xlu1 %v187_v53 }
 0x191   :  { %v186_v54 = vmul.f32 %v184_v52, %v184_v52 }
 0x193   :  { %v190_v55 = vsel %vm6799_vm4, %v186_v54, 0.0  ;;  %vm551_vm4 = vcmask 74752  }
 0x194   :  { %191 = vadd.xlane.f32.xlu1 %v190_v55 }
 0x219   :  { %v189_v61 = vpop.xlane.xlu1 %188 }
 0x21a   :  { %v193_v62 = vmul.f32 0.03125, %v189_v61  ;;  %v740_v61 = vld [vmem:[#allocation3 + $0x238] sm:$0xff] }
 0x21c   :  { %v195_v63 = vadd.f32 1e-05, %v193_v62  ;;  %v906_v62 = vld [vmem:[#allocation3 + $0x298] sm:$0xff] }
 0x21d   :  { %v192_v0 = vpop.xlane.xlu1 %191 }
 0x21e   :  { %6266 = vrsqrt.f32 %v195_v63  ;;  %v194_v1 = vmul.f32 0.03125, %v192_v0  ;;  %v905_v63 = vld [vmem:[#allocation3 + $0x290] sm:$0xff]  ;;  %v904_v0 = vld [vmem:[#allocation3 + $0x288] sm:$0xff] }
 0x220   :  { %v196_v2 = vadd.f32 1e-05, %v194_v1  ;;  %v903_v1 = vld [vmem:[#allocation3 + $0x280] sm:$0xff] }
 0x222   :  { %6268 = vrsqrt.f32 %v196_v2  ;;  %v827_v2 = vld [vmem:[#allocation3 + $0x278] sm:$0xff] }
 0x22b   :  { %v6267_v3 = vpop.eup %6266 }
 0x22c   :  { %v6445_v4 = vmul.f32 %v6267_v3, %v183_v48 }
 0x22e   :  { %5775 = vmatprep.mubr.msk.f32.mxu1 %vm172_vm3, %v6445_v4 }
 0x22f   :  { %v6269_v5 = vpop.eup %6268 }
 0x230   :  { %v6449_v6 = vmul.f32 %v6269_v5, %v184_v52  ;;  %v656_v52 = vld [vmem:[#allocation3 + $0x230] sm:$0xff] }
 0x232   :  { %5776 = vmatmul.mubr.msk.f32.vlgmr.msra.gmra.mxu1 %vm172_vm3, %v6449_v6 }
 0x233   :  { %5779 = vmatpush3.msra.mxu1 %v299_v60  ;;  %5786 = vmatprep.mubr.msk.f32.mxu1 %vm172_vm3, %v6445_v4  ;;  %v741_v60 = vld [vmem:[#allocation3 + $0x240] sm:$0xff] }
 0x234   :  { %5780 = vmatprep.subr.mxu1 %v298_v7 }
 0x235   :  { %5781 = vmatpush3.msra.mxu1 %v298_v7  ;;  %v826_v7 = vld [vmem:[#allocation3 + $0x270] sm:$0xff] }
 0x236   :  { %5782 = vmatprep.subr.mxu1 %v297_v8 }
 0x237   :  { %5783 = vmatpush3.msra.mxu1 %v297_v8  ;;  %v825_v8 = vld [vmem:[#allocation3 + $0x268] sm:$0xff] }
 0x238   :  { %5784 = vmatprep.subr.mxu1 %v296_v9 }
 0x239   :  { %5785 = vmatpush3.msra.mxu1 %v296_v9  ;;  %v5320_v9 = vld [vmem:[#allocation3 + $0x258] ss:$0 sm:$0xff] }
 0x23a   :  { %5787 = vmatmul.mubr.msk.f32.vlgmr.msra.gmra.mxu1 %vm172_vm3, %v6449_v6  ;;  %5789 = vmatprep.subr.mxu1 %v378_v10 }
 0x23b   :  { %5790 = vmatpush3.msra.mxu1 %v378_v10  ;;  %5797 = vmatprep.mubr.msk.f32.mxu1 %vm172_vm3, %v6445_v4  ;;  %v824_v10 = vld [vmem:[#allocation3 + $0x260] sm:$0xff] }
 0x23c   :  { %5791 = vmatprep.subr.mxu1 %v377_v11 }
 0x23d   :  { %5792 = vmatpush3.msra.mxu1 %v377_v11 }
 0x23e   :  { %5793 = vmatprep.subr.mxu1 %v376_v12 }
 0x23f   :  { %5794 = vmatpush3.msra.mxu1 %v376_v12 }
 0x240   :  { %5795 = vmatprep.subr.mxu1 %v375_v13 }
 0x241   :  { %5796 = vmatpush3.msra.mxu1 %v375_v13 }
 0x242   :  { %5798 = vmatmul.mubr.msk.f32.vlgmr.msra.gmra.mxu1 %vm172_vm3, %v6449_v6 }
 0x2f2   :  { %v5777_v14 = vpop.f32.mrf.mxu1 }
 0x2f3   :  { %v293_v21 = vadd.f32 %v5777_v14, %v5303_v15 }
 0x2f4   :  { %v287_v16 = vpop.f32.mrf.mxu1 }
 0x2f5   :  { %v288_v17 = vadd.f32 %v5303_v15, %v287_v16  ;;  %v5325_v15 = vld [vmem:[#allocation3 + $0x2a0] ss:$0 sm:$0xff] }
 0x2f7   :  { %5804 = vmatprep.mubr.msk.f32.mxu1 %vm459_vm5, %v288_v17 }
 0x2fa   :  { %v5788_v18 = vpop.f32.mrf.mxu1 }
 0x2fb   :  { %5800 = vmatprep.subr.msk.mxu1 %vm459_vm5, %v5788_v18 }
 0x2fc   :  { %v366_v19 = vpop.f32.mrf.mxu1  ;;  %5801 = vmatpush3.xpose.msk.msra.mxu1 %vm459_vm5, %v5788_v18 }
 0x2fd   :  { %5802 = vmatprep.subr.msk.mxu1 %vm459_vm5, %v366_v19 }
 0x300   :  { %5803 = vmatpush3.xpose.msk.msra.mxu1 %vm459_vm5, %v366_v19 }
 0x301   :  { %5814 = vmatprep.subr.mxu1 %v656_v52 }
 0x302   :  { %v5799_v22 = vpop.f32.mrf.mxu1 }
 0x303   :  { %v456_v23 = vadd.f32 %v5799_v22, %v5308_v20  ;;  %5805 = vmatmul.mubr.msk.f32.vlgmr.msra.gmra.mxu1 %vm459_vm5, %v293_v21 }
 0x304   :  { %v450_v24 = vpop.f32.mrf.mxu1  ;;  %5815 = vmatpush3.msra.mxu1 %v656_v52  ;;  %v1266_v52 = vld [vmem:[#allocation3 + $0x2c0] sm:$0xff] }
 0x305   :  { %v451_v25 = vadd.f32 %v5308_v20, %v450_v24  ;;  %5807 = vmatprep.subr.msk.mxu0 %vm6800_vm6, %v456_v23  ;;  %5830 = vmatprep.subr.mxu1 %v827_v2 }
 0x306   :  { %5808 = vmatpush3.msk.msra.mxu0 %vm6800_vm6, %v456_v23  ;;  %vm547_vm6 = vcmask 80896  }
 0x307   :  { %5809 = vmatprep.subr.mxu0 %v451_v25 }
 0x308   :  { %5810 = vmatpush3.msra.mxu0 %v451_v25 }
 0x309   :  { %5819 = vmatprep.subr.mxu0 %v743_v51 }
 0x3c3   :  { %v5806_v32 = vpop.f32.mrf.mxu1 }
 0x3c4   :  { %v544_v34 = vadd.f32 %v5806_v32, %v6469_v31 }
 0x3c5   :  { %v538_v35 = vpop.f32.mrf.mxu1 }
 0x3c6   :  { %v539_v36 = vadd.f32 %v538_v35, %v6471_v33  ;;  %v552_v37 = vsel %vm551_vm4, %v544_v34, -inf }
 0x3c7   :  { %553 = vmax.xlane.f32.xlu1 %v552_v37 }
 0x3c8   :  { %v548_v38 = vsel %vm547_vm6, %v539_v36, -inf }
 0x3c9   :  { %549 = vmax.xlane.f32.xlu0 %v548_v38 }
 0x450   :  { %v554_v39 = vpop.xlane.xlu1 %553 }
 0x451   :  { %v556_v40 = vsub.f32 %v544_v34, %v554_v39 }
 0x452   :  { %v550_v41 = vpop.xlane.xlu0 %549 }
 0x453   :  { %v559_v43 = vmul.f32 1.442695, %v556_v40  ;;  %v555_v45 = vsub.f32 %v539_v36, %v550_v41 }
 0x455   :  { %6270 = vpow2.f32 %v559_v43  ;;  %v557_v46 = vmul.f32 1.442695, %v555_v45  ;;  %v1267_v43 = vld [vmem:[#allocation3 + $0x2c8] sm:$0xff] }
 0x456   :  { %v1180_v45 = vld [vmem:[#allocation3 + $0x2a8] sm:$0xff] }
 0x457   :  { %6272 = vpow2.f32 %v557_v46 }
 0x462   :  { %v6271_v47 = vpop.eup %6270 }
 0x463   :  { %v564_v48 = vsel %vm551_vm4, %v6271_v47, 0.0 }
 0x464   :  { %v6273_v49 = vpop.eup %6272  ;;  %565 = vadd.xlane.f32.xlu1 %v564_v48 }
 0x465   :  { %v561_v50 = vsel %vm547_vm6, %v6273_v49, 0.0 }
 0x466   :  { %562 = vadd.xlane.f32.xlu0 %v561_v50 }
 0x4ed   :  { %v566_v53 = vpop.xlane.xlu1 %565 }
 0x4ee   :  { %6274 = vrcp.f32 %v566_v53  ;;  %v1265_v53 = vld [vmem:[#allocation3 + $0x2b8] sm:$0xff] }
 0x4ef   :  { %v563_v54 = vpop.xlane.xlu0 %562 }
 0x4f0   :  { %6276 = vrcp.f32 %v563_v54  ;;  %v1264_v54 = vld [vmem:[#allocation3 + $0x2b0] sm:$0xff] }
 0x4fb   :  { %v6275_v55 = vpop.eup %6274 }
 0x4fc   :  { %v570_v58 = vmul.f32 %v6275_v55, %v6271_v47  ;;  %v1430_v55 = vld [vmem:[#allocation3 + $0x310] sm:$0xff] }
 0x4fd   :  { %v6277_v56 = vpop.eup %6276 }
 0x4fe   :  { %v569_v57 = vmul.f32 %v6277_v56, %v6273_v49  ;;  %v1429_v56 = vld [vmem:[#allocation3 + $0x308] sm:$0xff] }
 0x500   :  { %5811 = vmatprep.mubr.msk.f32.mxu0 %vm547_vm6, %v569_v57  ;;  %v1428_v57 = vld [vmem:[#allocation3 + $0x300] sm:$0xff] }
 0x501   :  { %5812 = vmatmul.mubr.msk.f32.vlgmr.msra.gmra.mxu0 %vm547_vm6, %v570_v58  ;;  %v1427_v58 = vld [vmem:[#allocation3 + $0x2f8] sm:$0xff] }
 0x502   :  { %5820 = vmatpush3.msra.mxu0 %v743_v51  ;;  %5827 = vmatprep.mubr.msk.f32.mxu0 %vm172_vm3, %v6445_v4 }
 0x503   :  { %5821 = vmatprep.subr.mxu0 %v742_v59 }
 0x504   :  { %5822 = vmatpush3.msra.mxu0 %v742_v59  ;;  %v1351_v59 = vld [vmem:[#allocation3 + $0x2f0] sm:$0xff] }
 0x505   :  { %5823 = vmatprep.subr.mxu0 %v741_v60 }
 0x506   :  { %5824 = vmatpush3.msra.mxu0 %v741_v60 }
 0x507   :  { %5825 = vmatprep.subr.mxu0 %v740_v61 }
 0x508   :  { %5826 = vmatpush3.msra.mxu0 %v740_v61 }
 0x509   :  { %5828 = vmatmul.mubr.msk.f32.vlgmr.msra.gmra.mxu0 %vm172_vm3, %v6449_v6  ;;  %5841 = vmatprep.subr.mxu0 %v906_v62 }
 0x50a   :  { %5842 = vmatpush3.msra.mxu0 %v906_v62  ;;  %5849 = vmatprep.mubr.msk.f32.mxu0 %vm172_vm3, %v6445_v4  ;;  %v1350_v62 = vld [vmem:[#allocation3 + $0x2e8] sm:$0xff] }
 0x50b   :  { %5843 = vmatprep.subr.mxu0 %v905_v63 }
 0x50c   :  { %5844 = vmatpush3.msra.mxu0 %v905_v63  ;;  %v1349_v63 = vld [vmem:[#allocation3 + $0x2e0] sm:$0xff] }
 0x50d   :  { %5845 = vmatprep.subr.mxu0 %v904_v0 }
 0x50e   :  { %5846 = vmatpush3.msra.mxu0 %v904_v0  ;;  %v5337_v0 = vld [vmem:[#allocation3 + $0x2d0] ss:$0 sm:$0xff] }
 0x50f   :  { %5847 = vmatprep.subr.mxu0 %v903_v1 }
 0x510   :  { %5848 = vmatpush3.msra.mxu0 %v903_v1  ;;  %v1348_v1 = vld [vmem:[#allocation3 + $0x2d8] sm:$0xff] }
 0x511   :  { %5850 = vmatmul.mubr.msk.f32.vlgmr.msra.gmra.mxu0 %vm172_vm3, %v6449_v6 }
 0x5c1   :  { %v5813_v3 = vpop.f32.mrf.mxu0 }
 0x5c3   :  { %v647_v5 = vpop.f32.mrf.mxu0 }
 0x5c4   :  { %5816 = vmatprep.mubr.msk.f32.mxu1 %vm459_vm5, %v647_v5 }
 0x5c5   :  { %5817 = vmatmul.mubr.msk.f32.vlgmr.msra.gmra.mxu1 %vm459_vm5, %v5813_v3 }
 0x5c6   :  { %5831 = vmatpush3.msra.mxu1 %v827_v2  ;;  %5838 = vmatprep.mubr.msk.f32.mxu1 %vm172_vm3, %v6445_v4 }
 0x5c7   :  { %5832 = vmatprep.subr.mxu1 %v826_v7 }
 0x5c8   :  { %5833 = vmatpush3.msra.mxu1 %v826_v7 }
 0x5c9   :  { %v5829_v11 = vpop.f32.mrf.mxu0  ;;  %5834 = vmatprep.subr.mxu1 %v825_v8 }
 0x5ca   :  { %v821_v12 = vadd.f32 %v5829_v11, %v5320_v9  ;;  %5835 = vmatpush3.msra.mxu1 %v825_v8  ;;  %v5342_v8 = vld [vmem:[#allocation3 + $0x318] ss:$0 sm:$0xff] }
 0x5cb   :  { %v815_v13 = vpop.f32.mrf.mxu0  ;;  %5836 = vmatprep.subr.mxu1 %v824_v10 }
 0x5cc   :  { %v816_v14 = vadd.f32 %v5320_v9, %v815_v13  ;;  %5837 = vmatpush3.msra.mxu1 %v824_v10  ;;  %v5302_v13 = vld [vmem:[#allocation3 + $0x148] ss:$0 sm:$0xff] }
 0x5cd   :  { %5839 = vmatmul.mubr.msk.f32.vlgmr.msra.gmra.mxu1 %vm172_vm3, %v6449_v6 }
 0x5ce   :  { %5856 = vmatprep.mubr.msk.f32.mxu1 %vm459_vm5, %v816_v14 }
 0x5d1   :  { %v5851_v16 = vpop.f32.mrf.mxu0 }
 0x5d2   :  { %v984_v17 = vadd.f32 %v5851_v16, %v5325_v15 }
 0x5d3   :  { %v978_v18 = vpop.f32.mrf.mxu0 }
 0x5d4   :  { %v979_v19 = vadd.f32 %v5325_v15, %v978_v18  ;;  %5859 = vmatprep.subr.msk.mxu0 %vm6801_vm7, %v984_v17 }
 0x5d5   :  { %5860 = vmatpush3.msk.msra.mxu0 %vm6802_vm8, %v984_v17  ;;  %vm6809_vm8 = vmmov %vm6807_vm13 }
 0x5d6   :  { %5861 = vmatprep.subr.mxu0 %v979_v19 }
 0x5d7   :  { %5862 = vmatpush3.msra.mxu0 %v979_v19 }
 0x5d8   :  { %5871 = vmatprep.subr.mxu0 %v1267_v43 }
 0x685   :  { %v6498_v20 = vpop.f32.mrf.mxu1 }
 0x686   :  { %v739_v14 = vadd.f32 %v6498_v20, %v5302_v13 }
 0x687   :  { %v6500_v21 = vpop.f32.mrf.mxu1 }
 0x688   :  { %v738_v16 = vadd.f32 %v5302_v13, %v6500_v21 }
 0x68d   :  { %v5840_v22 = vpop.f32.mrf.mxu1 }
 0x68e   :  { %5852 = vmatprep.subr.msk.mxu1 %vm459_vm5, %v5840_v22 }
 0x68f   :  { %v894_v23 = vpop.f32.mrf.mxu1  ;;  %5853 = vmatpush3.xpose.msk.msra.mxu1 %vm459_vm5, %v5840_v22 }
 0x690   :  { %5854 = vmatprep.subr.msk.mxu1 %vm459_vm5, %v894_v23 }
 0x693   :  { %5855 = vmatpush3.xpose.msk.msra.mxu1 %vm459_vm5, %v894_v23 }
 0x694   :  { %5866 = vmatprep.subr.mxu1 %v1180_v45 }
 0x696   :  { %5857 = vmatmul.mubr.msk.f32.vlgmr.msra.gmra.mxu1 %vm459_vm5, %v821_v12 }
 0x697   :  { %5867 = vmatpush3.msra.mxu1 %v1180_v45 }
 0x698   :  { %5882 = vmatprep.subr.mxu1 %v1351_v59 }
 0x756   :  { %v5858_v24 = vpop.f32.mrf.mxu1 }
 0x757   :  { %v1071_v25 = vadd.f32 %v5858_v24, %v6469_v31 }
 0x758   :  { %v1065_v26 = vpop.f32.mrf.mxu1 }
 0x759   :  { %v1066_v27 = vadd.f32 %v1065_v26, %v6471_v33  ;;  %v1077_v28 = vsel %vm551_vm4, %v1071_v25, -inf }
 0x75a   :  { %1078 = vmax.xlane.f32.xlu1 %v1077_v28 }
 0x75b   :  { %v1074_v29 = vsel %vm547_vm6, %v1066_v27, -inf }
 0x75c   :  { %1075 = vmax.xlane.f32.xlu0 %v1074_v29 }
 0x7e3   :  { %v1079_v30 = vpop.xlane.xlu1 %1078 }
 0x7e4   :  { %v1081_v32 = vsub.f32 %v1071_v25, %v1079_v30 }
 0x7e5   :  { %v1076_v34 = vpop.xlane.xlu0 %1075 }
 0x7e6   :  { %v1084_v35 = vmul.f32 1.442695, %v1081_v32  ;;  %v1080_v36 = vsub.f32 %v1066_v27, %v1076_v34 }
 0x7e8   :  { %6278 = vpow2.f32 %v1084_v35  ;;  %v1082_v37 = vmul.f32 1.442695, %v1080_v36 }
 0x7ea   :  { %6280 = vpow2.f32 %v1082_v37 }
 0x7f5   :  { %v6279_v38 = vpop.eup %6278 }
 0x7f6   :  { %v1089_v39 = vsel %vm551_vm4, %v6279_v38, 0.0 }
 0x7f7   :  { %v6281_v40 = vpop.eup %6280  ;;  %1090 = vadd.xlane.f32.xlu1 %v1089_v39 }
 0x7f8   :  { %v1086_v41 = vsel %vm547_vm6, %v6281_v40, 0.0 }
 0x7f9   :  { %1087 = vadd.xlane.f32.xlu0 %v1086_v41  ;;  %v1704_v41 = vld [vmem:[#allocation3 + $0x320] sm:$0xff] }
 0x880   :  { %v1091_v46 = vpop.xlane.xlu1 %1090 }
 0x881   :  { %6282 = vrcp.f32 %v1091_v46 }
 0x882   :  { %v1088_v47 = vpop.xlane.xlu0 %1087 }
 0x883   :  { %6284 = vrcp.f32 %v1088_v47 }
 0x88e   :  { %v6283_v48 = vpop.eup %6282 }
 0x88f   :  { %v1095_v51 = vmul.f32 %v6283_v48, %v6279_v38 }
 0x890   :  { %v6285_v49 = vpop.eup %6284 }
 0x891   :  { %v1094_v50 = vmul.f32 %v6285_v49, %v6281_v40  ;;  %v1791_v40 = vld [vmem:[#allocation3 + $0x340] sm:$0xff] }
 0x893   :  { %5863 = vmatprep.mubr.msk.f32.mxu0 %vm547_vm6, %v1094_v50  ;;  %v1790_v50 = vld [vmem:[#allocation3 + $0x338] sm:$0xff] }
 0x894   :  { %5864 = vmatmul.mubr.msk.f32.vlgmr.msra.gmra.mxu0 %vm547_vm6, %v1095_v51  ;;  %v1789_v51 = vld [vmem:[#allocation3 + $0x330] sm:$0xff] }
 0x895   :  { %5872 = vmatpush3.msra.mxu0 %v1267_v43  ;;  %5879 = vmatprep.mubr.msk.f32.mxu0 %vm172_vm3, %v6445_v4 }
 0x896   :  { %5873 = vmatprep.subr.mxu0 %v1266_v52 }
 0x897   :  { %5874 = vmatpush3.msra.mxu0 %v1266_v52  ;;  %v1788_v52 = vld [vmem:[#allocation3 + $0x328] sm:$0xff] }
 0x898   :  { %5875 = vmatprep.subr.mxu0 %v1265_v53 }
 0x899   :  { %5876 = vmatpush3.msra.mxu0 %v1265_v53  ;;  %v1954_v53 = vld [vmem:[#allocation3 + $0x388] sm:$0xff] }
 0x89a   :  { %5877 = vmatprep.subr.mxu0 %v1264_v54 }
 0x89b   :  { %5878 = vmatpush3.msra.mxu0 %v1264_v54  ;;  %v1953_v54 = vld [vmem:[#allocation3 + $0x380] sm:$0xff] }
 0x89c   :  { %5880 = vmatmul.mubr.msk.f32.vlgmr.msra.gmra.mxu0 %vm172_vm3, %v6449_v6  ;;  %5893 = vmatprep.subr.mxu0 %v1430_v55 }
 0x89d   :  { %5894 = vmatpush3.msra.mxu0 %v1430_v55  ;;  %5901 = vmatprep.mubr.msk.f32.mxu0 %vm172_vm3, %v6445_v4  ;;  %v1952_v55 = vld [vmem:[#allocation3 + $0x378] sm:$0xff] }
 0x89e   :  { %5895 = vmatprep.subr.mxu0 %v1429_v56 }
 0x89f   :  { %5896 = vmatpush3.msra.mxu0 %v1429_v56  ;;  %v1951_v56 = vld [vmem:[#allocation3 + $0x370] sm:$0xff] }
 0x8a0   :  { %5897 = vmatprep.subr.mxu0 %v1428_v57 }
 0x8a1   :  { %5898 = vmatpush3.msra.mxu0 %v1428_v57  ;;  %v1875_v57 = vld [vmem:[#allocation3 + $0x368] sm:$0xff] }
 0x8a2   :  { %5899 = vmatprep.subr.mxu0 %v1427_v58 }
 0x8a3   :  { %5900 = vmatpush3.msra.mxu0 %v1427_v58 }
 0x8a4   :  { %5902 = vmatmul.mubr.msk.f32.vlgmr.msra.gmra.mxu0 %vm172_vm3, %v6449_v6 }
 0x954   :  { %v5865_v60 = vpop.f32.mrf.mxu0 }
 0x956   :  { %v1171_v61 = vpop.f32.mrf.mxu0 }
 0x957   :  { %5868 = vmatprep.mubr.msk.f32.mxu1 %vm459_vm5, %v1171_v61  ;;  %v1873_v61 = vld [vmem:[#allocation3 + $0x358] sm:$0xff] }
 0x958   :  { %5869 = vmatmul.mubr.msk.f32.vlgmr.msra.gmra.mxu1 %vm459_vm5, %v5865_v60  ;;  %v1874_v60 = vld [vmem:[#allocation3 + $0x360] sm:$0xff] }
 0x959   :  { %5883 = vmatpush3.msra.mxu1 %v1351_v59  ;;  %5890 = vmatprep.mubr.msk.f32.mxu1 %vm172_vm3, %v6445_v4 }
 0x95a   :  { %5884 = vmatprep.subr.mxu1 %v1350_v62 }
 0x95b   :  { %5885 = vmatpush3.msra.mxu1 %v1350_v62  ;;  %v5354_v62 = vld [vmem:[#allocation3 + $0x348] ss:$0 sm:$0xff] }
 0x95c   :  { %v5881_v2 = vpop.f32.mrf.mxu0  ;;  %5886 = vmatprep.subr.mxu1 %v1349_v63 }
 0x95d   :  { %v1345_v3 = vadd.f32 %v5881_v2, %v5337_v0  ;;  %5887 = vmatpush3.msra.mxu1 %v1349_v63  ;;  %v1872_v63 = vld [vmem:[#allocation3 + $0x350] sm:$0xff] }
 0x95e   :  { %v1339_v5 = vpop.f32.mrf.mxu0  ;;  %5888 = vmatprep.subr.mxu1 %v1348_v1 }
 0x95f   :  { %v1340_v7 = vadd.f32 %v5337_v0, %v1339_v5  ;;  %5889 = vmatpush3.msra.mxu1 %v1348_v1  ;;  %v5359_v5 = vld [vmem:[#allocation3 + $0x390] ss:$0 sm:$0xff] }
 0x960   :  { %5891 = vmatmul.mubr.msk.f32.vlgmr.msra.gmra.mxu1 %vm172_vm3, %v6449_v6 }
 0x961   :  { %5908 = vmatprep.mubr.msk.f32.mxu1 %vm459_vm5, %v1340_v7 }
 0x964   :  { %v5903_v9 = vpop.f32.mrf.mxu0 }
 0x965   :  { %v1508_v10 = vadd.f32 %v5903_v9, %v5342_v8 }
 0x966   :  { %v1502_v11 = vpop.f32.mrf.mxu0 }
 0x967   :  { %v1503_v12 = vadd.f32 %v5342_v8, %v1502_v11  ;;  %5911 = vmatprep.subr.msk.mxu0 %vm6803_vm9, %v1508_v10  ;;  %vm6810_vm9 = vmmov %vm6809_vm8 }
 0x968   :  { %5912 = vmatpush3.msk.msra.mxu0 %vm6804_vm10, %v1508_v10 }
 0x969   :  { %5913 = vmatprep.subr.mxu0 %v1503_v12 }
 0x96a   :  { %5914 = vmatpush3.msra.mxu0 %v1503_v12 }
 0x96b   :  { %5923 = vmatprep.subr.mxu0 %v1791_v40 }
 0xa18   :  { %v5870_v15 = vpop.f32.mrf.mxu1 }
 0xa19   :  { %v6534_v17 = vadd.f32 %v5870_v15, %v739_v14 }
 0xa1a   :  { %v1253_v18 = vpop.f32.mrf.mxu1 }
 0xa1b   :  { %v6536_v19 = vadd.f32 %v1253_v18, %v738_v16 }
 0xa20   :  { %v5892_v22 = vpop.f32.mrf.mxu1 }
 0xa21   :  { %5904 = vmatprep.subr.msk.mxu1 %vm459_vm5, %v5892_v22 }
 0xa22   :  { %v1418_v23 = vpop.f32.mrf.mxu1  ;;  %5905 = vmatpush3.xpose.msk.msra.mxu1 %vm459_vm5, %v5892_v22 }
 0xa23   :  { %5906 = vmatprep.subr.msk.mxu1 %vm459_vm5, %v1418_v23 }
 0xa26   :  { %5907 = vmatpush3.xpose.msk.msra.mxu1 %vm459_vm5, %v1418_v23 }
 0xa27   :  { %5918 = vmatprep.subr.mxu1 %v1704_v41 }
 0xa29   :  { %5909 = vmatmul.mubr.msk.f32.vlgmr.msra.gmra.mxu1 %vm459_vm5, %v1345_v3 }
 0xa2a   :  { %5919 = vmatpush3.msra.mxu1 %v1704_v41 }
 0xa2b   :  { %5934 = vmatprep.subr.mxu1 %v1875_v57 }
 0xae9   :  { %v5910_v20 = vpop.f32.mrf.mxu1 }
 0xaea   :  { %v1595_v21 = vadd.f32 %v5910_v20, %v6469_v31 }
 0xaeb   :  { %v1589_v24 = vpop.f32.mrf.mxu1 }
 0xaec   :  { %v1590_v25 = vadd.f32 %v1589_v24, %v6471_v33  ;;  %v1601_v26 = vsel %vm551_vm4, %v1595_v21, -inf }
 0xaed   :  { %1602 = vmax.xlane.f32.xlu1 %v1601_v26 }
 0xaee   :  { %v1598_v27 = vsel %vm547_vm6, %v1590_v25, -inf }
 0xaef   :  { %1599 = vmax.xlane.f32.xlu0 %v1598_v27 }
 0xb76   :  { %v1603_v28 = vpop.xlane.xlu1 %1602 }
 0xb77   :  { %v1605_v29 = vsub.f32 %v1595_v21, %v1603_v28 }
 0xb78   :  { %v1600_v30 = vpop.xlane.xlu0 %1599 }
 0xb79   :  { %v1608_v32 = vmul.f32 1.442695, %v1605_v29  ;;  %v1604_v34 = vsub.f32 %v1590_v25, %v1600_v30 }
 0xb7b   :  { %6286 = vpow2.f32 %v1608_v32  ;;  %v1606_v35 = vmul.f32 1.442695, %v1604_v34  ;;  %v2228_v32 = vld [vmem:[#allocation3 + $0x398] sm:$0xff] }
 0xb7d   :  { %6288 = vpow2.f32 %v1606_v35 }
 0xb88   :  { %v6287_v36 = vpop.eup %6286 }
 0xb89   :  { %v1613_v37 = vsel %vm551_vm4, %v6287_v36, 0.0 }
 0xb8a   :  { %v6289_v38 = vpop.eup %6288  ;;  %1614 = vadd.xlane.f32.xlu1 %v1613_v37 }
 0xb8b   :  { %v1610_v39 = vsel %vm547_vm6, %v6289_v38, 0.0 }
 0xb8c   :  { %1611 = vadd.xlane.f32.xlu0 %v1610_v39 }
 0xc13   :  { %v1615_v43 = vpop.xlane.xlu1 %1614 }
 0xc14   :  { %6290 = vrcp.f32 %v1615_v43 }
 0xc15   :  { %v1612_v45 = vpop.xlane.xlu0 %1611 }
 0xc16   :  { %6292 = vrcp.f32 %v1612_v45 }
 0xc21   :  { %v6291_v46 = vpop.eup %6290 }
 0xc22   :  { %v1619_v49 = vmul.f32 %v6291_v46, %v6287_v36 }
 0xc23   :  { %v6293_v47 = vpop.eup %6292 }
 0xc24   :  { %v1618_v48 = vmul.f32 %v6293_v47, %v6289_v38 }
 0xc26   :  { %5915 = vmatprep.mubr.msk.f32.mxu0 %vm547_vm6, %v1618_v48 }
 0xc27   :  { %5916 = vmatmul.mubr.msk.f32.vlgmr.msra.gmra.mxu0 %vm547_vm6, %v1619_v49 }
 0xc28   :  { %5924 = vmatpush3.msra.mxu0 %v1791_v40  ;;  %5931 = vmatprep.mubr.msk.f32.mxu0 %vm172_vm3, %v6445_v4 }
 0xc29   :  { %5925 = vmatprep.subr.mxu0 %v1790_v50 }
 0xc2a   :  { %5926 = vmatpush3.msra.mxu0 %v1790_v50 }
 0xc2b   :  { %5927 = vmatprep.subr.mxu0 %v1789_v51 }
 0xc2c   :  { %5928 = vmatpush3.msra.mxu0 %v1789_v51 }
 0xc2d   :  { %5929 = vmatprep.subr.mxu0 %v1788_v52 }
 0xc2e   :  { %5930 = vmatpush3.msra.mxu0 %v1788_v52 }
 0xc2f   :  { %5932 = vmatmul.mubr.msk.f32.vlgmr.msra.gmra.mxu0 %vm172_vm3, %v6449_v6  ;;  %5945 = vmatprep.subr.mxu0 %v1954_v53 }
 0xc30   :  { %5946 = vmatpush3.msra.mxu0 %v1954_v53  ;;  %5953 = vmatprep.mubr.msk.f32.mxu0 %vm172_vm3, %v6445_v4 }
 0xc31   :  { %5947 = vmatprep.subr.mxu0 %v1953_v54 }
 0xc32   :  { %5948 = vmatpush3.msra.mxu0 %v1953_v54 }
 0xc33   :  { %5949 = vmatprep.subr.mxu0 %v1952_v55 }
 0xc34   :  { %5950 = vmatpush3.msra.mxu0 %v1952_v55 }
 0xc35   :  { %5951 = vmatprep.subr.mxu0 %v1951_v56 }
 0xc36   :  { %5952 = vmatpush3.msra.mxu0 %v1951_v56 }
 0xc37   :  { %5954 = vmatmul.mubr.msk.f32.vlgmr.msra.gmra.mxu0 %vm172_vm3, %v6449_v6 }
 0xce7   :  { %v5917_v58 = vpop.f32.mrf.mxu0 }
 0xce9   :  { %v1695_v59 = vpop.f32.mrf.mxu0 }
 0xcea   :  { %5920 = vmatprep.mubr.msk.f32.mxu1 %vm459_vm5, %v1695_v59 }
 0xceb   :  { %5921 = vmatmul.mubr.msk.f32.vlgmr.msra.gmra.mxu1 %vm459_vm5, %v5917_v58 }
 0xcec   :  { %5935 = vmatpush3.msra.mxu1 %v1875_v57  ;;  %5942 = vmatprep.mubr.msk.f32.mxu1 %vm172_vm3, %v6445_v4 }
 0xced   :  { %5936 = vmatprep.subr.mxu1 %v1874_v60 }
 0xcee   :  { %5937 = vmatpush3.msra.mxu1 %v1874_v60  ;;  %v2343_v60 = vld [vmem:[#allocation3 + $0x168] sm:$0xff] }
 0xcef   :  { %v5933_v0 = vpop.f32.mrf.mxu0  ;;  %5938 = vmatprep.subr.mxu1 %v1873_v61 }
 0xcf0   :  { %v1869_v1 = vadd.f32 %v5933_v0, %v5354_v62  ;;  %5939 = vmatpush3.msra.mxu1 %v1873_v61  ;;  %v2342_v61 = vld [vmem:[#allocation3 + $0x160] sm:$0xff] }
 0xcf1   :  { %v1863_v2 = vpop.f32.mrf.mxu0  ;;  %5940 = vmatprep.subr.mxu1 %v1872_v63 }
 0xcf2   :  { %v1864_v3 = vadd.f32 %v5354_v62, %v1863_v2  ;;  %5941 = vmatpush3.msra.mxu1 %v1872_v63  ;;  %v2341_v62 = vld [vmem:[#allocation3 + $0x158] sm:$0xff]  ;;  %v2340_v63 = vld [vmem:[#allocation3 + $0x150] sm:$0xff] }
 0xcf3   :  { %5943 = vmatmul.mubr.msk.f32.vlgmr.msra.gmra.mxu1 %vm172_vm3, %v6449_v6 }
 0xcf4   :  { %5960 = vmatprep.mubr.msk.f32.mxu1 %vm459_vm5, %v1864_v3 }
 0xcf7   :  { %v5955_v4 = vpop.f32.mrf.mxu0 }
 0xcf8   :  { %v2032_v7 = vadd.f32 %v5955_v4, %v5359_v5 }
 0xcf9   :  { %v2026_v8 = vpop.f32.mrf.mxu0 }
 0xcfa   :  { %v2027_v9 = vadd.f32 %v5359_v5, %v2026_v8  ;;  %5963 = vmatprep.subr.msk.mxu0 %vm6805_vm11, %v2032_v7  ;;  %vm6811_vm11 = vmmov %vm6804_vm10 }
 0xcfb   :  { %5964 = vmatpush3.msk.msra.mxu0 %vm6806_vm12, %v2032_v7  ;;  %vm6812_vm12 = vmmov %vm6804_vm10 }
 0xcfc   :  { %5965 = vmatprep.subr.mxu0 %v2027_v9 }
 0xcfd   :  { %5966 = vmatpush3.msra.mxu0 %v2027_v9 }
 0xcfe   :  { %5975 = vmatprep.subr.mxu0 %v2343_v60 }
 0xdab   :  { %v5922_v10 = vpop.f32.mrf.mxu1 }
 0xdac   :  { %v1787_v11 = vadd.f32 %v5922_v10, %v6534_v17 }
 0xdad   :  { %v1777_v12 = vpop.f32.mrf.mxu1 }
 0xdae   :  { %v1786_v13 = vadd.f32 %v1777_v12, %v6536_v19  ;;  %v2490_v12 = vld [vmem:[#allocation3 + $0x1a8] sm:$0xff] }
 0xdb3   :  { %v5944_v6 = vpop.f32.mrf.mxu1 }
 0xdb4   :  { %5956 = vmatprep.subr.msk.mxu1 %vm459_vm5, %v5944_v6 }
 0xdb5   :  { %v1942_v14 = vpop.f32.mrf.mxu1  ;;  %5957 = vmatpush3.xpose.msk.msra.mxu1 %vm459_vm5, %v5944_v6  ;;  %v2488_v6 = vld [vmem:[#allocation3 + $0x198] sm:$0xff] }
 0xdb6   :  { %5958 = vmatprep.subr.msk.mxu1 %vm459_vm5, %v1942_v14 }
 0xdb9   :  { %5959 = vmatpush3.xpose.msk.msra.mxu1 %vm459_vm5, %v1942_v14  ;;  %v2487_v14 = vld [vmem:[#allocation3 + $0x190] sm:$0xff] }
 0xdba   :  { %5970 = vmatprep.subr.mxu1 %v2228_v32 }
 0xdbc   :  { %5961 = vmatmul.mubr.msk.f32.vlgmr.msra.gmra.mxu1 %vm459_vm5, %v1869_v1 }
 0xdbd   :  { %5971 = vmatpush3.msra.mxu1 %v2228_v32 }
 0xe7c   :  { %v5962_v15 = vpop.f32.mrf.mxu1 }
 0xe7d   :  { %v2119_v16 = vadd.f32 %v5962_v15, %v6469_v31  ;;  %v2486_v15 = vld [vmem:[#allocation3 + $0x188] sm:$0xff] }
 0xe7e   :  { %v2113_v18 = vpop.f32.mrf.mxu1 }
 0xe7f   :  { %v2114_v17 = vadd.f32 %v2113_v18, %v6471_v33  ;;  %v2125_v19 = vsel %vm551_vm4, %v2119_v16, -inf  ;;  %v2484_v18 = vld [vmem:[#allocation3 + $0x178] sm:$0xff] }
 0xe80   :  { %2126 = vmax.xlane.f32.xlu1 %v2125_v19 }
 0xe81   :  { %v2122_v22 = vsel %vm547_vm6, %v2114_v17, -inf }
 0xe82   :  { %2123 = vmax.xlane.f32.xlu0 %v2122_v22 }
 0xf09   :  { %v2127_v23 = vpop.xlane.xlu1 %2126 }
 0xf0a   :  { %v2129_v20 = vsub.f32 %v2119_v16, %v2127_v23  ;;  %v2485_v16 = vld [vmem:[#allocation3 + $0x180] sm:$0xff] }
 0xf0b   :  { %v2124_v21 = vpop.xlane.xlu0 %2123 }
 0xf0c   :  { %v2132_v24 = vmul.f32 1.442695, %v2129_v20  ;;  %v2128_v25 = vsub.f32 %v2114_v17, %v2124_v21  ;;  %v5371_v17 = vld [vmem:[#allocation3 + $0x170] ss:$0 sm:$0xff] }
 0xf0e   :  { %6294 = vpow2.f32 %v2132_v24  ;;  %v2130_v26 = vmul.f32 1.442695, %v2128_v25 }
 0xf10   :  { %6296 = vpow2.f32 %v2130_v26 }
 0xf1b   :  { %v6295_v27 = vpop.eup %6294 }
 0xf1c   :  { %v2137_v28 = vsel %vm551_vm4, %v6295_v27, 0.0 }
 0xf1d   :  { %v6297_v29 = vpop.eup %6296  ;;  %2138 = vadd.xlane.f32.xlu1 %v2137_v28 }
 0xf1e   :  { %v2134_v30 = vsel %vm547_vm6, %v6297_v29, 0.0 }
 0xf1f   :  { %2135 = vadd.xlane.f32.xlu0 %v2134_v30 }
 0xfa6   :  { %v2139_v34 = vpop.xlane.xlu1 %2138 }
 0xfa7   :  { %6298 = vrcp.f32 %v2139_v34 }
 0xfa8   :  { %v2136_v35 = vpop.xlane.xlu0 %2135 }
 0xfa9   :  { %6300 = vrcp.f32 %v2136_v35 }
 0xfb4   :  { %v6299_v36 = vpop.eup %6298 }
 0xfb5   :  { %v2143_v39 = vmul.f32 %v6299_v36, %v6295_v27 }
 0xfb6   :  { %v6301_v37 = vpop.eup %6300 }
 0xfb7   :  { %v2142_v38 = vmul.f32 %v6301_v37, %v6297_v29 }
 0xfb9   :  { %5967 = vmatprep.mubr.msk.f32.mxu0 %vm547_vm6, %v2142_v38 }
 0xfba   :  { %5968 = vmatmul.mubr.msk.f32.vlgmr.msra.gmra.mxu0 %vm547_vm6, %v2143_v39 }
 0xfbb   :  { %5976 = vmatpush3.msra.mxu0 %v2343_v60 }
 0xfbc   :  { %5977 = vmatprep.subr.mxu0 %v2342_v61 }
 0xfbd   :  { %5978 = vmatpush3.msra.mxu0 %v2342_v61 }
 0xfbe   :  { %5979 = vmatprep.subr.mxu0 %v2341_v62 }
 0xfbf   :  { %5980 = vmatpush3.msra.mxu0 %v2341_v62 }
 0xfc0   :  { %5981 = vmatprep.subr.mxu0 %v2340_v63 }
 0xfc1   :  { %5982 = vmatpush3.msra.mxu0 %v2340_v63 }
0x107a   :  { %v5969_v40 = vpop.f32.mrf.mxu0 }
0x107c   :  { %v2219_v41 = vpop.f32.mrf.mxu0 }
0x107d   :  { %5972 = vmatprep.mubr.msk.f32.mxu1 %vm459_vm5, %v2219_v41 }
0x107e   :  { %5973 = vmatmul.mubr.msk.f32.vlgmr.msra.gmra.mxu1 %vm459_vm5, %v5969_v40 }
0x113e   :  { %v5974_v43 = vpop.f32.mrf.mxu1 }
0x113f   :  { %v2311_v45 = vadd.f32 %v5974_v43, %v1787_v11  ;;  %v2491_v11 = vld [vmem:[#allocation3 + $0x1b0] sm:$0xff] }
0x1140   :  { %v2301_v46 = vpop.f32.mrf.mxu1  ;;  %5986 = vmatprep.subr.mxu1 %v2491_v11 }
0x1141   :  { %v6586_v47 = vadd.f32 %v2311_v45, %v6437_v44  ;;  %v2310_v48 = vadd.f32 %v2301_v46, %v1786_v13  ;;  %5987 = vmatpush3.msra.mxu1 %v2491_v11  ;;  %v2489_v13 = vld [vmem:[#allocation3 + $0x1a0] sm:$0xff] }
0x1142   :  { %5988 = vmatprep.subr.mxu1 %v2490_v12 }
0x1143   :  { %v6589_v49 = vadd.f32 %v2310_v48, %v6433_v42  ;;  %v2317_v50 = vsel %vm6807_vm13, %v6586_v47, 0.0  ;;  %5989 = vmatpush3.msra.mxu1 %v2490_v12  ;;  %vm6813_vm13 = vmmov %vm6804_vm10 }
0x1144   :  { %2318 = vadd.xlane.f32.xlu1 %v2317_v50  ;;  %5990 = vmatprep.subr.mxu1 %v2489_v13 }
0x1145   :  { %v2314_v51 = vsel %vm172_vm3, %v6589_v49, 0.0  ;;  %5991 = vmatpush3.msra.mxu1 %v2489_v13 }
0x1146   :  { %2315 = vadd.xlane.f32.xlu0 %v2314_v51  ;;  %5992 = vmatprep.subr.mxu1 %v2488_v6 }
0x1147   :  { %5993 = vmatpush3.msra.mxu1 %v2488_v6 }
0x1148   :  { %5994 = vmatprep.subr.mxu1 %v2487_v14 }
0x1149   :  { %5995 = vmatpush3.msra.mxu1 %v2487_v14  ;;  %v5374_v14 = vld [vmem:[#allocation3 + $0x1b8] ss:$0 sm:$0xff] }
0x114a   :  { %5996 = vmatprep.subr.mxu1 %v2486_v15 }
0x114b   :  { %5997 = vmatpush3.msra.mxu1 %v2486_v15 }
0x114c   :  { %5998 = vmatprep.subr.mxu1 %v2485_v16 }
0x114d   :  { %5999 = vmatpush3.msra.mxu1 %v2485_v16 }
0x114e   :  { %6000 = vmatprep.subr.mxu1 %v2484_v18 }
0x114f   :  { %6001 = vmatpush3.msra.mxu1 %v2484_v18 }
0x11cd   :  { %v2319_v52 = vpop.xlane.xlu1 %2318 }
0x11ce   :  { %v2321_v53 = vmul.f32 0.03125, %v2319_v52 }
0x11cf   :  { %v2316_v54 = vpop.xlane.xlu0 %2315 }
0x11d0   :  { %v2323_v55 = vsub.f32 %v6586_v47, %v2321_v53  ;;  %v2320_v56 = vmul.f32 0.03125, %v2316_v54 }
0x11d2   :  { %v2322_v44 = vsub.f32 %v6589_v49, %v2320_v56  ;;  %v2325_v57 = vmul.f32 %v2323_v55, %v2323_v55 }
0x11d4   :  { %v2329_v42 = vsel %vm6808_vm14, %v2325_v57, 0.0  ;;  %v2324_v58 = vmul.f32 %v2322_v44, %v2322_v44  ;;  %vm6814_vm14 = vmmov %vm6804_vm10 }
0x11d5   :  { %2330 = vadd.xlane.f32.xlu1 %v2329_v42 }
0x11d6   :  { %v2326_v59 = vsel %vm172_vm3, %v2324_v58, 0.0 }
0x11d7   :  { %2327 = vadd.xlane.f32.xlu0 %v2326_v59 }
0x125e   :  { %v2331_v0 = vpop.xlane.xlu1 %2330 }
0x125f   :  { %v2333_v1 = vmul.f32 0.03125, %v2331_v0 }
0x1260   :  { %v2328_v2 = vpop.xlane.xlu0 %2327 }
0x1261   :  { %v2335_v3 = vadd.f32 1e-05, %v2333_v1  ;;  %v2332_v5 = vmul.f32 0.03125, %v2328_v2  ;;  %v6408_v1 = vmov -1.0  }
0x1263   :  { %v2334_v4 = vadd.f32 1e-05, %v2332_v5  ;;  %6302 = vrsqrt.f32 %v2335_v3 }
0x1265   :  { %6304 = vrsqrt.f32 %v2334_v4 }
0x1270   :  { %v6303_v7 = vpop.eup %6302 }
0x1271   :  { %v2339_v10 = vmul.f32 %v6303_v7, %v2323_v55 }
0x1272   :  { %v6305_v8 = vpop.eup %6304 }
0x1273   :  { %v2338_v9 = vmul.f32 %v6305_v8, %v2322_v44 }
0x1275   :  { %5983 = vmatprep.mubr.msk.f32.mxu0 %vm172_vm3, %v2338_v9 }
0x1276   :  { %5984 = vmatmul.mubr.msk.f32.vlgmr.msra.gmra.mxu0 %vm172_vm3, %v2339_v10 }
0x1336   :  { %v5985_v19 = vpop.f32.mrf.mxu0 }
0x1337   :  { %v2427_v22 = vadd.f32 %v5985_v19, %v5371_v17 }
0x1338   :  { %v2421_v23 = vpop.f32.mrf.mxu0 }
0x1339   :  { %v2433_v20 = vmul.f32 0.70710677, %v2427_v22  ;;  %v2422_v21 = vadd.f32 %v5371_v17, %v2421_v23  ;;  %v2431_v12 = vmul.f32 0.5, %v2427_v22 }
0x133b   :  { %v2439_v24 = vand.u32 2147483647, %v2433_v20  ;;  %v2432_v25 = vmul.f32 0.70710677, %v2422_v21  ;;  %vm2435_vm15 = vcmp.ge.f32.partialorder %v2433_v20, 0.0  ;;  %v2430_v10 = vmul.f32 0.5, %v2422_v21 }
0x133c   :  { %v2437_v2 = vsel %vm2435_vm15, 1.0, %v6408_v1  ;;  %vm6815_vm15 = vmmov %vm6804_vm10 }
0x133d   :  { %v2441_v26 = vmul.f32 0.3275911, %v2439_v24  ;;  %v2438_v27 = vand.u32 2147483647, %v2432_v25  ;;  %v2467_v32 = vsub.f32 0.0, %v2439_v24  ;;  %vm2434_vm0 = vcmp.ge.f32.partialorder %v2432_v25, 0.0 }
0x133e   :  { %v2436_v7 = vsel %vm2434_vm0, 1.0, %v6408_v1  ;;  %vm6816_vm0 = vmmov %vm6804_vm10 }
0x133f   :  { %v2443_v28 = vadd.f32 1.0, %v2441_v26  ;;  %v2440_v29 = vmul.f32 0.3275911, %v2438_v27  ;;  %v2466_v34 = vsub.f32 0.0, %v2438_v27  ;;  %v2469_v35 = vmul.f32 %v2467_v32, %v2439_v24 }
0x1341   :  { %6306 = vrcp.f32 %v2443_v28  ;;  %v2442_v30 = vadd.f32 1.0, %v2440_v29  ;;  %v2468_v37 = vmul.f32 %v2466_v34, %v2438_v27  ;;  %v2472_v39 = vmul.f32 1.442695, %v2469_v35 }
0x1343   :  { %6308 = vrcp.f32 %v2442_v30  ;;  %v2470_v45 = vmul.f32 1.442695, %v2468_v37 }
0x1344   :  { %6310 = vpow2.f32 %v2472_v39 }
0x1345   :  { %6312 = vpow2.f32 %v2470_v45 }
0x134e   :  { %v6307_v36 = vpop.eup %6306 }
0x134f   :  { %v2449_v38 = vmul.f32 1.0614054, %v6307_v36 }
0x1350   :  { %v6309_v40 = vpop.eup %6308 }
0x1351   :  { %v2451_v41 = vadd.f32 -1.4531521, %v2449_v38  ;;  %v2448_v43 = vmul.f32 1.0614054, %v6309_v40  ;;  %v6311_v59 = vpop.eup %6310 }
0x1352   :  { %v6313_v63 = vpop.eup %6312 }
0x1353   :  { %v2453_v46 = vmul.f32 %v6307_v36, %v2451_v41  ;;  %v2450_v48 = vadd.f32 -1.4531521, %v2448_v43 }
0x1355   :  { %v2455_v50 = vadd.f32 1.4214138, %v2453_v46  ;;  %v2452_v51 = vmul.f32 %v6309_v40, %v2450_v48 }
0x1357   :  { %v2457_v52 = vmul.f32 %v6307_v36, %v2455_v50  ;;  %v2454_v53 = vadd.f32 1.4214138, %v2452_v51 }
0x1359   :  { %v2459_v54 = vadd.f32 -0.28449672, %v2457_v52  ;;  %v2456_v55 = vmul.f32 %v6309_v40, %v2454_v53 }
0x135b   :  { %v2461_v56 = vmul.f32 %v6307_v36, %v2459_v54  ;;  %v2458_v44 = vadd.f32 -0.28449672, %v2456_v55 }
0x135d   :  { %v2463_v57 = vadd.f32 0.2548296, %v2461_v56  ;;  %v2460_v42 = vmul.f32 %v6309_v40, %v2458_v44 }
0x135f   :  { %v2465_v58 = vmul.f32 %v6307_v36, %v2463_v57  ;;  %v2462_v60 = vadd.f32 0.2548296, %v2460_v42 }
0x1361   :  { %v2475_v61 = vmul.f32 %v6311_v59, %v2465_v58  ;;  %v2464_v62 = vmul.f32 %v6309_v40, %v2462_v60 }
0x1363   :  { %v2477_v0 = vsub.f32 1.0, %v2475_v61  ;;  %v2474_v3 = vmul.f32 %v6313_v63, %v2464_v62 }
0x1365   :  { %v2479_v5 = vmul.f32 %v2477_v0, %v2437_v2  ;;  %v2476_v4 = vsub.f32 1.0, %v2474_v3 }
0x1367   :  { %v2478_v8 = vmul.f32 %v2476_v4, %v2436_v7  ;;  %v2481_v9 = vadd.f32 1.0, %v2479_v5 }
0x1369   :  { %v2480_v11 = vadd.f32 1.0, %v2478_v8  ;;  %v2483_v6 = vmul.f32 %v2481_v9, %v2431_v12 }
0x136b   :  { %v2482_v13 = vmul.f32 %v2480_v11, %v2430_v10 }
0x136d   :  { %6002 = vmatprep.mubr.msk.f32.mxu1 %vm2497_vm1, %v2482_v13 }
0x136e   :  { %6003 = vmatmul.mubr.msk.f32.vlgmr.msra.gmra.mxu1 %vm2497_vm1, %v2483_v6 }
0x142e   :  { %v6004_v15 = vpop.f32.mrf.mxu1 }
0x142f   :  { %v2576_v16 = vadd.f32 %v6004_v15, %v5374_v14 }
0x1430   :  { %v2570_v18 = vpop.f32.mrf.mxu1 }
0x1431   :  { %v2582_v17 = vmul.f32 0.70710677, %v2576_v16  ;;  %v2571_v19 = vadd.f32 %v5374_v14, %v2570_v18  ;;  %v2580_v2 = vmul.f32 0.5, %v2576_v16 }
0x1433   :  { %v2588_v23 = vand.u32 2147483647, %v2582_v17  ;;  %v2581_v20 = vmul.f32 0.70710677, %v2571_v19  ;;  %vm2584_vm2 = vcmp.ge.f32.partialorder %v2582_v17, 0.0  ;;  %v2579_v8 = vmul.f32 0.5, %v2571_v19 }
0x1434   :  { %v2586_v61 = vsel %vm2584_vm2, 1.0, %v6408_v1  ;;  %vm6817_vm2 = vmmov %vm6816_vm0 }
0x1435   :  { %v2590_v24 = vmul.f32 0.3275911, %v2588_v23  ;;  %v2587_v25 = vand.u32 2147483647, %v2581_v20  ;;  %v2616_v27 = vsub.f32 0.0, %v2588_v23  ;;  %vm2583_vm7 = vcmp.ge.f32.partialorder %v2581_v20, 0.0 }
0x1436   :  { %v2585_v5 = vsel %vm2583_vm7, 1.0, %v6408_v1 }
0x1437   :  { %v2592_v21 = vadd.f32 1.0, %v2590_v24  ;;  %v2589_v26 = vmul.f32 0.3275911, %v2587_v25  ;;  %v2615_v28 = vsub.f32 0.0, %v2587_v25  ;;  %v2618_v29 = vmul.f32 %v2616_v27, %v2588_v23  ;;  %v2669_v24 = vld [vmem:[#allocation3 + $0x430] sm:$0xff]  ;;  %v2836_v27 = vld [vmem:[#allocation3 + $0x468] sm:$0xff] }
0x1438   :  { %6005 = vmatprep.subr.mxu0 %v2669_v24 }
0x1439   :  { %6314 = vrcp.f32 %v2592_v21  ;;  %v2591_v22 = vadd.f32 1.0, %v2589_v26  ;;  %v2617_v32 = vmul.f32 %v2615_v28, %v2587_v25  ;;  %v2621_v35 = vmul.f32 1.442695, %v2618_v29  ;;  %v2838_v25 = vld [vmem:[#allocation3 + $0x478] sm:$0xff]  ;;  %6006 = vmatpush3.msra.mxu0 %v2669_v24  ;;  %v2668_v21 = vld [vmem:[#allocation3 + $0x428] sm:$0xff]  ;;  %v2837_v26 = vld [vmem:[#allocation3 + $0x470] sm:$0xff] }
0x143a   :  { %6027 = vmatprep.subr.mxu1 %v2838_v25  ;;  %6007 = vmatprep.subr.mxu0 %v2668_v21  ;;  %v2666_v28 = vld [vmem:[#allocation3 + $0x418] sm:$0xff]  ;;  %v2835_v29 = vld [vmem:[#allocation3 + $0x460] sm:$0xff] }
0x143b   :  { %6316 = vrcp.f32 %v2591_v22  ;;  %v2619_v39 = vmul.f32 1.442695, %v2617_v32  ;;  %6028 = vmatpush3.msra.mxu1 %v2838_v25  ;;  %6008 = vmatpush3.msra.mxu0 %v2668_v21  ;;  %v2667_v22 = vld [vmem:[#allocation3 + $0x420] sm:$0xff] }
0x143c   :  { %6318 = vpow2.f32 %v2621_v35  ;;  %6029 = vmatprep.subr.mxu1 %v2837_v26  ;;  %6009 = vmatprep.subr.mxu0 %v2667_v22 }
0x143d   :  { %6320 = vpow2.f32 %v2619_v39  ;;  %6030 = vmatpush3.msra.mxu1 %v2837_v26  ;;  %6010 = vmatpush3.msra.mxu0 %v2667_v22 }
0x143e   :  { %6031 = vmatprep.subr.mxu1 %v2836_v27  ;;  %6011 = vmatprep.subr.mxu0 %v2666_v28 }
0x143f   :  { %6032 = vmatpush3.msra.mxu1 %v2836_v27  ;;  %6012 = vmatpush3.msra.mxu0 %v2666_v28 }
0x1440   :  { %6033 = vmatprep.subr.mxu1 %v2835_v29 }
0x1441   :  { %6034 = vmatpush3.msra.mxu1 %v2835_v29 }
0x1446   :  { %v6315_v30 = vpop.eup %6314 }
0x1447   :  { %v2598_v34 = vmul.f32 1.0614054, %v6315_v30 }
0x1448   :  { %v6317_v36 = vpop.eup %6316 }
0x1449   :  { %v2600_v37 = vadd.f32 -1.4531521, %v2598_v34  ;;  %v2597_v38 = vmul.f32 1.0614054, %v6317_v36  ;;  %v6319_v44 = vpop.eup %6318 }
0x144a   :  { %v6321_v59 = vpop.eup %6320 }
0x144b   :  { %v2602_v40 = vmul.f32 %v6315_v30, %v2600_v37  ;;  %v2599_v41 = vadd.f32 -1.4531521, %v2597_v38 }
0x144d   :  { %v2604_v43 = vadd.f32 1.4214138, %v2602_v40  ;;  %v2601_v45 = vmul.f32 %v6317_v36, %v2599_v41 }
0x144f   :  { %v2606_v46 = vmul.f32 %v6315_v30, %v2604_v43  ;;  %v2603_v48 = vadd.f32 1.4214138, %v2601_v45  ;;  %v2758_v45 = vld [vmem:[#allocation3 + $0x450] sm:$0xff] }
0x1451   :  { %v2608_v50 = vadd.f32 -0.28449672, %v2606_v46  ;;  %v2605_v51 = vmul.f32 %v6317_v36, %v2603_v48  ;;  %v2757_v46 = vld [vmem:[#allocation3 + $0x448] sm:$0xff]  ;;  %v2756_v48 = vld [vmem:[#allocation3 + $0x440] sm:$0xff] }
0x1453   :  { %v2610_v52 = vmul.f32 %v6315_v30, %v2608_v50  ;;  %v2607_v53 = vadd.f32 -0.28449672, %v2605_v51  ;;  %v5383_v50 = vld [vmem:[#allocation3 + $0x480] ss:$0 sm:$0xff] }
0x1455   :  { %v2612_v54 = vadd.f32 0.2548296, %v2610_v52  ;;  %v2609_v55 = vmul.f32 %v6317_v36, %v2607_v53 }
0x1457   :  { %v2614_v56 = vmul.f32 %v6315_v30, %v2612_v54  ;;  %v2611_v57 = vadd.f32 0.2548296, %v2609_v55  ;;  %v2759_v30 = vld [vmem:[#allocation3 + $0x458] sm:$0xff] }
0x1458   :  { %6016 = vmatprep.subr.mxu0 %v2759_v30  ;;  %v5378_v54 = vld [vmem:[#allocation3 + $0x438] ss:$0 sm:$0xff] }
0x1459   :  { %v2624_v42 = vmul.f32 %v6319_v44, %v2614_v56  ;;  %v2613_v58 = vmul.f32 %v6317_v36, %v2611_v57 }
0x145b   :  { %v2626_v60 = vsub.f32 1.0, %v2624_v42  ;;  %v2623_v62 = vmul.f32 %v6321_v59, %v2613_v58  ;;  %v3199_v59 = vld [vmem:[#allocation3 + $0x4a8] sm:$0xff] }
0x145d   :  { %v2628_v63 = vmul.f32 %v2626_v60, %v2586_v61  ;;  %v2625_v0 = vsub.f32 1.0, %v2623_v62  ;;  %v3198_v61 = vld [vmem:[#allocation3 + $0x4a0] sm:$0xff]  ;;  %v3197_v62 = vld [vmem:[#allocation3 + $0x498] sm:$0xff] }
0x145f   :  { %v2630_v3 = vadd.f32 1.0, %v2628_v63  ;;  %v2627_v4 = vmul.f32 %v2625_v0, %v2585_v5  ;;  %v3196_v63 = vld [vmem:[#allocation3 + $0x490] sm:$0xff]  ;;  %v3359_v5 = vld [vmem:[#allocation3 + $0x4d8] sm:$0xff] }
0x1460   :  { %v3362_v0 = vld [vmem:[#allocation3 + $0x4f0] sm:$0xff] }
0x1461   :  { %v2632_v7 = vmul.f32 %v2630_v3, %v2580_v2  ;;  %v2629_v9 = vadd.f32 1.0, %v2627_v4  ;;  %v3361_v2 = vld [vmem:[#allocation3 + $0x4e8] sm:$0xff]  ;;  %v3360_v3 = vld [vmem:[#allocation3 + $0x4e0] sm:$0xff] }
0x1463   :  { %v6608_v10 = vadd.f32 %v2632_v7, %v6586_v47  ;;  %v2631_v11 = vmul.f32 %v2629_v9, %v2579_v8 }
0x1465   :  { %v2638_v12 = vsel %vm6809_vm8, %v6608_v10, 0.0  ;;  %v6613_v13 = vadd.f32 %v2631_v11, %v6589_v49 }
0x1466   :  { %2639 = vadd.xlane.f32.xlu1 %v2638_v12 }
0x1467   :  { %v2635_v6 = vsel %vm172_vm3, %v6613_v13, 0.0 }
0x1468   :  { %2636 = vadd.xlane.f32.xlu0 %v2635_v6  ;;  %v5395_v6 = vld [vmem:[#allocation3 + $0x4b0] ss:$0 sm:$0xff] }
0x14ef   :  { %v2640_v14 = vpop.xlane.xlu1 %2639 }
0x14f0   :  { %v2642_v15 = vmul.f32 0.03125, %v2640_v14 }
0x14f1   :  { %v2637_v18 = vpop.xlane.xlu0 %2636 }
0x14f2   :  { %v2644_v16 = vsub.f32 %v6608_v10, %v2642_v15  ;;  %v2641_v17 = vmul.f32 0.03125, %v2637_v18  ;;  %v5400_v18 = vld [vmem:[#allocation3 + $0x4f8] ss:$0 sm:$0xff] }
0x14f4   :  { %v2646_v47 = vmul.f32 %v2644_v16, %v2644_v16  ;;  %v2643_v19 = vsub.f32 %v6613_v13, %v2641_v17 }
0x14f6   :  { %v2650_v23 = vsel %vm6810_vm9, %v2646_v47, 0.0  ;;  %v2645_v20 = vmul.f32 %v2643_v19, %v2643_v19 }
0x14f7   :  { %2651 = vadd.xlane.f32.xlu1 %v2650_v23 }
0x14f8   :  { %v2647_v49 = vsel %vm172_vm3, %v2645_v20, 0.0 }
0x14f9   :  { %2648 = vadd.xlane.f32.xlu0 %v2647_v49 }
0x1580   :  { %v2652_v32 = vpop.xlane.xlu1 %2651 }
0x1581   :  { %v2654_v34 = vmul.f32 0.03125, %v2652_v32 }
0x1582   :  { %v2649_v36 = vpop.xlane.xlu0 %2648 }
0x1583   :  { %v2656_v35 = vadd.f32 1e-05, %v2654_v34  ;;  %v2653_v37 = vmul.f32 0.03125, %v2649_v36 }
0x1585   :  { %v2655_v38 = vadd.f32 1e-05, %v2653_v37  ;;  %6322 = vrsqrt.f32 %v2656_v35 }
0x1587   :  { %6324 = vrsqrt.f32 %v2655_v38 }
0x1592   :  { %v6323_v39 = vpop.eup %6322 }
0x1593   :  { %v6623_v43 = vmul.f32 %v6323_v39, %v2644_v16  ;;  %v3283_v39 = vld [vmem:[#allocation3 + $0x4d0] sm:$0xff] }
0x1594   :  { %v6325_v40 = vpop.eup %6324 }
0x1595   :  { %v6621_v41 = vmul.f32 %v6325_v40, %v2643_v19 }
0x1597   :  { %6013 = vmatprep.mubr.msk.f32.mxu0 %vm172_vm3, %v6621_v41  ;;  %6035 = vmatprep.mubr.msk.f32.mxu1 %vm172_vm3, %v6621_v41 }
0x1598   :  { %6014 = vmatmul.mubr.msk.f32.vlgmr.msra.gmra.mxu0 %vm172_vm3, %v6623_v43  ;;  %6036 = vmatmul.mubr.msk.f32.vlgmr.msra.gmra.mxu1 %vm172_vm3, %v6623_v43 }
0x1599   :  { %6017 = vmatpush3.msra.mxu0 %v2759_v30  ;;  %6024 = vmatprep.mubr.msk.f32.mxu0 %vm172_vm3, %v6621_v41  ;;  %v3112_v30 = vld [vmem:[#allocation3 + $0x488] sm:$0xff] }
0x159a   :  { %6018 = vmatprep.subr.mxu0 %v2758_v45 }
0x159b   :  { %6019 = vmatpush3.msra.mxu0 %v2758_v45 }
0x159c   :  { %6020 = vmatprep.subr.mxu0 %v2757_v46 }
0x159d   :  { %6021 = vmatpush3.msra.mxu0 %v2757_v46  ;;  %v3282_v46 = vld [vmem:[#allocation3 + $0x4c8] sm:$0xff] }
0x159e   :  { %6022 = vmatprep.subr.mxu0 %v2756_v48 }
0x159f   :  { %6023 = vmatpush3.msra.mxu0 %v2756_v48  ;;  %v3281_v48 = vld [vmem:[#allocation3 + $0x4c0] sm:$0xff] }
0x15a0   :  { %6025 = vmatmul.mubr.msk.f32.vlgmr.msra.gmra.mxu0 %vm172_vm3, %v6623_v43 }
0x1658   :  { %v6015_v51 = vpop.f32.mrf.mxu0  ;;  %v6037_v52 = vpop.f32.mrf.mxu1 }
0x1659   :  { %v2916_v53 = vadd.f32 %v6037_v52, %v5383_v50  ;;  %v2753_v60 = vadd.f32 %v6015_v51, %v5378_v54 }
0x165a   :  { %v2747_v55 = vpop.f32.mrf.mxu0  ;;  %v2910_v56 = vpop.f32.mrf.mxu1 }
0x165b   :  { %v2748_v44 = vadd.f32 %v5378_v54, %v2747_v55  ;;  %v2911_v57 = vadd.f32 %v5383_v50, %v2910_v56  ;;  %6045 = vmatprep.subr.msk.mxu1 %vm6804_vm10, %v2916_v53  ;;  %v3280_v50 = vld [vmem:[#allocation3 + $0x4b8] sm:$0xff] }
0x165c   :  { %6046 = vmatpush3.msk.msra.mxu1 %vm6811_vm11, %v2916_v53  ;;  %vm5213_vm11 = vcmask 130048  }
0x165d   :  { %6042 = vmatprep.mubr.msk.f32.mxu0 %vm459_vm5, %v2748_v44  ;;  %6047 = vmatprep.subr.mxu1 %v2911_v57 }
0x165e   :  { %6048 = vmatpush3.msra.mxu1 %v2911_v57 }
0x165f   :  { %6052 = vmatprep.subr.mxu1 %v3112_v30 }
0x1660   :  { %v6026_v42 = vpop.f32.mrf.mxu0 }
0x1661   :  { %6038 = vmatprep.subr.msk.mxu0 %vm459_vm5, %v6026_v42 }
0x1662   :  { %v2826_v58 = vpop.f32.mrf.mxu0  ;;  %6039 = vmatpush3.xpose.msk.msra.mxu0 %vm459_vm5, %v6026_v42 }
0x1663   :  { %6040 = vmatprep.subr.msk.mxu0 %vm459_vm5, %v2826_v58 }
0x1666   :  { %6041 = vmatpush3.xpose.msk.msra.mxu0 %vm459_vm5, %v2826_v58 }
0x1667   :  { %6057 = vmatprep.subr.mxu0 %v3199_v59 }
0x1669   :  { %6043 = vmatmul.mubr.msk.f32.vlgmr.msra.gmra.mxu0 %vm459_vm5, %v2753_v60 }
0x166a   :  { %6058 = vmatpush3.msra.mxu0 %v3199_v59  ;;  %6065 = vmatprep.mubr.msk.f32.mxu0 %vm172_vm3, %v6621_v41 }
0x166b   :  { %6059 = vmatprep.subr.mxu0 %v3198_v61 }
0x166c   :  { %6060 = vmatpush3.msra.mxu0 %v3198_v61 }
0x166d   :  { %6061 = vmatprep.subr.mxu0 %v3197_v62 }
0x166e   :  { %6062 = vmatpush3.msra.mxu0 %v3197_v62 }
0x166f   :  { %6063 = vmatprep.subr.mxu0 %v3196_v63 }
0x1670   :  { %6064 = vmatpush3.msra.mxu0 %v3196_v63 }
0x1671   :  { %6066 = vmatmul.mubr.msk.f32.vlgmr.msra.gmra.mxu0 %vm172_vm3, %v6623_v43  ;;  %6079 = vmatprep.subr.mxu0 %v3362_v0 }
0x1672   :  { %6080 = vmatpush3.msra.mxu0 %v3362_v0  ;;  %6087 = vmatprep.mubr.msk.f32.mxu0 %vm172_vm3, %v6621_v41 }
0x1673   :  { %6081 = vmatprep.subr.mxu0 %v3361_v2 }
0x1674   :  { %6082 = vmatpush3.msra.mxu0 %v3361_v2 }
0x1675   :  { %6083 = vmatprep.subr.mxu0 %v3360_v3 }
0x1676   :  { %6084 = vmatpush3.msra.mxu0 %v3360_v3 }
0x1677   :  { %6085 = vmatprep.subr.mxu0 %v3359_v5 }
0x1678   :  { %6086 = vmatpush3.msra.mxu0 %v3359_v5 }
0x1679   :  { %6088 = vmatmul.mubr.msk.f32.vlgmr.msra.gmra.mxu0 %vm172_vm3, %v6623_v43 }
0x1729   :  { %v6044_v4 = vpop.f32.mrf.mxu0 }
0x172a   :  { %v3003_v7 = vadd.f32 %v6044_v4, %v6469_v31 }
0x172b   :  { %v2997_v8 = vpop.f32.mrf.mxu0 }
0x172c   :  { %v2998_v9 = vadd.f32 %v2997_v8, %v6471_v33  ;;  %v3009_v11 = vsel %vm551_vm4, %v3003_v7, -inf  ;;  %v3723_v8 = vld [vmem:[#allocation3 + $0x520] sm:$0xff] }
0x172d   :  { %3010 = vmax.xlane.f32.xlu1 %v3009_v11 }
0x172e   :  { %v3006_v12 = vsel %vm547_vm6, %v2998_v9, -inf }
0x172f   :  { %3007 = vmax.xlane.f32.xlu0 %v3006_v12 }
0x1731   :  { %v6067_v14 = vpop.f32.mrf.mxu0 }
0x1732   :  { %v6657_v15 = vadd.f32 %v6067_v14, %v5395_v6 }
0x1733   :  { %v3271_v16 = vpop.f32.mrf.mxu0 }
0x1734   :  { %v3272_v51 = vadd.f32 %v5395_v6, %v3271_v16 }
0x1739   :  { %v6089_v17 = vpop.f32.mrf.mxu0 }
0x173a   :  { %v3440_v47 = vadd.f32 %v6089_v17, %v5400_v18  ;;  %v3721_v17 = vld [vmem:[#allocation3 + $0x510] sm:$0xff] }
0x173b   :  { %v3434_v19 = vpop.f32.mrf.mxu0 }
0x173c   :  { %v3435_v23 = vadd.f32 %v5400_v18, %v3434_v19  ;;  %6097 = vmatprep.subr.msk.mxu0 %vm6812_vm12, %v3440_v47  ;;  %v3722_v18 = vld [vmem:[#allocation3 + $0x518] sm:$0xff]  ;;  %v3886_v19 = vld [vmem:[#allocation3 + $0x568] sm:$0xff] }
0x173d   :  { %6098 = vmatpush3.msk.msra.mxu0 %vm6813_vm13, %v3440_v47  ;;  %v3720_v47 = vld [vmem:[#allocation3 + $0x508] sm:$0xff] }
0x173e   :  { %6099 = vmatprep.subr.mxu0 %v3435_v23 }
0x173f   :  { %6100 = vmatpush3.msra.mxu0 %v3435_v23  ;;  %v3885_v23 = vld [vmem:[#allocation3 + $0x560] sm:$0xff] }
0x1740   :  { %6109 = vmatprep.subr.mxu0 %v3723_v8 }
0x17b6   :  { %v3011_v20 = vpop.xlane.xlu1 %3010 }
0x17b7   :  { %v3013_v49 = vsub.f32 %v3003_v7, %v3011_v20  ;;  %v3884_v20 = vld [vmem:[#allocation3 + $0x558] sm:$0xff] }
0x17b8   :  { %v3008_v24 = vpop.xlane.xlu0 %3007 }
0x17b9   :  { %v3016_v25 = vmul.f32 1.442695, %v3013_v49  ;;  %v3012_v21 = vsub.f32 %v2998_v9, %v3008_v24  ;;  %v3636_v9 = vld [vmem:[#allocation3 + $0x500] sm:$0xff]  ;;  %v3883_v49 = vld [vmem:[#allocation3 + $0x550] sm:$0xff]  ;;  %v3807_v24 = vld [vmem:[#allocation3 + $0x548] sm:$0xff] }
0x17bb   :  { %6326 = vpow2.f32 %v3016_v25  ;;  %v3014_v26 = vmul.f32 1.442695, %v3012_v21 }
0x17bd   :  { %6328 = vpow2.f32 %v3014_v26  ;;  %v3806_v26 = vld [vmem:[#allocation3 + $0x540] sm:$0xff] }
0x17c8   :  { %v6327_v22 = vpop.eup %6326 }
0x17c9   :  { %v3021_v27 = vsel %vm551_vm4, %v6327_v22, 0.0 }
0x17ca   :  { %v6329_v28 = vpop.eup %6328  ;;  %3022 = vadd.xlane.f32.xlu1 %v3021_v27  ;;  %v5412_v27 = vld [vmem:[#allocation3 + $0x528] ss:$0 sm:$0xff] }
0x17cb   :  { %v3018_v29 = vsel %vm547_vm6, %v6329_v28, 0.0 }
0x17cc   :  { %3019 = vadd.xlane.f32.xlu0 %v3018_v29 }
0x1853   :  { %v3023_v32 = vpop.xlane.xlu1 %3022 }
0x1854   :  { %6330 = vrcp.f32 %v3023_v32 }
0x1855   :  { %v3020_v34 = vpop.xlane.xlu0 %3019 }
0x1856   :  { %6332 = vrcp.f32 %v3020_v34 }
0x1861   :  { %v6331_v35 = vpop.eup %6330 }
0x1862   :  { %v3027_v38 = vmul.f32 %v6331_v35, %v6327_v22  ;;  %v3805_v22 = vld [vmem:[#allocation3 + $0x538] sm:$0xff]  ;;  %v5417_v35 = vld [vmem:[#allocation3 + $0x570] ss:$0 sm:$0xff] }
0x1863   :  { %v6333_v36 = vpop.eup %6332 }
0x1864   :  { %v3026_v37 = vmul.f32 %v6333_v36, %v6329_v28  ;;  %v3804_v28 = vld [vmem:[#allocation3 + $0x530] sm:$0xff] }
0x1866   :  { %6049 = vmatprep.mubr.msk.f32.mxu1 %vm547_vm6, %v3026_v37 }
0x1867   :  { %6050 = vmatmul.mubr.msk.f32.vlgmr.msra.gmra.mxu1 %vm547_vm6, %v3027_v38 }
0x1868   :  { %6053 = vmatpush3.msra.mxu1 %v3112_v30 }
0x1869   :  { %6068 = vmatprep.subr.mxu1 %v3283_v39 }
0x1927   :  { %v6051_v40 = vpop.f32.mrf.mxu1 }
0x1929   :  { %v3103_v45 = vpop.f32.mrf.mxu1 }
0x192a   :  { %6054 = vmatprep.mubr.msk.f32.mxu1 %vm459_vm5, %v3103_v45 }
0x192b   :  { %6055 = vmatmul.mubr.msk.f32.vlgmr.msra.gmra.mxu1 %vm459_vm5, %v6051_v40  ;;  %v5377_v40 = vld [vmem:[#allocation3 + $0x3a0] ss:$0 sm:$0xff] }
0x192c   :  { %6069 = vmatpush3.msra.mxu1 %v3283_v39  ;;  %6076 = vmatprep.mubr.msk.f32.mxu1 %vm172_vm3, %v6621_v41 }
0x192d   :  { %6070 = vmatprep.subr.mxu1 %v3282_v46 }
0x192e   :  { %6071 = vmatpush3.msra.mxu1 %v3282_v46 }
0x192f   :  { %6072 = vmatprep.subr.mxu1 %v3281_v48 }
0x1930   :  { %6073 = vmatpush3.msra.mxu1 %v3281_v48 }
0x1931   :  { %6074 = vmatprep.subr.mxu1 %v3280_v50 }
0x1932   :  { %6075 = vmatpush3.msra.mxu1 %v3280_v50 }
0x1933   :  { %6077 = vmatmul.mubr.msk.f32.vlgmr.msra.gmra.mxu1 %vm172_vm3, %v6623_v43 }
0x1934   :  { %6094 = vmatprep.mubr.msk.f32.mxu1 %vm459_vm5, %v3272_v51 }
0x19eb   :  { %v6672_v52 = vpop.f32.mrf.mxu1 }
0x19ec   :  { %v3195_v45 = vadd.f32 %v6672_v52, %v5377_v40 }
0x19ed   :  { %v6674_v53 = vpop.f32.mrf.mxu1 }
0x19ee   :  { %v3194_v48 = vadd.f32 %v5377_v40, %v6674_v53 }
0x19f3   :  { %v6078_v54 = vpop.f32.mrf.mxu1 }
0x19f4   :  { %6090 = vmatprep.subr.msk.mxu1 %vm459_vm5, %v6078_v54 }
0x19f5   :  { %v3350_v55 = vpop.f32.mrf.mxu1  ;;  %6091 = vmatpush3.xpose.msk.msra.mxu1 %vm459_vm5, %v6078_v54 }
0x19f6   :  { %6092 = vmatprep.subr.msk.mxu1 %vm459_vm5, %v3350_v55 }
0x19f9   :  { %6093 = vmatpush3.xpose.msk.msra.mxu1 %vm459_vm5, %v3350_v55 }
0x19fa   :  { %6104 = vmatprep.subr.mxu1 %v3636_v9 }
0x19fc   :  { %6095 = vmatmul.mubr.msk.f32.vlgmr.msra.gmra.mxu1 %vm459_vm5, %v6657_v15 }
0x19fd   :  { %6105 = vmatpush3.msra.mxu1 %v3636_v9 }
0x19fe   :  { %6120 = vmatprep.subr.mxu1 %v3807_v24 }
0x1abc   :  { %v6096_v56 = vpop.f32.mrf.mxu1 }
0x1abd   :  { %v3527_v44 = vadd.f32 %v6096_v56, %v6469_v31 }
0x1abe   :  { %v3521_v57 = vpop.f32.mrf.mxu1 }
0x1abf   :  { %v3522_v42 = vadd.f32 %v3521_v57, %v6471_v33  ;;  %v3533_v58 = vsel %vm551_vm4, %v3527_v44, -inf }
0x1ac0   :  { %3534 = vmax.xlane.f32.xlu1 %v3533_v58 }
0x1ac1   :  { %v3530_v59 = vsel %vm547_vm6, %v3522_v42, -inf }
0x1ac2   :  { %3531 = vmax.xlane.f32.xlu0 %v3530_v59 }
0x1b49   :  { %v3535_v60 = vpop.xlane.xlu1 %3534 }
0x1b4a   :  { %v3537_v61 = vsub.f32 %v3527_v44, %v3535_v60 }
0x1b4b   :  { %v3532_v62 = vpop.xlane.xlu0 %3531 }
0x1b4c   :  { %v3540_v63 = vmul.f32 1.442695, %v3537_v61  ;;  %v3536_v0 = vsub.f32 %v3522_v42, %v3532_v62 }
0x1b4e   :  { %6334 = vpow2.f32 %v3540_v63  ;;  %v3538_v2 = vmul.f32 1.442695, %v3536_v0 }
0x1b50   :  { %6336 = vpow2.f32 %v3538_v2 }
0x1b5b   :  { %v6335_v3 = vpop.eup %6334 }
0x1b5c   :  { %v3545_v5 = vsel %vm551_vm4, %v6335_v3, 0.0 }
0x1b5d   :  { %v6337_v4 = vpop.eup %6336  ;;  %3546 = vadd.xlane.f32.xlu1 %v3545_v5 }
0x1b5e   :  { %v3542_v7 = vsel %vm547_vm6, %v6337_v4, 0.0 }
0x1b5f   :  { %3543 = vadd.xlane.f32.xlu0 %v3542_v7  ;;  %v4247_v7 = vld [vmem:[#allocation3 + $0x598] sm:$0xff] }
0x1be6   :  { %v3547_v11 = vpop.xlane.xlu1 %3546 }
0x1be7   :  { %6338 = vrcp.f32 %v3547_v11 }
0x1be8   :  { %v3544_v12 = vpop.xlane.xlu0 %3543 }
0x1be9   :  { %6340 = vrcp.f32 %v3544_v12 }
0x1bf4   :  { %v6339_v6 = vpop.eup %6338 }
0x1bf5   :  { %v3551_v16 = vmul.f32 %v6339_v6, %v6335_v3 }
0x1bf6   :  { %v6341_v14 = vpop.eup %6340 }
0x1bf7   :  { %v3550_v15 = vmul.f32 %v6341_v14, %v6337_v4 }
0x1bf9   :  { %6101 = vmatprep.mubr.msk.f32.mxu0 %vm547_vm6, %v3550_v15 }
0x1bfa   :  { %6102 = vmatmul.mubr.msk.f32.vlgmr.msra.gmra.mxu0 %vm547_vm6, %v3551_v16  ;;  %v4246_v16 = vld [vmem:[#allocation3 + $0x590] sm:$0xff] }
0x1bfb   :  { %6110 = vmatpush3.msra.mxu0 %v3723_v8  ;;  %6117 = vmatprep.mubr.msk.f32.mxu0 %vm172_vm3, %v6621_v41  ;;  %v4160_v8 = vld [vmem:[#allocation3 + $0x578] sm:$0xff] }
0x1bfc   :  { %6111 = vmatprep.subr.mxu0 %v3722_v18 }
0x1bfd   :  { %6112 = vmatpush3.msra.mxu0 %v3722_v18  ;;  %v4245_v18 = vld [vmem:[#allocation3 + $0x588] sm:$0xff] }
0x1bfe   :  { %6113 = vmatprep.subr.mxu0 %v3721_v17 }
0x1bff   :  { %6114 = vmatpush3.msra.mxu0 %v3721_v17  ;;  %v4244_v17 = vld [vmem:[#allocation3 + $0x580] sm:$0xff] }
0x1c00   :  { %6115 = vmatprep.subr.mxu0 %v3720_v47 }
0x1c01   :  { %6116 = vmatpush3.msra.mxu0 %v3720_v47  ;;  %v4410_v47 = vld [vmem:[#allocation3 + $0x5e0] sm:$0xff] }
0x1c02   :  { %6118 = vmatmul.mubr.msk.f32.vlgmr.msra.gmra.mxu0 %vm172_vm3, %v6623_v43  ;;  %6131 = vmatprep.subr.mxu0 %v3886_v19 }
0x1c03   :  { %6132 = vmatpush3.msra.mxu0 %v3886_v19  ;;  %6139 = vmatprep.mubr.msk.f32.mxu0 %vm172_vm3, %v6621_v41  ;;  %v4409_v19 = vld [vmem:[#allocation3 + $0x5d8] sm:$0xff] }
0x1c04   :  { %6133 = vmatprep.subr.mxu0 %v3885_v23 }
0x1c05   :  { %6134 = vmatpush3.msra.mxu0 %v3885_v23  ;;  %v4408_v23 = vld [vmem:[#allocation3 + $0x5d0] sm:$0xff] }
0x1c06   :  { %6135 = vmatprep.subr.mxu0 %v3884_v20 }
0x1c07   :  { %6136 = vmatpush3.msra.mxu0 %v3884_v20  ;;  %v4407_v20 = vld [vmem:[#allocation3 + $0x5c8] sm:$0xff] }
0x1c08   :  { %6137 = vmatprep.subr.mxu0 %v3883_v49 }
0x1c09   :  { %6138 = vmatpush3.msra.mxu0 %v3883_v49  ;;  %v4331_v49 = vld [vmem:[#allocation3 + $0x5c0] sm:$0xff] }
0x1c0a   :  { %6140 = vmatmul.mubr.msk.f32.vlgmr.msra.gmra.mxu0 %vm172_vm3, %v6623_v43 }
0x1cba   :  { %v6103_v25 = vpop.f32.mrf.mxu0 }
0x1cbc   :  { %v3627_v21 = vpop.f32.mrf.mxu0 }
0x1cbd   :  { %6106 = vmatprep.mubr.msk.f32.mxu1 %vm459_vm5, %v3627_v21  ;;  %v4330_v21 = vld [vmem:[#allocation3 + $0x5b8] sm:$0xff] }
0x1cbe   :  { %6107 = vmatmul.mubr.msk.f32.vlgmr.msra.gmra.mxu1 %vm459_vm5, %v6103_v25 }
0x1cbf   :  { %6121 = vmatpush3.msra.mxu1 %v3807_v24  ;;  %6128 = vmatprep.mubr.msk.f32.mxu1 %vm172_vm3, %v6621_v41 }
0x1cc0   :  { %6122 = vmatprep.subr.mxu1 %v3806_v26 }
0x1cc1   :  { %6123 = vmatpush3.msra.mxu1 %v3806_v26  ;;  %v4329_v26 = vld [vmem:[#allocation3 + $0x5b0] sm:$0xff] }
0x1cc2   :  { %v6119_v29 = vpop.f32.mrf.mxu0  ;;  %6124 = vmatprep.subr.mxu1 %v3805_v22 }
0x1cc3   :  { %v3801_v30 = vadd.f32 %v6119_v29, %v5412_v27  ;;  %6125 = vmatpush3.msra.mxu1 %v3805_v22  ;;  %v5429_v22 = vld [vmem:[#allocation3 + $0x5a0] ss:$0 sm:$0xff] }
0x1cc4   :  { %v3795_v32 = vpop.f32.mrf.mxu0  ;;  %6126 = vmatprep.subr.mxu1 %v3804_v28 }
0x1cc5   :  { %v3796_v34 = vadd.f32 %v5412_v27, %v3795_v32  ;;  %6127 = vmatpush3.msra.mxu1 %v3804_v28  ;;  %v4328_v27 = vld [vmem:[#allocation3 + $0x5a8] sm:$0xff] }
0x1cc6   :  { %6129 = vmatmul.mubr.msk.f32.vlgmr.msra.gmra.mxu1 %vm172_vm3, %v6623_v43 }
0x1cc7   :  { %6146 = vmatprep.mubr.msk.f32.mxu1 %vm459_vm5, %v3796_v34  ;;  %v5434_v34 = vld [vmem:[#allocation3 + $0x5e8] ss:$0 sm:$0xff] }
0x1cca   :  { %v6141_v36 = vpop.f32.mrf.mxu0 }
0x1ccb   :  { %v3964_v37 = vadd.f32 %v6141_v36, %v5417_v35 }
0x1ccc   :  { %v3958_v38 = vpop.f32.mrf.mxu0 }
0x1ccd   :  { %v3959_v39 = vadd.f32 %v5417_v35, %v3958_v38  ;;  %6149 = vmatprep.subr.msk.mxu0 %vm6814_vm14, %v3964_v37 }
0x1cce   :  { %6150 = vmatpush3.msk.msra.mxu0 %vm6815_vm15, %v3964_v37 }
0x1ccf   :  { %6151 = vmatprep.subr.mxu0 %v3959_v39 }
0x1cd0   :  { %6152 = vmatpush3.msra.mxu0 %v3959_v39 }
0x1cd1   :  { %6161 = vmatprep.subr.mxu0 %v4247_v7 }
0x1d7e   :  { %v6108_v46 = vpop.f32.mrf.mxu1 }
0x1d7f   :  { %v6709_v50 = vadd.f32 %v6108_v46, %v3195_v45 }
0x1d80   :  { %v3709_v51 = vpop.f32.mrf.mxu1 }
0x1d81   :  { %v6711_v54 = vadd.f32 %v3709_v51, %v3194_v48 }
0x1d86   :  { %v6130_v55 = vpop.f32.mrf.mxu1 }
0x1d87   :  { %6142 = vmatprep.subr.msk.mxu1 %vm459_vm5, %v6130_v55 }
0x1d88   :  { %v3874_v56 = vpop.f32.mrf.mxu1  ;;  %6143 = vmatpush3.xpose.msk.msra.mxu1 %vm459_vm5, %v6130_v55 }
0x1d89   :  { %6144 = vmatprep.subr.msk.mxu1 %vm459_vm5, %v3874_v56 }
0x1d8c   :  { %6145 = vmatpush3.xpose.msk.msra.mxu1 %vm459_vm5, %v3874_v56 }
0x1d8d   :  { %6156 = vmatprep.subr.mxu1 %v4160_v8 }
0x1d8f   :  { %6147 = vmatmul.mubr.msk.f32.vlgmr.msra.gmra.mxu1 %vm459_vm5, %v3801_v30 }
0x1d90   :  { %6157 = vmatpush3.msra.mxu1 %v4160_v8 }
0x1d91   :  { %6172 = vmatprep.subr.mxu1 %v4331_v49 }
0x1e4f   :  { %v6148_v52 = vpop.f32.mrf.mxu1 }
0x1e50   :  { %v4051_v53 = vadd.f32 %v6148_v52, %v6469_v31 }
0x1e51   :  { %v4045_v44 = vpop.f32.mrf.mxu1 }
0x1e52   :  { %v4046_v57 = vadd.f32 %v4045_v44, %v6471_v33  ;;  %v4057_v42 = vsel %vm551_vm4, %v4051_v53, -inf }
0x1e53   :  { %4058 = vmax.xlane.f32.xlu1 %v4057_v42 }
0x1e54   :  { %v4054_v58 = vsel %vm547_vm6, %v4046_v57, -inf }
0x1e55   :  { %4055 = vmax.xlane.f32.xlu0 %v4054_v58 }
0x1edc   :  { %v4059_v59 = vpop.xlane.xlu1 %4058 }
0x1edd   :  { %v4061_v60 = vsub.f32 %v4051_v53, %v4059_v59 }
0x1ede   :  { %v4056_v61 = vpop.xlane.xlu0 %4055 }
0x1edf   :  { %v4064_v62 = vmul.f32 1.442695, %v4061_v60  ;;  %v4060_v63 = vsub.f32 %v4046_v57, %v4056_v61  ;;  %v4684_v61 = vld [vmem:[#allocation3 + $0x5f0] sm:$0xff] }
0x1ee1   :  { %6342 = vpow2.f32 %v4064_v62  ;;  %v4062_v0 = vmul.f32 1.442695, %v4060_v63 }
0x1ee3   :  { %6344 = vpow2.f32 %v4062_v0 }
0x1eee   :  { %v6343_v2 = vpop.eup %6342 }
0x1eef   :  { %v4069_v3 = vsel %vm551_vm4, %v6343_v2, 0.0 }
0x1ef0   :  { %v6345_v5 = vpop.eup %6344  ;;  %4070 = vadd.xlane.f32.xlu1 %v4069_v3 }
0x1ef1   :  { %v4066_v4 = vsel %vm547_vm6, %v6345_v5, 0.0 }
0x1ef2   :  { %4067 = vadd.xlane.f32.xlu0 %v4066_v4 }
0x1f79   :  { %v4071_v9 = vpop.xlane.xlu1 %4070 }
0x1f7a   :  { %6346 = vrcp.f32 %v4071_v9 }
0x1f7b   :  { %v4068_v11 = vpop.xlane.xlu0 %4067 }
0x1f7c   :  { %6348 = vrcp.f32 %v4068_v11 }
0x1f87   :  { %v6347_v12 = vpop.eup %6346 }
0x1f88   :  { %v4075_v15 = vmul.f32 %v6347_v12, %v6343_v2 }
0x1f89   :  { %v6349_v6 = vpop.eup %6348 }
0x1f8a   :  { %v4074_v14 = vmul.f32 %v6349_v6, %v6345_v5 }
0x1f8c   :  { %6153 = vmatprep.mubr.msk.f32.mxu0 %vm547_vm6, %v4074_v14 }
0x1f8d   :  { %6154 = vmatmul.mubr.msk.f32.vlgmr.msra.gmra.mxu0 %vm547_vm6, %v4075_v15 }
0x1f8e   :  { %6162 = vmatpush3.msra.mxu0 %v4247_v7  ;;  %6169 = vmatprep.mubr.msk.f32.mxu0 %vm172_vm3, %v6621_v41 }
0x1f8f   :  { %6163 = vmatprep.subr.mxu0 %v4246_v16 }
0x1f90   :  { %6164 = vmatpush3.msra.mxu0 %v4246_v16 }
0x1f91   :  { %6165 = vmatprep.subr.mxu0 %v4245_v18 }
0x1f92   :  { %6166 = vmatpush3.msra.mxu0 %v4245_v18 }
0x1f93   :  { %6167 = vmatprep.subr.mxu0 %v4244_v17 }
0x1f94   :  { %6168 = vmatpush3.msra.mxu0 %v4244_v17 }
0x1f95   :  { %6170 = vmatmul.mubr.msk.f32.vlgmr.msra.gmra.mxu0 %vm172_vm3, %v6623_v43  ;;  %6183 = vmatprep.subr.mxu0 %v4410_v47 }
0x1f96   :  { %6184 = vmatpush3.msra.mxu0 %v4410_v47  ;;  %6191 = vmatprep.mubr.msk.f32.mxu0 %vm172_vm3, %v6621_v41 }
0x1f97   :  { %6185 = vmatprep.subr.mxu0 %v4409_v19 }
0x1f98   :  { %6186 = vmatpush3.msra.mxu0 %v4409_v19 }
0x1f99   :  { %6187 = vmatprep.subr.mxu0 %v4408_v23 }
0x1f9a   :  { %6188 = vmatpush3.msra.mxu0 %v4408_v23 }
0x1f9b   :  { %6189 = vmatprep.subr.mxu0 %v4407_v20 }
0x1f9c   :  { %6190 = vmatpush3.msra.mxu0 %v4407_v20 }
0x1f9d   :  { %6192 = vmatmul.mubr.msk.f32.vlgmr.msra.gmra.mxu0 %vm172_vm3, %v6623_v43 }
0x204d   :  { %v6155_v24 = vpop.f32.mrf.mxu0 }
0x204f   :  { %v4151_v25 = vpop.f32.mrf.mxu0 }
0x2050   :  { %6158 = vmatprep.mubr.msk.f32.mxu1 %vm459_vm5, %v4151_v25  ;;  %v4799_v25 = vld [vmem:[#allocation3 + $0x3c0] sm:$0xff] }
0x2051   :  { %6159 = vmatmul.mubr.msk.f32.vlgmr.msra.gmra.mxu1 %vm459_vm5, %v6155_v24 }
0x2052   :  { %6173 = vmatpush3.msra.mxu1 %v4331_v49  ;;  %6180 = vmatprep.mubr.msk.f32.mxu1 %vm172_vm3, %v6621_v41 }
0x2053   :  { %6174 = vmatprep.subr.mxu1 %v4330_v21 }
0x2054   :  { %6175 = vmatpush3.msra.mxu1 %v4330_v21  ;;  %v4798_v21 = vld [vmem:[#allocation3 + $0x3b8] sm:$0xff] }
0x2055   :  { %v6171_v28 = vpop.f32.mrf.mxu0  ;;  %6176 = vmatprep.subr.mxu1 %v4329_v26 }
0x2056   :  { %v4325_v29 = vadd.f32 %v6171_v28, %v5429_v22  ;;  %6177 = vmatpush3.msra.mxu1 %v4329_v26  ;;  %v4797_v26 = vld [vmem:[#allocation3 + $0x3b0] sm:$0xff] }
0x2057   :  { %v4319_v30 = vpop.f32.mrf.mxu0  ;;  %6178 = vmatprep.subr.mxu1 %v4328_v27 }
0x2058   :  { %v4320_v32 = vadd.f32 %v5429_v22, %v4319_v30  ;;  %6179 = vmatpush3.msra.mxu1 %v4328_v27  ;;  %v4796_v22 = vld [vmem:[#allocation3 + $0x3a8] sm:$0xff] }
0x2059   :  { %6181 = vmatmul.mubr.msk.f32.vlgmr.msra.gmra.mxu1 %vm172_vm3, %v6623_v43 }
0x205a   :  { %6198 = vmatprep.mubr.msk.f32.mxu1 %vm459_vm5, %v4320_v32 }
0x205d   :  { %v6193_v41 = vpop.f32.mrf.mxu0 }
0x205e   :  { %v4488_v35 = vadd.f32 %v6193_v41, %v5434_v34 }
0x205f   :  { %v4482_v36 = vpop.f32.mrf.mxu0 }
0x2060   :  { %v4483_v37 = vadd.f32 %v5434_v34, %v4482_v36  ;;  %6201 = vmatprep.subr.msk.mxu0 %vm6816_vm0, %v4488_v35 }
0x2061   :  { %6202 = vmatpush3.msk.msra.mxu0 %vm6817_vm2, %v4488_v35 }
0x2062   :  { %6203 = vmatprep.subr.mxu0 %v4483_v37 }
0x2063   :  { %6204 = vmatpush3.msra.mxu0 %v4483_v37 }
0x2064   :  { %6213 = vmatprep.subr.mxu0 %v4799_v25 }
0x2111   :  { %v6160_v38 = vpop.f32.mrf.mxu1 }
0x2112   :  { %v4243_v39 = vadd.f32 %v6160_v38, %v6709_v50  ;;  %v4947_v38 = vld [vmem:[#allocation3 + $0x408] sm:$0xff] }
0x2113   :  { %v4233_v40 = vpop.f32.mrf.mxu1 }
0x2114   :  { %v4242_v45 = vadd.f32 %v4233_v40, %v6711_v54  ;;  %v4945_v40 = vld [vmem:[#allocation3 + $0x3f8] sm:$0xff] }
0x2119   :  { %v6182_v43 = vpop.f32.mrf.mxu1 }
0x211a   :  { %6194 = vmatprep.subr.msk.mxu1 %vm459_vm5, %v6182_v43 }
0x211b   :  { %v4398_v46 = vpop.f32.mrf.mxu1  ;;  %6195 = vmatpush3.xpose.msk.msra.mxu1 %vm459_vm5, %v6182_v43  ;;  %v4943_v43 = vld [vmem:[#allocation3 + $0x3e8] sm:$0xff] }
0x211c   :  { %6196 = vmatprep.subr.msk.mxu1 %vm459_vm5, %v4398_v46 }
0x211f   :  { %6197 = vmatpush3.xpose.msk.msra.mxu1 %vm459_vm5, %v4398_v46  ;;  %v4942_v46 = vld [vmem:[#allocation3 + $0x3e0] sm:$0xff] }
0x2120   :  { %6208 = vmatprep.subr.mxu1 %v4684_v61 }
0x2122   :  { %6199 = vmatmul.mubr.msk.f32.vlgmr.msra.gmra.mxu1 %vm459_vm5, %v4325_v29 }
0x2123   :  { %6209 = vmatpush3.msra.mxu1 %v4684_v61 }
0x2124   :  { %6224 = vmatprep.subr.mxu1 %v4947_v38 }
0x21e2   :  { %v6200_v48 = vpop.f32.mrf.mxu1 }
0x21e3   :  { %v4575_v51 = vadd.f32 %v6200_v48, %v6469_v31  ;;  %v4941_v48 = vld [vmem:[#allocation3 + $0x3d8] sm:$0xff] }
0x21e4   :  { %v4569_v55 = vpop.f32.mrf.mxu1 }
0x21e5   :  { %v4570_v50 = vadd.f32 %v4569_v55, %v6471_v33  ;;  %v4581_v54 = vsel %vm551_vm4, %v4575_v51, -inf  ;;  %v5446_v55 = vld [vmem:[#allocation3 + $0x3c8] ss:$0 sm:$0xff] }
0x21e6   :  { %4582 = vmax.xlane.f32.xlu1 %v4581_v54 }
0x21e7   :  { %v4578_v56 = vsel %vm547_vm6, %v4570_v50, -inf }
0x21e8   :  { %4579 = vmax.xlane.f32.xlu0 %v4578_v56 }
0x226f   :  { %v4583_v52 = vpop.xlane.xlu1 %4582 }
0x2270   :  { %v4585_v53 = vsub.f32 %v4575_v51, %v4583_v52  ;;  %v4940_v51 = vld [vmem:[#allocation3 + $0x3d0] sm:$0xff] }
0x2271   :  { %v4580_v44 = vpop.xlane.xlu0 %4579 }
0x2272   :  { %v4588_v57 = vmul.f32 1.442695, %v4585_v53  ;;  %v4584_v42 = vsub.f32 %v4570_v50, %v4580_v44 }
0x2274   :  { %6350 = vpow2.f32 %v4588_v57  ;;  %v4586_v58 = vmul.f32 1.442695, %v4584_v42 }
0x2276   :  { %6352 = vpow2.f32 %v4586_v58 }
0x2281   :  { %v6351_v59 = vpop.eup %6350 }
0x2282   :  { %v4593_v31 = vsel %vm551_vm4, %v6351_v59, 0.0  ;;  %vm6818_vm4 = vmmov %vm6809_vm8 }
0x2283   :  { %v6353_v60 = vpop.eup %6352  ;;  %4594 = vadd.xlane.f32.xlu1 %v4593_v31  ;;  %vm6820_vm9 = vmmov %vm6818_vm4 }
0x2284   :  { %v4590_v33 = vsel %vm547_vm6, %v6353_v60, 0.0  ;;  %vm6821_vm10 = vmmov %vm6818_vm4 }
0x2285   :  { %4591 = vadd.xlane.f32.xlu0 %v4590_v33 }
0x230c   :  { %v4595_v62 = vpop.xlane.xlu1 %4594 }
0x230d   :  { %6354 = vrcp.f32 %v4595_v62 }
0x230e   :  { %v4592_v63 = vpop.xlane.xlu0 %4591 }
0x230f   :  { %6356 = vrcp.f32 %v4592_v63 }
0x231a   :  { %v6355_v0 = vpop.eup %6354 }
0x231b   :  { %v4599_v5 = vmul.f32 %v6355_v0, %v6351_v59 }
0x231c   :  { %v6357_v2 = vpop.eup %6356 }
0x231d   :  { %v4598_v3 = vmul.f32 %v6357_v2, %v6353_v60 }
0x231f   :  { %6205 = vmatprep.mubr.msk.f32.mxu0 %vm547_vm6, %v4598_v3 }
0x2320   :  { %6206 = vmatmul.mubr.msk.f32.vlgmr.msra.gmra.mxu0 %vm547_vm6, %v4599_v5 }
0x2321   :  { %6214 = vmatpush3.msra.mxu0 %v4799_v25 }
0x2322   :  { %6215 = vmatprep.subr.mxu0 %v4798_v21 }
0x2323   :  { %6216 = vmatpush3.msra.mxu0 %v4798_v21 }
0x2324   :  { %6217 = vmatprep.subr.mxu0 %v4797_v26 }
0x2325   :  { %6218 = vmatpush3.msra.mxu0 %v4797_v26 }
0x2326   :  { %6219 = vmatprep.subr.mxu0 %v4796_v22 }
0x2327   :  { %6220 = vmatpush3.msra.mxu0 %v4796_v22 }
0x23e0   :  { %v6207_v4 = vpop.f32.mrf.mxu0 }
0x23e2   :  { %v4675_v7 = vpop.f32.mrf.mxu0 }
0x23e3   :  { %6210 = vmatprep.mubr.msk.f32.mxu1 %vm459_vm5, %v4675_v7 }
0x23e4   :  { %6211 = vmatmul.mubr.msk.f32.vlgmr.msra.gmra.mxu1 %vm459_vm5, %v6207_v4  ;;  %vm6819_vm5 = vmmov %vm6818_vm4 }
0x23e5   :  { %6225 = vmatpush3.msra.mxu1 %v4947_v38 }
0x24a4   :  { %v6212_v8 = vpop.f32.mrf.mxu1 }
0x24a5   :  { %v4767_v9 = vadd.f32 %v6212_v8, %v4243_v39  ;;  %v4946_v39 = vld [vmem:[#allocation3 + $0x400] sm:$0xff] }
0x24a6   :  { %v4757_v11 = vpop.f32.mrf.mxu1  ;;  %6226 = vmatprep.subr.mxu1 %v4946_v39 }
0x24a7   :  { %v6761_v12 = vadd.f32 %v4767_v9, %v6608_v10  ;;  %v4766_v6 = vadd.f32 %v4757_v11, %v4242_v45  ;;  %6227 = vmatpush3.msra.mxu1 %v4946_v39  ;;  %v4944_v45 = vld [vmem:[#allocation3 + $0x3f0] sm:$0xff] }
0x24a8   :  { %6228 = vmatprep.subr.mxu1 %v4945_v40 }
0x24a9   :  { %v6764_v14 = vadd.f32 %v4766_v6, %v6613_v13  ;;  %v4773_v15 = vsel %vm6818_vm4, %v6761_v12, 0.0  ;;  %6229 = vmatpush3.msra.mxu1 %v4945_v40  ;;  %v5449_v40 = vld [vmem:[#allocation3 + $0x410] ss:$0 sm:$0xff] }
0x24aa   :  { %4774 = vadd.xlane.f32.xlu1 %v4773_v15  ;;  %6230 = vmatprep.subr.mxu1 %v4944_v45 }
0x24ab   :  { %v4770_v16 = vsel %vm172_vm3, %v6764_v14, 0.0  ;;  %6231 = vmatpush3.msra.mxu1 %v4944_v45 }
0x24ac   :  { %4771 = vadd.xlane.f32.xlu0 %v4770_v16  ;;  %6232 = vmatprep.subr.mxu1 %v4943_v43 }
0x24ad   :  { %6233 = vmatpush3.msra.mxu1 %v4943_v43 }
0x24ae   :  { %6234 = vmatprep.subr.mxu1 %v4942_v46 }
0x24af   :  { %6235 = vmatpush3.msra.mxu1 %v4942_v46 }
0x24b0   :  { %6236 = vmatprep.subr.mxu1 %v4941_v48 }
0x24b1   :  { %6237 = vmatpush3.msra.mxu1 %v4941_v48 }
0x24b2   :  { %6238 = vmatprep.subr.mxu1 %v4940_v51 }
0x24b3   :  { %6239 = vmatpush3.msra.mxu1 %v4940_v51 }
0x2533   :  { %v4775_v18 = vpop.xlane.xlu1 %4774 }
0x2534   :  { %v4777_v17 = vmul.f32 0.03125, %v4775_v18 }
0x2535   :  { %v4772_v47 = vpop.xlane.xlu0 %4771 }
0x2536   :  { %v4779_v19 = vsub.f32 %v6761_v12, %v4777_v17  ;;  %v4776_v23 = vmul.f32 0.03125, %v4772_v47 }
0x2538   :  { %v4778_v10 = vsub.f32 %v6764_v14, %v4776_v23  ;;  %v4781_v20 = vmul.f32 %v4779_v19, %v4779_v19 }
0x253a   :  { %v4785_v13 = vsel %vm6819_vm5, %v4781_v20, 0.0  ;;  %v4780_v49 = vmul.f32 %v4778_v10, %v4778_v10 }
0x253b   :  { %4786 = vadd.xlane.f32.xlu1 %v4785_v13 }
0x253c   :  { %v4782_v24 = vsel %vm172_vm3, %v4780_v49, 0.0 }
0x253d   :  { %4783 = vadd.xlane.f32.xlu0 %v4782_v24 }
0x25c4   :  { %v4787_v27 = vpop.xlane.xlu1 %4786 }
0x25c5   :  { %v4789_v28 = vmul.f32 0.03125, %v4787_v27 }
0x25c6   :  { %v4784_v29 = vpop.xlane.xlu0 %4783 }
0x25c7   :  { %v4791_v30 = vadd.f32 1e-05, %v4789_v28  ;;  %v4788_v32 = vmul.f32 0.03125, %v4784_v29 }
0x25c9   :  { %v4790_v34 = vadd.f32 1e-05, %v4788_v32  ;;  %6358 = vrsqrt.f32 %v4791_v30 }
0x25cb   :  { %6360 = vrsqrt.f32 %v4790_v34 }
0x25d6   :  { %v6359_v41 = vpop.eup %6358 }
0x25d7   :  { %v4795_v37 = vmul.f32 %v6359_v41, %v4779_v19 }
0x25d8   :  { %v6361_v35 = vpop.eup %6360 }
0x25d9   :  { %v4794_v36 = vmul.f32 %v6361_v35, %v4778_v10 }
0x25db   :  { %6221 = vmatprep.mubr.msk.f32.mxu0 %vm172_vm3, %v4794_v36 }
0x25dc   :  { %6222 = vmatmul.mubr.msk.f32.vlgmr.msra.gmra.mxu0 %vm172_vm3, %v4795_v37 }
0x269c   :  { %v6223_v50 = vpop.f32.mrf.mxu0 }
0x269d   :  { %v4883_v54 = vadd.f32 %v6223_v50, %v5446_v55 }
0x269e   :  { %v4877_v56 = vpop.f32.mrf.mxu0 }
0x269f   :  { %v4889_v52 = vmul.f32 0.70710677, %v4883_v54  ;;  %v4878_v53 = vadd.f32 %v5446_v55, %v4877_v56  ;;  %v4887_v37 = vmul.f32 0.5, %v4883_v54 }
0x26a1   :  { %v4895_v44 = vand.u32 2147483647, %v4889_v52  ;;  %v4888_v57 = vmul.f32 0.70710677, %v4878_v53  ;;  %vm4891_vm6 = vcmp.ge.f32.partialorder %v4889_v52, 0.0  ;;  %v4886_v35 = vmul.f32 0.5, %v4878_v53 }
0x26a2   :  { %v4893_v27 = vsel %vm4891_vm6, 1.0, %v6408_v1 }
0x26a3   :  { %v4897_v42 = vmul.f32 0.3275911, %v4895_v44  ;;  %v4894_v58 = vand.u32 2147483647, %v4888_v57  ;;  %v4923_v33 = vsub.f32 0.0, %v4895_v44  ;;  %vm4890_vm7 = vcmp.ge.f32.partialorder %v4888_v57, 0.0 }
0x26a4   :  { %v4892_v32 = vsel %vm4890_vm7, 1.0, %v6408_v1 }
0x26a5   :  { %v4899_v59 = vadd.f32 1.0, %v4897_v42  ;;  %v4896_v31 = vmul.f32 0.3275911, %v4894_v58  ;;  %v4922_v61 = vsub.f32 0.0, %v4894_v58  ;;  %v4925_v62 = vmul.f32 %v4923_v33, %v4895_v44 }
0x26a7   :  { %6362 = vrcp.f32 %v4899_v59  ;;  %v4898_v60 = vadd.f32 1.0, %v4896_v31  ;;  %v4924_v0 = vmul.f32 %v4922_v61, %v4894_v58  ;;  %v4928_v3 = vmul.f32 1.442695, %v4925_v62 }
0x26a9   :  { %6364 = vrcp.f32 %v4898_v60  ;;  %v4926_v8 = vmul.f32 1.442695, %v4924_v0 }
0x26aa   :  { %6366 = vpow2.f32 %v4928_v3 }
0x26ab   :  { %6368 = vpow2.f32 %v4926_v8 }
0x26b4   :  { %v6363_v63 = vpop.eup %6362 }
0x26b5   :  { %v4905_v2 = vmul.f32 1.0614054, %v6363_v63 }
0x26b6   :  { %v6365_v5 = vpop.eup %6364 }
0x26b7   :  { %v4907_v4 = vadd.f32 -1.4531521, %v4905_v2  ;;  %v4904_v7 = vmul.f32 1.0614054, %v6365_v5  ;;  %v6367_v49 = vpop.eup %6366 }
0x26b8   :  { %v6369_v26 = vpop.eup %6368 }
0x26b9   :  { %v4909_v9 = vmul.f32 %v6363_v63, %v4907_v4  ;;  %v4906_v11 = vadd.f32 -1.4531521, %v4904_v7 }
0x26bb   :  { %v4911_v6 = vadd.f32 1.4214138, %v4909_v9  ;;  %v4908_v15 = vmul.f32 %v6365_v5, %v4906_v11 }
0x26bd   :  { %v4913_v16 = vmul.f32 %v6363_v63, %v4911_v6  ;;  %v4910_v18 = vadd.f32 1.4214138, %v4908_v15 }
0x26bf   :  { %v4915_v17 = vadd.f32 -0.28449672, %v4913_v16  ;;  %v4912_v47 = vmul.f32 %v6365_v5, %v4910_v18 }
0x26c1   :  { %v4917_v19 = vmul.f32 %v6363_v63, %v4915_v17  ;;  %v4914_v23 = vadd.f32 -0.28449672, %v4912_v47 }
0x26c3   :  { %v4919_v10 = vadd.f32 0.2548296, %v4917_v19  ;;  %v4916_v20 = vmul.f32 %v6365_v5, %v4914_v23 }
0x26c5   :  { %v4921_v13 = vmul.f32 %v6363_v63, %v4919_v10  ;;  %v4918_v24 = vadd.f32 0.2548296, %v4916_v20 }
0x26c7   :  { %v4931_v25 = vmul.f32 %v6367_v49, %v4921_v13  ;;  %v4920_v21 = vmul.f32 %v6365_v5, %v4918_v24 }
0x26c9   :  { %v4933_v22 = vsub.f32 1.0, %v4931_v25  ;;  %v4930_v28 = vmul.f32 %v6369_v26, %v4920_v21 }
0x26cb   :  { %v4935_v29 = vmul.f32 %v4933_v22, %v4893_v27  ;;  %v4932_v30 = vsub.f32 1.0, %v4930_v28 }
0x26cd   :  { %v4934_v34 = vmul.f32 %v4932_v30, %v4892_v32  ;;  %v4937_v41 = vadd.f32 1.0, %v4935_v29 }
0x26cf   :  { %v4936_v36 = vadd.f32 1.0, %v4934_v34  ;;  %v4939_v39 = vmul.f32 %v4937_v41, %v4887_v37 }
0x26d1   :  { %v4938_v38 = vmul.f32 %v4936_v36, %v4886_v35 }
0x26d3   :  { %6240 = vmatprep.mubr.msk.f32.mxu1 %vm2497_vm1, %v4938_v38 }
0x26d4   :  { %6241 = vmatmul.mubr.msk.f32.vlgmr.msra.gmra.mxu1 %vm2497_vm1, %v4939_v39 }
0x2794   :  { %v6242_v45 = vpop.f32.mrf.mxu1 }
0x2795   :  { %v5031_v43 = vadd.f32 %v6242_v45, %v5449_v40 }
0x2796   :  { %v5025_v46 = vpop.f32.mrf.mxu1 }
0x2797   :  { %v5037_v48 = vmul.f32 0.70710677, %v5031_v43  ;;  %v5026_v51 = vadd.f32 %v5449_v40, %v5025_v46  ;;  %v5035_v26 = vmul.f32 0.5, %v5031_v43 }
0x2799   :  { %v5043_v55 = vand.u32 2147483647, %v5037_v48  ;;  %v5036_v50 = vmul.f32 0.70710677, %v5026_v51  ;;  %vm5039_vm1 = vcmp.ge.f32.partialorder %v5037_v48, 0.0  ;;  %v5034_v30 = vmul.f32 0.5, %v5026_v51 }
0x279a   :  { %v5041_v49 = vsel %vm5039_vm1, 1.0, %v6408_v1 }
0x279b   :  { %v5045_v56 = vmul.f32 0.3275911, %v5043_v55  ;;  %v5042_v52 = vand.u32 2147483647, %v5036_v50  ;;  %v5071_v57 = vsub.f32 0.0, %v5043_v55  ;;  %vm5038_vm8 = vcmp.ge.f32.partialorder %v5036_v50, 0.0 }
0x279c   :  { %v5040_v22 = vsel %vm5038_vm8, 1.0, %v6408_v1  ;;  %v5118_v50 = vld [vmem:[#allocation3 + $0x118] sm:$0xff] }
0x279d   :  { %v5047_v44 = vadd.f32 1.0, %v5045_v56  ;;  %v5044_v53 = vmul.f32 0.3275911, %v5042_v52  ;;  %v5070_v42 = vsub.f32 0.0, %v5042_v52  ;;  %v5073_v58 = vmul.f32 %v5071_v57, %v5043_v55  ;;  %v5119_v55 = vld [vmem:[#allocation3 + $0x120] sm:$0xff]  ;;  %v5116_v56 = vld [vmem:[#allocation3 + $0x108] sm:$0xff] }
0x279e   :  { %6243 = vmatprep.subr.mxu0 %v5119_v55 }
0x279f   :  { %6370 = vrcp.f32 %v5047_v44  ;;  %v5046_v54 = vadd.f32 1.0, %v5044_v53  ;;  %v5072_v31 = vmul.f32 %v5070_v42, %v5042_v52  ;;  %v5076_v33 = vmul.f32 1.442695, %v5073_v58  ;;  %6244 = vmatpush3.msra.mxu0 %v5119_v55 }
0x27a0   :  { %6245 = vmatprep.subr.mxu0 %v5118_v50 }
0x27a1   :  { %6372 = vrcp.f32 %v5046_v54  ;;  %v5074_v0 = vmul.f32 1.442695, %v5072_v31  ;;  %6246 = vmatpush3.msra.mxu0 %v5118_v50 }
0x27a2   :  { %6374 = vpow2.f32 %v5076_v33  ;;  %v5207_v33 = vld [vmem:[#allocation3 + $0x138] sm:$0xff] }
0x27a3   :  { %6376 = vpow2.f32 %v5074_v0 }
0x27ac   :  { %v6371_v59 = vpop.eup %6370 }
0x27ad   :  { %v5053_v60 = vmul.f32 1.0614054, %v6371_v59 }
0x27ae   :  { %v6373_v61 = vpop.eup %6372 }
0x27af   :  { %v5055_v62 = vadd.f32 -1.4531521, %v5053_v60  ;;  %v5052_v63 = vmul.f32 1.0614054, %v6373_v61  ;;  %v6375_v47 = vpop.eup %6374 }
0x27b0   :  { %v6377_v20 = vpop.eup %6376 }
0x27b1   :  { %v5057_v2 = vmul.f32 %v6371_v59, %v5055_v62  ;;  %v5054_v3 = vadd.f32 -1.4531521, %v5052_v63  ;;  %v5452_v63 = vld [vmem:[#allocation3 + $0x128] ss:$0 sm:$0xff] }
0x27b3   :  { %v5059_v5 = vadd.f32 1.4214138, %v5057_v2  ;;  %v5056_v4 = vmul.f32 %v6373_v61, %v5054_v3 }
0x27b5   :  { %v5061_v7 = vmul.f32 %v6371_v59, %v5059_v5  ;;  %v5058_v8 = vadd.f32 1.4214138, %v5056_v4  ;;  %v5455_v5 = vld [vmem:[#allocation3 + $0x140] ss:$0 sm:$0xff] }
0x27b7   :  { %v5063_v9 = vadd.f32 -0.28449672, %v5061_v7  ;;  %v5060_v11 = vmul.f32 %v6373_v61, %v5058_v8 }
0x27b9   :  { %v5065_v6 = vmul.f32 %v6371_v59, %v5063_v9  ;;  %v5062_v15 = vadd.f32 -0.28449672, %v5060_v11 }
0x27bb   :  { %v5067_v16 = vadd.f32 0.2548296, %v5065_v6  ;;  %v5064_v18 = vmul.f32 %v6373_v61, %v5062_v15 }
0x27bd   :  { %v5069_v17 = vmul.f32 %v6371_v59, %v5067_v16  ;;  %v5066_v19 = vadd.f32 0.2548296, %v5064_v18 }
0x27bf   :  { %v5079_v23 = vmul.f32 %v6375_v47, %v5069_v17  ;;  %v5068_v10 = vmul.f32 %v6373_v61, %v5066_v19  ;;  %v5206_v61 = vld [vmem:[#allocation3 + $0x130] sm:$0xff] }
0x27c1   :  { %v5081_v13 = vsub.f32 1.0, %v5079_v23  ;;  %v5078_v24 = vmul.f32 %v6377_v20, %v5068_v10 }
0x27c3   :  { %v5083_v25 = vmul.f32 %v5081_v13, %v5041_v49  ;;  %v5080_v21 = vsub.f32 1.0, %v5078_v24 }
0x27c5   :  { %v5085_v27 = vadd.f32 1.0, %v5083_v25  ;;  %v5082_v28 = vmul.f32 %v5080_v21, %v5040_v22 }
0x27c7   :  { %v5087_v29 = vmul.f32 %v5085_v27, %v5035_v26  ;;  %v5084_v32 = vadd.f32 1.0, %v5082_v28 }
0x27c9   :  { %v5089_v34 = vadd.f32 %v5087_v29, %v6761_v12  ;;  %v5086_v41 = vmul.f32 %v5084_v32, %v5034_v30 }
0x27cb   :  { %v5093_v35 = vsel %vm6820_vm9, %v5089_v34, 0.0  ;;  %v5088_v36 = vadd.f32 %v5086_v41, %v6764_v14  ;;  %v5117_v14 = vld [vmem:[#allocation3 + $0x110] sm:$0xff] }
0x27cc   :  { %5094 = vadd.xlane.f32.xlu1 %v5093_v35  ;;  %6247 = vmatprep.subr.mxu0 %v5117_v14 }
0x27cd   :  { %v5090_v37 = vsel %vm172_vm3, %v5088_v36, 0.0  ;;  %6248 = vmatpush3.msra.mxu0 %v5117_v14 }
0x27ce   :  { %5091 = vadd.xlane.f32.xlu0 %v5090_v37  ;;  %6249 = vmatprep.subr.mxu0 %v5116_v56 }
0x27cf   :  { %6250 = vmatpush3.msra.mxu0 %v5116_v56 }
0x27d0   :  { %6254 = vmatprep.subr.mxu0 %v5207_v33 }
0x2855   :  { %v5095_v38 = vpop.xlane.xlu1 %5094 }
0x2856   :  { %v5097_v39 = vmul.f32 0.03125, %v5095_v38 }
0x2857   :  { %v5092_v1 = vpop.xlane.xlu0 %5091 }
0x2858   :  { %v5099_v40 = vsub.f32 %v5089_v34, %v5097_v39  ;;  %v5096_v45 = vmul.f32 0.03125, %v5092_v1 }
0x285a   :  { %v5101_v43 = vmul.f32 %v5099_v40, %v5099_v40  ;;  %v5098_v46 = vsub.f32 %v5088_v36, %v5096_v45 }
0x285c   :  { %v5105_v48 = vsel %vm6821_vm10, %v5101_v43, 0.0  ;;  %v5100_v12 = vmul.f32 %v5098_v46, %v5098_v46 }
0x285d   :  { %5106 = vadd.xlane.f32.xlu1 %v5105_v48 }
0x285e   :  { %v5102_v51 = vsel %vm172_vm3, %v5100_v12, 0.0 }
0x285f   :  { %5103 = vadd.xlane.f32.xlu0 %v5102_v51 }
0x28e6   :  { %v5107_v52 = vpop.xlane.xlu1 %5106 }
0x28e7   :  { %v5109_v44 = vmul.f32 0.03125, %v5107_v52 }
0x28e8   :  { %v5104_v54 = vpop.xlane.xlu0 %5103 }
0x28e9   :  { %v5111_v53 = vadd.f32 1e-05, %v5109_v44  ;;  %v5108_v57 = vmul.f32 0.03125, %v5104_v54 }
0x28eb   :  { %v5110_v42 = vadd.f32 1e-05, %v5108_v57  ;;  %6378 = vrsqrt.f32 %v5111_v53 }
0x28ed   :  { %6380 = vrsqrt.f32 %v5110_v42 }
0x28f8   :  { %v6379_v58 = vpop.eup %6378 }
0x28f9   :  { %v5115_v60 = vmul.f32 %v6379_v58, %v5099_v40 }
0x28fa   :  { %v6381_v59 = vpop.eup %6380 }
0x28fb   :  { %v5114_v31 = vmul.f32 %v6381_v59, %v5098_v46 }
0x28fd   :  { %6251 = vmatprep.mubr.msk.f32.mxu0 %vm172_vm3, %v5114_v31 }
0x28fe   :  { %6252 = vmatmul.mubr.msk.f32.vlgmr.msra.gmra.mxu0 %vm172_vm3, %v5115_v60 }
0x28ff   :  { %6255 = vmatpush3.msra.mxu0 %v5207_v33 }
0x2900   :  { %6256 = vmatprep.subr.mxu0 %v5206_v61 }
0x2901   :  { %6257 = vmatpush3.msra.mxu0 %v5206_v61 }
0x29be   :  { %v6253_v62 = vpop.f32.mrf.mxu0 }
0x29bf   :  { %v5203_v3 = vadd.f32 %v6253_v62, %v5452_v63 }
0x29c0   :  { %v5197_v0 = vpop.f32.mrf.mxu0 }
0x29c1   :  { %v5198_v2 = vadd.f32 %v5452_v63, %v5197_v0 }
0x29c3   :  { %6258 = vmatprep.mubr.msk.f32.mxu0 %vm5213_vm11, %v5198_v2 }
0x29c4   :  { %6259 = vmatmul.mubr.msk.f32.vlgmr.msra.gmra.mxu0 %vm5213_vm11, %v5203_v3 }
0x2a84   :  { %v6260_v4 = vpop.f32.mrf.mxu0 }
0x2a85   :  { %v5292_v7 = vadd.f32 %v6260_v4, %v5455_v5 }
0x2a86   :  { %v5286_v8 = vpop.f32.mrf.mxu0 }
0x2a87   :  { %5296 = vst [vmem:[%s6798_s2 + $0x8] sm:$0x3] %v5292_v7  ;;  %v5287_v9 = vadd.f32 %v5455_v5, %v5286_v8 }
0x2a89   :  { %5295 = vst [vmem:[%s6798_s2] sm:$0xff] %v5287_v9 }
0x2a8a   :  { %5301 = vsyncpa [#allocation4], 1 }

</bundles_post_ra>
